<compile_context>
chip_gen: v6e
topology: v6e:2x2x1
jax: 0.10.0
libtpu: 0.0.40
codegen_flags: <defaults>
</compile_context>

<pallas_src>
import functools

import jax
import jax.numpy as jnp
from jax.experimental import pallas as pl
from jax.experimental.pallas import tpu as pltpu

# ---- module constants (from the PyTorch source) ----
DIM = 2
KERNEL_SIZE = [-1, -1, 2, 3, 4, 4]
ORDER = 3
CNN_CHANNEL = 91
SPATIAL = 2 ** (ORDER * DIM // 2)                               # 8
KSZ = KERNEL_SIZE[ORDER]                                        # 3
IN_CHANNELS = 7
OUTPUT_OF_CNN = CNN_CHANNEL * (SPATIAL - 3 * KSZ + 3) ** 2      # 91 * 2*2 = 364

# ---- kernel layout constants ----
CIN16 = 16         # input channels 7 -> 16 so W0*CIN16 == 128 (one vreg/row)
C_PAD = 128        # conv channels 91 -> 128 (lane padding, zero weights/bias)
H0 = W0 = SPATIAL                  # 8
H1 = W1 = H0 - KSZ + 1             # 6
H2 = W2 = H1 - KSZ + 1             # 4
H3 = W3 = H2 - KSZ + 1             # 2


# -------------------- the fused Pallas kernel --------------------
def _sfcnet_kernel(x_ref,
                   c1w_ref, c1b_ref, c2w_ref, c2b_ref, c3w_ref, c3b_ref,
                   wfc_ref, bfc_ref,
                   o_ref):
    """One grid step == TB images.

    Activation layout: rows = h*TB + b (batch fastest), lanes = w*C + c.
    All slices below are sublane-aligned (row offsets are multiples of TB,
    TB % 8 == 0) and lane-aligned (lane offsets are multiples of 128).
    """
    TB = x_ref.shape[0] // H0

    # ---- conv1: kernel-width shifts folded into the weight -> ONE matmul ---
    x = x_ref[...]                                              # (H0*TB, 128)
    lhs1 = jnp.concatenate(
        [x[kh * TB:(kh + H1) * TB, :] for kh in range(KSZ)], axis=1)
    a1 = jnp.maximum(
        jnp.dot(lhs1, c1w_ref[...], preferred_element_type=jnp.float32)
        + c1b_ref[...], 0.0)                                    # (H1*TB, 6*128)

    # ---- conv2/conv3: lane-aligned per-output-column im2col matmuls --------
    def conv_relu(a, w_ref, b_ref, ho, wo_n):
        wmat = w_ref[...]                                       # (1152, 128)
        cols = []
        for wo in range(wo_n):
            lhs = jnp.concatenate(
                [a[kh * TB:(kh + ho) * TB, wo * C_PAD:(wo + KSZ) * C_PAD]
                 for kh in range(KSZ)], axis=1)                 # (ho*TB, 1152)
            cols.append(jnp.dot(lhs, wmat,
                                preferred_element_type=jnp.float32))
        out = jnp.concatenate(cols, axis=1) + b_ref[...]
        return jnp.maximum(out, 0.0)                            # (ho*TB, wo_n*128)

    a2 = conv_relu(a1, c2w_ref, c2b_ref, H2, W2)                # (4*TB, 512)
    a3 = conv_relu(a2, c3w_ref, c3b_ref, H3, W3)                # (2*TB, 256)

    # ---- folded FC chain + heads: H3 accumulated (TB,256)@(256,128) --------
    heads = bfc_ref[...]                                        # (1, 128)
    for h in range(H3):
        heads = heads + jnp.dot(a3[h * TB:(h + 1) * TB, :], wfc_ref[h],
                                preferred_element_type=jnp.float32)
    o_ref[...] = heads                                          # (TB, 128)


# -------------------- parameters --------------------
def init_params(key, hidden_size, output_size):
    """Raw (torch-layout) parameters, deterministic init."""
    h, h2, h4 = hidden_size, hidden_size // 2, hidden_size // 4

    def lin(key, fan_in, fan_out):
        kw, kb = jax.random.split(key)
        scale = 1.0 / jnp.sqrt(fan_in)
        w = jax.random.uniform(kw, (fan_in, fan_out), jnp.float32, -scale, scale)
        b = jax.random.uniform(kb, (1, fan_out), jnp.float32, -scale, scale)
        return w, b

    def conv(key, cin, cout, k):
        kw, kb = jax.random.split(key)
        fan_in = cin * k * k
        scale = 1.0 / jnp.sqrt(fan_in)
        w = jax.random.uniform(kw, (cout, cin, k, k), jnp.float32, -scale, scale)
        b = jax.random.uniform(kb, (cout,), jnp.float32, -scale, scale)
        return w, b

    keys = jax.random.split(key, 11)
    return {
        "conv1": conv(keys[0], IN_CHANNELS, CNN_CHANNEL, KSZ),
        "conv2": conv(keys[1], CNN_CHANNEL, CNN_CHANNEL, KSZ),
        "conv3": conv(keys[2], CNN_CHANNEL, CNN_CHANNEL, KSZ),
        "input_nn": lin(keys[3], OUTPUT_OF_CNN, h),
        "hidden_nn_1": lin(keys[4], h, h2),
        "hidden_nn_2": lin(keys[5], h2, h4),
        "hidden_nn_3": lin(keys[6], h4, h4),
        "hidden_nn_4": lin(keys[7], h4, h4),
        "first_actor_nn": lin(keys[8], h4, output_size),
        "second_actor_nn": lin(keys[9], h4, output_size),
        "critic_nn": lin(keys[10], h4, 1),
    }


def prepare_params(params, output_size):
    """One-time host-side conversion of raw params into kernel layout."""

    # ---- conv1: fold the kernel-width shifts into the weight ---------------
    def prep_conv1(w, b):
        cout, cin, k, _ = w.shape                    # (91, 7, 3, 3)
        wmat = jnp.zeros((KSZ * W0 * CIN16, W1 * C_PAD), jnp.float32)
        # lhs lane = kh*(W0*CIN16) + wi*CIN16 + ci ; out lane = wo*C_PAD + co
        for kh in range(k):
            for wo in range(W1):
                for kw in range(k):
                    wi = wo + kw
                    r0 = kh * W0 * CIN16 + wi * CIN16
                    c0 = wo * C_PAD
                    wmat = wmat.at[r0:r0 + cin, c0:c0 + cout].set(w[:, :, kh, kw].T)
        bpad = jnp.zeros((C_PAD,), jnp.float32).at[:cout].set(b)
        bt = jnp.tile(bpad, W1).reshape(1, W1 * C_PAD)
        return wmat, bt

    # ---- conv2/3: im2col weight, channels lane-padded to 128 ---------------
    def prep_conv(w, b, wo_n):
        cout, cin, k, _ = w.shape
        wp = jnp.zeros((C_PAD, C_PAD, k, k), jnp.float32).at[:cout, :cin].set(w)
        # row index = kh*(k*C_PAD) + kw*C_PAD + ci   (matches kernel lhs)
        wmat = jnp.transpose(wp, (2, 3, 1, 0)).reshape(k * k * C_PAD, C_PAD)
        bpad = jnp.zeros((C_PAD,), jnp.float32).at[:cout].set(b)
        bt = jnp.tile(bpad, wo_n).reshape(1, wo_n * C_PAD)
        return wmat, bt

    c1w, c1b = prep_conv1(*params["conv1"])
    c2w, c2b = prep_conv(*params["conv2"], W2)
    c3w, c3b = prep_conv(*params["conv3"], W3)

    # ---- fold the activation-free FC chain + heads into one affine map -----
    hi = jax.lax.Precision.HIGHEST
    mm = lambda a, b: jnp.dot(a, b, precision=hi)
    w_chain, b_chain = params["input_nn"]                       # (364,h),(1,h)
    for name in ("hidden_nn_1", "hidden_nn_2", "hidden_nn_3", "hidden_nn_4"):
        wl, bl = params[name]
        w_chain = mm(w_chain, wl)
        b_chain = mm(b_chain, wl) + bl
    wfa, bfa = params["first_actor_nn"]
    wsa, bsa = params["second_actor_nn"]
    wcr, bcr = params["critic_nn"]
    wh = jnp.concatenate([wfa, wsa, wcr], axis=1)               # (h4, 2*out+1)
    bh = jnp.concatenate([bfa, bsa, bcr], axis=1)
    w_full = mm(w_chain, wh)                                    # (364, n_head)
    b_full = mm(b_chain, wh) + bh                               # (1, n_head)

    n_head = 2 * output_size + 1
    head_pad = ((n_head + 127) // 128) * 128
    w_full = jnp.pad(w_full, ((0, 0), (0, head_pad - n_head)))
    bfc = jnp.pad(b_full, ((0, 0), (0, head_pad - n_head)))

    # torch NCHW flatten order (f = c*H3*W3 + h*W3 + w) folded into a
    # (H3, W3*C_PAD, head_pad) weight; padded-channel rows stay zero.
    wfc = jnp.zeros((H3, W3 * C_PAD, head_pad), jnp.float32)
    for h in range(H3):
        for w in range(W3):
            rows = w_full[(h * W3 + w)::(H3 * W3), :]           # c = 0..90
            wfc = wfc.at[h, w * C_PAD:w * C_PAD + CNN_CHANNEL, :].set(rows)

    return {"c1w": c1w, "c1b": c1b, "c2w": c2w, "c2b": c2b,
            "c3w": c3w, "c3b": c3b, "wfc": wfc, "bfc": bfc}


# -------------------- forward --------------------
def _round_up(n, m):
    return ((n + m - 1) // m) * m


def _const_map(ndim):
    return lambda t: (0,) * ndim


def sfcnet_forward(kparams, x, *, output_size, block_batch=64):
    """x: (B, 7, 8, 8) NCHW float32 -> ([first_action, second_action], value)."""
    B = x.shape[0]
    head_pad = kparams["bfc"].shape[1]

    # Per-step batch tile: multiple of 8 (full sublanes, unmasked output vst),
    # capped by block_batch (default 64 keeps VMEM safe on v5e/v6e/v7x).
    tb = min(_round_up(block_batch, 8), _round_up(B, 8))
    bp = _round_up(B, tb)
    n_tiles = bp // tb

    # NCHW -> per-tile (h, b, w*c) rows with channels padded 7 -> 16 so one
    # image row is exactly one 128-lane vreg; row within a tile = h*tb + b.
    xp = jnp.transpose(x, (0, 2, 3, 1)).astype(jnp.float32)     # (B, 8, 8, 7)
    xp = jnp.pad(xp, ((0, bp - B), (0, 0), (0, 0), (0, CIN16 - IN_CHANNELS)))
    xp = xp.reshape(n_tiles, tb, H0, W0 * CIN16)
    xp = jnp.transpose(xp, (0, 2, 1, 3)).reshape(n_tiles * H0 * tb, W0 * CIN16)

    weight_names = ("c1w", "c1b", "c2w", "c2b", "c3w", "c3b", "wfc", "bfc")
    weights = [kparams[n] for n in weight_names]

    in_specs = [pl.BlockSpec((H0 * tb, W0 * CIN16), lambda t: (t, 0))]
    in_specs += [pl.BlockSpec(w.shape, _const_map(w.ndim)) for w in weights]

    heads = pl.pallas_call(
        _sfcnet_kernel,
        out_shape=jax.ShapeDtypeStruct((bp, head_pad), jnp.float32),
        grid=(n_tiles,),
        in_specs=in_specs,
        out_specs=pl.BlockSpec((tb, head_pad), lambda t: (t, 0)),
        compiler_params=pltpu.CompilerParams(
            # NOTE(v7x): pltpu.CORE_PARALLEL here shards batch tiles across the
            # two TensorCores; "parallel" is the portable choice (v5e/v6e/v7x).
            dimension_semantics=("parallel",)),
    )(xp, *weights)

    heads = heads[:B]
    first_action = heads[:, :output_size]
    second_action = heads[:, output_size:2 * output_size]
    value = heads[:, 2 * output_size:2 * output_size + 1]
    return [first_action, second_action], value


# -------------------- plain-JAX reference (for the self-check) --------------------
def reference_forward(params, x):
    def conv_relu(x, w, b):
        y = jax.lax.conv_general_dilated(
            x, w, window_strides=(1, 1), padding="VALID",
            dimension_numbers=("NCHW", "OIHW", "NCHW"))
        return jax.nn.relu(y + b.reshape(1, -1, 1, 1))

    out = conv_relu(x, *params["conv1"])
    out = conv_relu(out, *params["conv2"])
    out = conv_relu(out, *params["conv3"])
    out = out.reshape(out.shape[0], -1)

    def lin(z, wb):
        return z @ wb[0] + wb[1]

    out = lin(out, params["input_nn"])
    out = lin(out, params["hidden_nn_1"])
    out = lin(out, params["hidden_nn_2"])
    out = lin(out, params["hidden_nn_3"])
    out = lin(out, params["hidden_nn_4"])
    first = lin(out, params["first_actor_nn"])
    second = lin(out, params["second_actor_nn"])
    value = lin(out, params["critic_nn"])
    return [first, second], value


if __name__ == "__main__":
    key = jax.random.PRNGKey(0)
    k_param, k_input = jax.random.split(key)

    hidden_size = 32
    output_size = 8
    batch = 2

    raw_params = init_params(k_param, hidden_size, output_size)
    kparams = prepare_params(raw_params, output_size)
    x = jax.random.normal(k_input, (batch, IN_CHANNELS, SPATIAL, SPATIAL),
                          jnp.float32)

    fwd = jax.jit(functools.partial(sfcnet_forward, output_size=output_size))
    actions, value = fwd(kparams, x)
    jax.block_until_ready(actions)
    jax.block_until_ready(value)

    assert actions[0].shape == (batch, output_size)
    assert actions[1].shape == (batch, output_size)
    assert value.shape == (batch, 1)

    # numerical self-check against a plain-JAX reference
    ref_actions, ref_value = reference_forward(raw_params, x)
    for got, ref in [(actions[0], ref_actions[0]),
                     (actions[1], ref_actions[1]),
                     (value, ref_value)]:
        err = float(jnp.max(jnp.abs(got - ref)))
        assert err < 5e-3, f"mismatch vs reference: max abs err {err}"

    print("KERNEL_OK")
</pallas_src>

<mosaic_0001>
module attributes {stable_mosaic.version = 11 : i64} {
  func.func @_sfcnet_kernel(%arg0: i32, %arg1: memref<64x128xf32, #tpu.memory_space<vmem>>, %arg2: memref<384x768xf32, #tpu.memory_space<vmem>>, %arg3: memref<1x768xf32, #tpu.memory_space<vmem>>, %arg4: memref<1152x128xf32, #tpu.memory_space<vmem>>, %arg5: memref<1x512xf32, #tpu.memory_space<vmem>>, %arg6: memref<1152x128xf32, #tpu.memory_space<vmem>>, %arg7: memref<1x256xf32, #tpu.memory_space<vmem>>, %arg8: memref<2x256x128xf32, #tpu.memory_space<vmem>>, %arg9: memref<1x128xf32, #tpu.memory_space<vmem>>, %arg10: memref<8x128xf32, #tpu.memory_space<vmem>>) attributes {dimension_semantics = [#tpu.dimension_semantics<parallel>], iteration_bounds = array<i64: 1>, scalar_prefetch = 0 : i64, scratch_operands = 0 : i64, tpu.core_type = #tpu.core_type<tc>, window_params = [{transform_indices = @transform_0, window_bounds = array<i64: 64, 128>}, {pipeline_mode = #tpu.pipeline_mode<synchronous>, transform_indices = @transform_1, window_bounds = array<i64: 384, 768>}, {pipeline_mode = #tpu.pipeline_mode<synchronous>, transform_indices = @transform_2, window_bounds = array<i64: 1, 768>}, {pipeline_mode = #tpu.pipeline_mode<synchronous>, transform_indices = @transform_3, window_bounds = array<i64: 1152, 128>}, {pipeline_mode = #tpu.pipeline_mode<synchronous>, transform_indices = @transform_4, window_bounds = array<i64: 1, 512>}, {pipeline_mode = #tpu.pipeline_mode<synchronous>, transform_indices = @transform_5, window_bounds = array<i64: 1152, 128>}, {pipeline_mode = #tpu.pipeline_mode<synchronous>, transform_indices = @transform_6, window_bounds = array<i64: 1, 256>}, {pipeline_mode = #tpu.pipeline_mode<synchronous>, transform_indices = @transform_7, window_bounds = array<i64: 2, 256, 128>}, {pipeline_mode = #tpu.pipeline_mode<synchronous>, transform_indices = @transform_8, window_bounds = array<i64: 1, 128>}, {transform_indices = @transform_9, window_bounds = array<i64: 8, 128>}]} {
    %c0 = arith.constant 0 : index
    %c0_0 = arith.constant 0 : index
    %0 = vector.load %arg1[%c0, %c0_0] : memref<64x128xf32, #tpu.memory_space<vmem>>, vector<64x128xf32>
    %1 = vector.extract_strided_slice %0 {offsets = [0, 0], sizes = [48, 128], strides = [1, 1]} : vector<64x128xf32> to vector<48x128xf32>
    %2 = vector.extract_strided_slice %0 {offsets = [8, 0], sizes = [48, 128], strides = [1, 1]} : vector<64x128xf32> to vector<48x128xf32>
    %3 = vector.extract_strided_slice %0 {offsets = [16, 0], sizes = [48, 128], strides = [1, 1]} : vector<64x128xf32> to vector<48x128xf32>
    %4 = tpu.concatenate %1, %2, %3 in 1 : vector<48x128xf32>, vector<48x128xf32>, vector<48x128xf32> -> vector<48x384xf32>
    %c0_1 = arith.constant 0 : index
    %c0_2 = arith.constant 0 : index
    %5 = vector.load %arg2[%c0_1, %c0_2] : memref<384x768xf32, #tpu.memory_space<vmem>>, vector<384x768xf32>
    %cst = arith.constant dense<0.000000e+00> : vector<48x768xf32>
    %6 = tpu.matmul %4, %5, %cst {dimension_numbers = #tpu.dot_dimension_numbers<[1], [0], [0], [1], [0, 0, 1, 1], [], []>} : vector<48x384xf32>, vector<384x768xf32>, vector<48x768xf32> -> vector<48x768xf32>
    %c0_3 = arith.constant 0 : index
    %c0_4 = arith.constant 0 : index
    %7 = vector.load %arg3[%c0_3, %c0_4] : memref<1x768xf32, #tpu.memory_space<vmem>>, vector<1x768xf32>
    %8 = vector.broadcast %7 : vector<1x768xf32> to vector<48x768xf32>
    %9 = arith.addf %6, %8 : vector<48x768xf32>
    %cst_5 = arith.constant 0.000000e+00 : f32
    %10 = vector.broadcast %cst_5 : f32 to vector<48x768xf32>
    %11 = arith.maximumf %9, %10 : vector<48x768xf32>
    %c0_6 = arith.constant 0 : index
    %c0_7 = arith.constant 0 : index
    %12 = vector.load %arg4[%c0_6, %c0_7] : memref<1152x128xf32, #tpu.memory_space<vmem>>, vector<1152x128xf32>
    %13 = vector.extract_strided_slice %11 {offsets = [0, 0], sizes = [32, 384], strides = [1, 1]} : vector<48x768xf32> to vector<32x384xf32>
    %14 = vector.extract_strided_slice %11 {offsets = [8, 0], sizes = [32, 384], strides = [1, 1]} : vector<48x768xf32> to vector<32x384xf32>
    %15 = vector.extract_strided_slice %11 {offsets = [16, 0], sizes = [32, 384], strides = [1, 1]} : vector<48x768xf32> to vector<32x384xf32>
    %16 = tpu.concatenate %13, %14, %15 in 1 : vector<32x384xf32>, vector<32x384xf32>, vector<32x384xf32> -> vector<32x1152xf32>
    %cst_8 = arith.constant dense<0.000000e+00> : vector<32x128xf32>
    %17 = tpu.matmul %16, %12, %cst_8 {dimension_numbers = #tpu.dot_dimension_numbers<[1], [0], [0], [1], [0, 0, 1, 1], [], []>} : vector<32x1152xf32>, vector<1152x128xf32>, vector<32x128xf32> -> vector<32x128xf32>
    %18 = vector.extract_strided_slice %11 {offsets = [0, 128], sizes = [32, 384], strides = [1, 1]} : vector<48x768xf32> to vector<32x384xf32>
    %19 = vector.extract_strided_slice %11 {offsets = [8, 128], sizes = [32, 384], strides = [1, 1]} : vector<48x768xf32> to vector<32x384xf32>
    %20 = vector.extract_strided_slice %11 {offsets = [16, 128], sizes = [32, 384], strides = [1, 1]} : vector<48x768xf32> to vector<32x384xf32>
    %21 = tpu.concatenate %18, %19, %20 in 1 : vector<32x384xf32>, vector<32x384xf32>, vector<32x384xf32> -> vector<32x1152xf32>
    %cst_9 = arith.constant dense<0.000000e+00> : vector<32x128xf32>
    %22 = tpu.matmul %21, %12, %cst_9 {dimension_numbers = #tpu.dot_dimension_numbers<[1], [0], [0], [1], [0, 0, 1, 1], [], []>} : vector<32x1152xf32>, vector<1152x128xf32>, vector<32x128xf32> -> vector<32x128xf32>
    %23 = vector.extract_strided_slice %11 {offsets = [0, 256], sizes = [32, 384], strides = [1, 1]} : vector<48x768xf32> to vector<32x384xf32>
    %24 = vector.extract_strided_slice %11 {offsets = [8, 256], sizes = [32, 384], strides = [1, 1]} : vector<48x768xf32> to vector<32x384xf32>
    %25 = vector.extract_strided_slice %11 {offsets = [16, 256], sizes = [32, 384], strides = [1, 1]} : vector<48x768xf32> to vector<32x384xf32>
    %26 = tpu.concatenate %23, %24, %25 in 1 : vector<32x384xf32>, vector<32x384xf32>, vector<32x384xf32> -> vector<32x1152xf32>
    %cst_10 = arith.constant dense<0.000000e+00> : vector<32x128xf32>
    %27 = tpu.matmul %26, %12, %cst_10 {dimension_numbers = #tpu.dot_dimension_numbers<[1], [0], [0], [1], [0, 0, 1, 1], [], []>} : vector<32x1152xf32>, vector<1152x128xf32>, vector<32x128xf32> -> vector<32x128xf32>
    %28 = vector.extract_strided_slice %11 {offsets = [0, 384], sizes = [32, 384], strides = [1, 1]} : vector<48x768xf32> to vector<32x384xf32>
    %29 = vector.extract_strided_slice %11 {offsets = [8, 384], sizes = [32, 384], strides = [1, 1]} : vector<48x768xf32> to vector<32x384xf32>
    %30 = vector.extract_strided_slice %11 {offsets = [16, 384], sizes = [32, 384], strides = [1, 1]} : vector<48x768xf32> to vector<32x384xf32>
    %31 = tpu.concatenate %28, %29, %30 in 1 : vector<32x384xf32>, vector<32x384xf32>, vector<32x384xf32> -> vector<32x1152xf32>
    %cst_11 = arith.constant dense<0.000000e+00> : vector<32x128xf32>
    %32 = tpu.matmul %31, %12, %cst_11 {dimension_numbers = #tpu.dot_dimension_numbers<[1], [0], [0], [1], [0, 0, 1, 1], [], []>} : vector<32x1152xf32>, vector<1152x128xf32>, vector<32x128xf32> -> vector<32x128xf32>
    %33 = tpu.concatenate %17, %22, %27, %32 in 1 : vector<32x128xf32>, vector<32x128xf32>, vector<32x128xf32>, vector<32x128xf32> -> vector<32x512xf32>
    %c0_12 = arith.constant 0 : index
    %c0_13 = arith.constant 0 : index
    %34 = vector.load %arg5[%c0_12, %c0_13] : memref<1x512xf32, #tpu.memory_space<vmem>>, vector<1x512xf32>
    %35 = vector.broadcast %34 : vector<1x512xf32> to vector<32x512xf32>
    %36 = arith.addf %33, %35 : vector<32x512xf32>
    %cst_14 = arith.constant 0.000000e+00 : f32
    %37 = vector.broadcast %cst_14 : f32 to vector<32x512xf32>
    %38 = arith.maximumf %36, %37 : vector<32x512xf32>
    %c0_15 = arith.constant 0 : index
    %c0_16 = arith.constant 0 : index
    %39 = vector.load %arg6[%c0_15, %c0_16] : memref<1152x128xf32, #tpu.memory_space<vmem>>, vector<1152x128xf32>
    %40 = vector.extract_strided_slice %38 {offsets = [0, 0], sizes = [16, 384], strides = [1, 1]} : vector<32x512xf32> to vector<16x384xf32>
    %41 = vector.extract_strided_slice %38 {offsets = [8, 0], sizes = [16, 384], strides = [1, 1]} : vector<32x512xf32> to vector<16x384xf32>
    %42 = vector.extract_strided_slice %38 {offsets = [16, 0], sizes = [16, 384], strides = [1, 1]} : vector<32x512xf32> to vector<16x384xf32>
    %43 = tpu.concatenate %40, %41, %42 in 1 : vector<16x384xf32>, vector<16x384xf32>, vector<16x384xf32> -> vector<16x1152xf32>
    %cst_17 = arith.constant dense<0.000000e+00> : vector<16x128xf32>
    %44 = tpu.matmul %43, %39, %cst_17 {dimension_numbers = #tpu.dot_dimension_numbers<[1], [0], [0], [1], [0, 0, 1, 1], [], []>} : vector<16x1152xf32>, vector<1152x128xf32>, vector<16x128xf32> -> vector<16x128xf32>
    %45 = vector.extract_strided_slice %38 {offsets = [0, 128], sizes = [16, 384], strides = [1, 1]} : vector<32x512xf32> to vector<16x384xf32>
    %46 = vector.extract_strided_slice %38 {offsets = [8, 128], sizes = [16, 384], strides = [1, 1]} : vector<32x512xf32> to vector<16x384xf32>
    %47 = vector.extract_strided_slice %38 {offsets = [16, 128], sizes = [16, 384], strides = [1, 1]} : vector<32x512xf32> to vector<16x384xf32>
    %48 = tpu.concatenate %45, %46, %47 in 1 : vector<16x384xf32>, vector<16x384xf32>, vector<16x384xf32> -> vector<16x1152xf32>
    %cst_18 = arith.constant dense<0.000000e+00> : vector<16x128xf32>
    %49 = tpu.matmul %48, %39, %cst_18 {dimension_numbers = #tpu.dot_dimension_numbers<[1], [0], [0], [1], [0, 0, 1, 1], [], []>} : vector<16x1152xf32>, vector<1152x128xf32>, vector<16x128xf32> -> vector<16x128xf32>
    %50 = tpu.concatenate %44, %49 in 1 : vector<16x128xf32>, vector<16x128xf32> -> vector<16x256xf32>
    %c0_19 = arith.constant 0 : index
    %c0_20 = arith.constant 0 : index
    %51 = vector.load %arg7[%c0_19, %c0_20] : memref<1x256xf32, #tpu.memory_space<vmem>>, vector<1x256xf32>
    %52 = vector.broadcast %51 : vector<1x256xf32> to vector<16x256xf32>
    %53 = arith.addf %50, %52 : vector<16x256xf32>
    %cst_21 = arith.constant 0.000000e+00 : f32
    %54 = vector.broadcast %cst_21 : f32 to vector<16x256xf32>
    %55 = arith.maximumf %53, %54 : vector<16x256xf32>
    %c0_22 = arith.constant 0 : index
    %c0_23 = arith.constant 0 : index
    %56 = vector.load %arg9[%c0_22, %c0_23] : memref<1x128xf32, #tpu.memory_space<vmem>>, vector<1x128xf32>
    %57 = vector.extract_strided_slice %55 {offsets = [0, 0], sizes = [8, 256], strides = [1, 1]} : vector<16x256xf32> to vector<8x256xf32>
    %c0_24 = arith.constant 0 : index
    %c0_25 = arith.constant 0 : index
    %c0_26 = arith.constant 0 : index
    %58 = vector.load %arg8[%c0_24, %c0_25, %c0_26] : memref<2x256x128xf32, #tpu.memory_space<vmem>>, vector<1x256x128xf32>
    %59 = vector.shape_cast %58 : vector<1x256x128xf32> to vector<256x128xf32>
    %cst_27 = arith.constant dense<0.000000e+00> : vector<8x128xf32>
    %60 = tpu.matmul %57, %59, %cst_27 {dimension_numbers = #tpu.dot_dimension_numbers<[1], [0], [0], [1], [0, 0, 1, 1], [], []>} : vector<8x256xf32>, vector<256x128xf32>, vector<8x128xf32> -> vector<8x128xf32>
    %61 = vector.broadcast %56 : vector<1x128xf32> to vector<8x128xf32>
    %62 = arith.addf %61, %60 : vector<8x128xf32>
    %63 = vector.extract_strided_slice %55 {offsets = [8, 0], sizes = [8, 256], strides = [1, 1]} : vector<16x256xf32> to vector<8x256xf32>
    %c1 = arith.constant 1 : index
    %c0_28 = arith.constant 0 : index
    %c0_29 = arith.constant 0 : index
    %64 = vector.load %arg8[%c1, %c0_28, %c0_29] : memref<2x256x128xf32, #tpu.memory_space<vmem>>, vector<1x256x128xf32>
    %65 = vector.shape_cast %64 : vector<1x256x128xf32> to vector<256x128xf32>
    %cst_30 = arith.constant dense<0.000000e+00> : vector<8x128xf32>
    %66 = tpu.matmul %63, %65, %cst_30 {dimension_numbers = #tpu.dot_dimension_numbers<[1], [0], [0], [1], [0, 0, 1, 1], [], []>} : vector<8x256xf32>, vector<256x128xf32>, vector<8x128xf32> -> vector<8x128xf32>
    %67 = arith.addf %62, %66 : vector<8x128xf32>
    %c0_31 = arith.constant 0 : index
    %c0_32 = arith.constant 0 : index
    %68 = vector.load %arg10[%c0_31, %c0_32] : memref<8x128xf32, #tpu.memory_space<vmem>>, vector<8x128xf32>
    tpu.vector_store %arg10[%c0_31, %c0_32], %67 {strides = array<i32>} : memref<8x128xf32, #tpu.memory_space<vmem>>, vector<8x128xf32>,
    return
  }
  func.func @transform_0(%arg0: i32) -> (i32, i32) {
    %c0_i32 = arith.constant 0 : i32
    %c0_i32_0 = arith.constant 0 : i32
    return %arg0, %c0_i32 : i32, i32
  }
  func.func @transform_1(%arg0: i32) -> (i32, i32) {
    %c0_i32 = arith.constant 0 : i32
    %c0_i32_0 = arith.constant 0 : i32
    %c0_i32_1 = arith.constant 0 : i32
    return %c0_i32, %c0_i32_0 : i32, i32
  }
  func.func @transform_2(%arg0: i32) -> (i32, i32) {
    %c0_i32 = arith.constant 0 : i32
    %c0_i32_0 = arith.constant 0 : i32
    %c0_i32_1 = arith.constant 0 : i32
    return %c0_i32, %c0_i32_0 : i32, i32
  }
  func.func @transform_3(%arg0: i32) -> (i32, i32) {
    %c0_i32 = arith.constant 0 : i32
    %c0_i32_0 = arith.constant 0 : i32
    %c0_i32_1 = arith.constant 0 : i32
    return %c0_i32, %c0_i32_0 : i32, i32
  }
  func.func @transform_4(%arg0: i32) -> (i32, i32) {
    %c0_i32 = arith.constant 0 : i32
    %c0_i32_0 = arith.constant 0 : i32
    %c0_i32_1 = arith.constant 0 : i32
    return %c0_i32, %c0_i32_0 : i32, i32
  }
  func.func @transform_5(%arg0: i32) -> (i32, i32) {
    %c0_i32 = arith.constant 0 : i32
    %c0_i32_0 = arith.constant 0 : i32
    %c0_i32_1 = arith.constant 0 : i32
    return %c0_i32, %c0_i32_0 : i32, i32
  }
  func.func @transform_6(%arg0: i32) -> (i32, i32) {
    %c0_i32 = arith.constant 0 : i32
    %c0_i32_0 = arith.constant 0 : i32
    %c0_i32_1 = arith.constant 0 : i32
    return %c0_i32, %c0_i32_0 : i32, i32
  }
  func.func @transform_7(%arg0: i32) -> (i32, i32, i32) {
    %c0_i32 = arith.constant 0 : i32
    %c0_i32_0 = arith.constant 0 : i32
    %c0_i32_1 = arith.constant 0 : i32
    %c0_i32_2 = arith.constant 0 : i32
    return %c0_i32, %c0_i32_0, %c0_i32_1 : i32, i32, i32
  }
  func.func @transform_8(%arg0: i32) -> (i32, i32) {
    %c0_i32 = arith.constant 0 : i32
    %c0_i32_0 = arith.constant 0 : i32
    %c0_i32_1 = arith.constant 0 : i32
    return %c0_i32, %c0_i32_0 : i32, i32
  }
  func.func @transform_9(%arg0: i32) -> (i32, i32) {
    %c0_i32 = arith.constant 0 : i32
    %c0_i32_0 = arith.constant 0 : i32
    return %arg0, %c0_i32 : i32, i32
  }
}

</mosaic_0001>

<bundles_post_ra>
// kernel: sfcnet_forward.1
= control target key start
LH: loop header
LB: loop body
LE: loop exit
PB: predicated region body
PF: predicated region fallthrough
CT: control target
= control target key end

     0   :  { %14 = vsyncpa [#allocation3], 0  ;;  %s9445_s0 = inlined_call_operand.vmem [shape: f32[64,128], index: 0, kind: input, shape index: {}]   ;;  %s9446_s1 = inlined_call_operand.hbm [shape: f32[384,768], index: 1, kind: input, shape index: {}]   ;;  %s9447_s2 = inlined_call_operand.hbm [shape: f32[1,768], index: 2, kind: input, shape index: {}]   ;;  %s9448_s3 = inlined_call_operand.vmem [shape: f32[1152,128], index: 3, kind: input, shape index: {}]   ;;  %s9449_s4 = inlined_call_operand.hbm [shape: f32[1,512], index: 4, kind: input, shape index: {}]   ;;  %s9450_s5 = inlined_call_operand.hbm [shape: f32[1152,128], index: 5, kind: input, shape index: {}]   ;;  %s9451_s6 = inlined_call_operand.hbm [shape: f32[1,256], index: 6, kind: input, shape index: {}]   ;;  %s9452_s7 = inlined_call_operand.hbm [shape: f32[2,256,128], index: 7, kind: input, shape index: {}]   ;;  %s9453_s8 = inlined_call_operand.hbm [shape: f32[1,128], index: 8, kind: input, shape index: {}]   ;;  %s9454_s9 = inlined_call_operand.vmem [shape: f32[8,128], index: 9, kind: output, shape index: {}]  }
   0x1   :  { %15 = vsyncpa [#allocation5], 0 }
   0x2   :  { %16 = vsyncpa [#allocation8], 0 }
   0x3   :  { %17 = vsyncpa [#allocation11], 0  ;;  %s5848_s30 = smov [#allocation4]   ;;  %s5849_s11 = smov [#allocation7]  }
   0x4   :  { %s38_s10 = sshll.u32 %s5848_s30, 4  ;;  %s59_s12 = sshll.u32 %s5849_s11, 4  ;;  %s39_s10 = int_to_ptr.vmem [resolvable:$true] %s38_s10  ;;  %s60_s12 = int_to_ptr.vmem [resolvable:$true] %s59_s12 }
   0x5   :  { %s5708_s13 = scalar_lea.vmem %s39_s10, 96  ;;  %p5713_p1 = scmp.lt.s32.totalorder %s39_s10, %s39_s10 }
   0x6   :  { %p5709_p0 = scmp.ne.s32.totalorder %s39_s10, %s5708_s13  ;;  %p5714_p2 = scmp.lt.s32.totalorder %s5708_s13, %s5708_s13 }
   0x8   :  { %p5715_p3 = por %p5714_p2, %p5713_p1 }
   0xa   :  { %p5716_p4 = pnand %p5715_p3, %p5709_p0 }
   0xc   :  { %5719 = shalt.err (!%p5716_p4)
}
   0xd   :  { %41 = dma.hbm_to_vmem [thread:$0]  %s9447_s2, 96, %s39_s10, [#allocation5]  }
   0xe   :  { %s5728_s16 = scalar_lea.vmem %s60_s12, 18432  ;;  %p5733_p6 = scmp.lt.s32.totalorder %s60_s12, %s60_s12 }
   0xf   :  { %p5729_p5 = scmp.ne.s32.totalorder %s60_s12, %s5728_s16  ;;  %p5734_p7 = scmp.lt.s32.totalorder %s5728_s16, %s5728_s16 }
  0x11   :  { %p5735_p8 = por %p5734_p7, %p5733_p6 }
  0x13   :  { %p5736_p9 = pnand %p5735_p8, %p5729_p5 }
  0x15   :  { %5739 = shalt.err (!%p5736_p9)
}
  0x16   :  { %s5850_s17 = smov 128   ;;  %s5851_s18 = smov 8  }
  0x17   :  { %65 = dma.hbm_to_vmem [thread:$0]  %s9450_s5, 18432, %s60_s12, [#allocation8], %s5850_s17, %s5850_s17, %s5851_s18  }
  0x18   :  { %s5852_s21 = smov [#allocation10]   ;;  %s5853_s23 = smov [#allocation2]  }
  0x19   :  { %s81_s22 = sshll.u32 %s5852_s21, 4  ;;  %s25_s24 = sshll.u32 %s5853_s23, 4  ;;  %s82_s22 = int_to_ptr.vmem [resolvable:$true] %s81_s22  ;;  %s26_s24 = int_to_ptr.vmem [resolvable:$true] %s25_s24 }
  0x1a   :  { %s5748_s2 = scalar_lea.vmem %s82_s22, 8192  ;;  %p5753_p11 = scmp.lt.s32.totalorder %s82_s22, %s82_s22 }
  0x1b   :  { %p5749_p10 = scmp.ne.s32.totalorder %s82_s22, %s5748_s2  ;;  %p5754_p12 = scmp.lt.s32.totalorder %s5748_s2, %s5748_s2 }
  0x1d   :  { %p5755_p13 = por %p5754_p12, %p5753_p11 }
  0x1f   :  { %p5756_p0 = pnand %p5755_p13, %p5749_p10 }
  0x21   :  { %5759 = shalt.err (!%p5756_p0)
}
  0x22   :  { %87 = dma.hbm_to_vmem [thread:$0]  %s9452_s7, 8192, %s82_s22, [#allocation11], %s5850_s17, %s5850_s17, %s5851_s18  }
  0x23   :  { %s5768_s27 = scalar_lea.vmem %s26_s24, 36864  ;;  %p5773_p2 = scmp.lt.s32.totalorder %s26_s24, %s26_s24 }
  0x24   :  { %p5769_p1 = scmp.ne.s32.totalorder %s26_s24, %s5768_s27  ;;  %p5774_p3 = scmp.lt.s32.totalorder %s5768_s27, %s5768_s27 }
  0x26   :  { %p5775_p4 = por %p5774_p3, %p5773_p2 }
  0x28   :  { %p5776_p5 = pnand %p5775_p4, %p5769_p1 }
  0x2a   :  { %5779 = shalt.err (!%p5776_p5)
}
  0x2b   :  { %s5854_s5 = smov 768   ;;  %s5855_s28 = smov 48  }
  0x2c   :  { %31 = dma.hbm_to_vmem [thread:$0]  %s9446_s1, 36864, %s26_s24, [#allocation3], %s5854_s5, %s5854_s5, %s5855_s28  }
  0x2d   :  { %s5856_s10 = smov [#allocation6]   ;;  %s5857_s12 = smov [#allocation9]  }
  0x2e   :  { %s50_s11 = sshll.u32 %s5856_s10, 4  ;;  %s72_s13 = sshll.u32 %s5857_s12, 4  ;;  %s51_s11 = int_to_ptr.vmem [resolvable:$true] %s50_s11  ;;  %s73_s13 = int_to_ptr.vmem [resolvable:$true] %s72_s13 }
  0x2f   :  { %s5788_s7 = scalar_lea.vmem %s51_s11, 64  ;;  %p5793_p7 = scmp.lt.s32.totalorder %s51_s11, %s51_s11 }
  0x30   :  { %p5789_p6 = scmp.ne.s32.totalorder %s51_s11, %s5788_s7  ;;  %p5794_p8 = scmp.lt.s32.totalorder %s5788_s7, %s5788_s7 }
  0x32   :  { %p5795_p9 = por %p5794_p8, %p5793_p7 }
  0x34   :  { %p5796_p10 = pnand %p5795_p9, %p5789_p6 }
  0x36   :  { %5799 = shalt.err (!%p5796_p10)
}
  0x37   :  { %53 = dma.hbm_to_vmem [thread:$0]  %s9449_s4, 64, %s51_s11, [#allocation5]  }
  0x38   :  { %s5808_s16 = scalar_lea.vmem %s73_s13, 32  ;;  %p5813_p12 = scmp.lt.s32.totalorder %s73_s13, %s73_s13 }
  0x39   :  { %p5809_p11 = scmp.ne.s32.totalorder %s73_s13, %s5808_s16  ;;  %p5814_p13 = scmp.lt.s32.totalorder %s5808_s16, %s5808_s16 }
  0x3b   :  { %p5815_p0 = por %p5814_p13, %p5813_p12 }
  0x3d   :  { %p5816_p1 = pnand %p5815_p0, %p5809_p11 }
  0x3f   :  { %5819 = shalt.err (!%p5816_p1)
}
  0x40   :  { %75 = dma.hbm_to_vmem [thread:$0]  %s9451_s6, 32, %s73_s13, [#allocation8]  }
  0x41   :  { %s5858_s18 = smov [#allocation12]  }
  0x42   :  { %s94_s19 = sshll.u32 %s5858_s18, 4  ;;  %s95_s19 = int_to_ptr.vmem [resolvable:$true] %s94_s19 }
  0x43   :  { %s5828_s20 = scalar_lea.vmem %s95_s19, 16  ;;  %s5832_s21 = scalar_lea.vmem %s95_s19, 32 }
  0x44   :  { %p5829_p2 = scmp.ne.s32.totalorder %s95_s19, %s5828_s20  ;;  %p5833_p3 = scmp.lt.s32.totalorder %s95_s19, %s95_s19 }
  0x45   :  { %p5834_p4 = scmp.lt.s32.totalorder %s5832_s21, %s5828_s20 }
  0x47   :  { %p5835_p5 = por %p5834_p4, %p5833_p3 }
  0x49   :  { %p5836_p6 = pnand %p5835_p5, %p5829_p2 }
  0x4b   :  { %5839 = shalt.err (!%p5836_p6)
}
  0x4c   :  { %97 = dma.hbm_to_vmem [thread:$0]  %s9453_s8, 16, %s95_s19, [#allocation11]  }
  0x4d   :  { %5840 = dma.done.wait [#allocation3], 36864  }
  0x4e   :  { %5841 = vsyncadd [#allocation3], 4294930432 }
  0x4f   :  { %5842 = dma.done.wait [#allocation5], 160  }
  0x50   :  { %5843 = vsyncadd [#allocation5], 4294967136 }
  0x51   :  { %5844 = dma.done.wait [#allocation8], 18464  }
  0x52   :  { %5845 = vsyncadd [#allocation8], 4294948832 }
  0x53   :  { %5846 = dma.done.wait [#allocation11], 8208  }
  0x54   :  { %5847 = vsyncadd [#allocation11], 4294959088  ;;  %v5859_v0 = vmov 0.0   ;;  %v218_v1 = vld [vmem:[#allocation2 + $0x2d8] sm:$0xff]  ;;  %v217_v3 = vld [vmem:[#allocation2 + $0x2d0] sm:$0xff] }
  0x55   :  { %612 = vmatprep.mubr.f32.mxu1 %v5859_v0  ;;  %v410_v2 = vld [vmem:[#allocation2 + $0x8d8] sm:$0xff]  ;;  %447 = vmatprep.subr.mxu0 %v218_v1  ;;  %v409_v4 = vld [vmem:[#allocation2 + $0x8d0] sm:$0xff]  ;;  %v212_v5 = vld [vmem:[#allocation2 + $0x2a8] sm:$0xff] }
  0x56   :  { %548 = vmatprep.subr.mxu1 %v410_v2  ;;  %v404_v6 = vld [vmem:[#allocation2 + $0x8a8] sm:$0xff]  ;;  %448 = vmatpush1.msra.mxu0 %v217_v3  ;;  %v211_v7 = vld [vmem:[#allocation2 + $0x2a0] sm:$0xff]  ;;  %v206_v9 = vld [vmem:[#allocation2 + $0x278] sm:$0xff] }
  0x57   :  { %549 = vmatpush1.msra.mxu1 %v409_v4  ;;  %v403_v8 = vld [vmem:[#allocation2 + $0x8a0] sm:$0xff]  ;;  %449 = vmatprep.subr.mxu0 %v212_v5  ;;  %v398_v10 = vld [vmem:[#allocation2 + $0x878] sm:$0xff]  ;;  %v205_v11 = vld [vmem:[#allocation2 + $0x270] sm:$0xff] }
  0x58   :  { %550 = vmatprep.subr.mxu1 %v404_v6  ;;  %v397_v12 = vld [vmem:[#allocation2 + $0x870] sm:$0xff]  ;;  %450 = vmatpush1.msra.mxu0 %v211_v7  ;;  %v200_v13 = vld [vmem:[#allocation2 + $0x248] sm:$0xff]  ;;  %v199_v15 = vld [vmem:[#allocation2 + $0x240] sm:$0xff] }
  0x59   :  { %551 = vmatpush1.msra.mxu1 %v403_v8  ;;  %v392_v14 = vld [vmem:[#allocation2 + $0x848] sm:$0xff]  ;;  %451 = vmatprep.subr.mxu0 %v206_v9  ;;  %v391_v16 = vld [vmem:[#allocation2 + $0x840] sm:$0xff]  ;;  %v194_v17 = vld [vmem:[#allocation2 + $0x218] sm:$0xff] }
  0x5a   :  { %552 = vmatprep.subr.mxu1 %v398_v10  ;;  %452 = vmatpush1.msra.mxu0 %v205_v11  ;;  %v386_v18 = vld [vmem:[#allocation2 + $0x818] sm:$0xff]  ;;  %v193_v19 = vld [vmem:[#allocation2 + $0x210] sm:$0xff]  ;;  %v188_v21 = vld [vmem:[#allocation2 + $0x1e8] sm:$0xff] }
  0x5b   :  { %553 = vmatpush1.msra.mxu1 %v397_v12  ;;  %453 = vmatprep.subr.mxu0 %v200_v13  ;;  %v385_v20 = vld [vmem:[#allocation2 + $0x810] sm:$0xff]  ;;  %v380_v22 = vld [vmem:[#allocation2 + $0x7e8] sm:$0xff]  ;;  %v187_v23 = vld [vmem:[#allocation2 + $0x1e0] sm:$0xff] }
  0x5c   :  { %554 = vmatprep.subr.mxu1 %v392_v14  ;;  %454 = vmatpush1.msra.mxu0 %v199_v15  ;;  %v379_v24 = vld [vmem:[#allocation2 + $0x7e0] sm:$0xff]  ;;  %v182_v25 = vld [vmem:[#allocation2 + $0x1b8] sm:$0xff]  ;;  %v181_v27 = vld [vmem:[#allocation2 + $0x1b0] sm:$0xff] }
  0x5d   :  { %555 = vmatpush1.msra.mxu1 %v391_v16  ;;  %455 = vmatprep.subr.mxu0 %v194_v17  ;;  %v374_v26 = vld [vmem:[#allocation2 + $0x7b8] sm:$0xff]  ;;  %v373_v28 = vld [vmem:[#allocation2 + $0x7b0] sm:$0xff]  ;;  %v176_v29 = vld [vmem:[#allocation2 + $0x188] sm:$0xff] }
  0x5e   :  { %556 = vmatprep.subr.mxu1 %v386_v18  ;;  %456 = vmatpush1.msra.mxu0 %v193_v19  ;;  %v368_v30 = vld [vmem:[#allocation2 + $0x788] sm:$0xff]  ;;  %v175_v31 = vld [vmem:[#allocation2 + $0x180] sm:$0xff]  ;;  %v170_v33 = vld [vmem:[#allocation2 + $0x158] sm:$0xff] }
  0x5f   :  { %557 = vmatpush1.msra.mxu1 %v385_v20  ;;  %457 = vmatprep.subr.mxu0 %v188_v21  ;;  %v367_v32 = vld [vmem:[#allocation2 + $0x780] sm:$0xff]  ;;  %v362_v34 = vld [vmem:[#allocation2 + $0x758] sm:$0xff]  ;;  %v169_v35 = vld [vmem:[#allocation2 + $0x150] sm:$0xff] }
  0x60   :  { %558 = vmatprep.subr.mxu1 %v380_v22  ;;  %458 = vmatpush1.msra.mxu0 %v187_v23  ;;  %v361_v36 = vld [vmem:[#allocation2 + $0x750] sm:$0xff]  ;;  %v164_v37 = vld [vmem:[#allocation2 + $0x128] sm:$0xff]  ;;  %v163_v39 = vld [vmem:[#allocation2 + $0x120] sm:$0xff] }
  0x61   :  { %559 = vmatpush1.msra.mxu1 %v379_v24  ;;  %459 = vmatprep.subr.mxu0 %v182_v25  ;;  %v356_v38 = vld [vmem:[#allocation2 + $0x728] sm:$0xff]  ;;  %v355_v40 = vld [vmem:[#allocation2 + $0x720] sm:$0xff]  ;;  %v158_v41 = vld [vmem:[#allocation2 + $0xf8] sm:$0xff] }
  0x62   :  { %560 = vmatprep.subr.mxu1 %v374_v26  ;;  %460 = vmatpush1.msra.mxu0 %v181_v27  ;;  %v350_v42 = vld [vmem:[#allocation2 + $0x6f8] sm:$0xff]  ;;  %v157_v43 = vld [vmem:[#allocation2 + $0xf0] sm:$0xff]  ;;  %v152_v45 = vld [vmem:[#allocation2 + $0xc8] sm:$0xff] }
  0x63   :  { %561 = vmatpush1.msra.mxu1 %v373_v28  ;;  %461 = vmatprep.subr.mxu0 %v176_v29  ;;  %v349_v44 = vld [vmem:[#allocation2 + $0x6f0] sm:$0xff]  ;;  %v344_v46 = vld [vmem:[#allocation2 + $0x6c8] sm:$0xff]  ;;  %v151_v47 = vld [vmem:[#allocation2 + $0xc0] sm:$0xff] }
  0x64   :  { %562 = vmatprep.subr.mxu1 %v368_v30  ;;  %462 = vmatpush1.msra.mxu0 %v175_v31  ;;  %v343_v48 = vld [vmem:[#allocation2 + $0x6c0] sm:$0xff]  ;;  %v146_v49 = vld [vmem:[#allocation2 + $0x98] sm:$0xff]  ;;  %v145_v51 = vld [vmem:[#allocation2 + $0x90] sm:$0xff] }
  0x65   :  { %563 = vmatpush1.msra.mxu1 %v367_v32  ;;  %463 = vmatprep.subr.mxu0 %v170_v33  ;;  %v338_v50 = vld [vmem:[#allocation2 + $0x698] sm:$0xff]  ;;  %v337_v52 = vld [vmem:[#allocation2 + $0x690] sm:$0xff]  ;;  %v140_v53 = vld [vmem:[#allocation2 + $0x68] sm:$0xff] }
  0x66   :  { %564 = vmatprep.subr.mxu1 %v362_v34  ;;  %464 = vmatpush1.msra.mxu0 %v169_v35  ;;  %v332_v54 = vld [vmem:[#allocation2 + $0x668] sm:$0xff]  ;;  %v139_v55 = vld [vmem:[#allocation2 + $0x60] sm:$0xff]  ;;  %v134_v57 = vld [vmem:[#allocation2 + $0x38] sm:$0xff] }
  0x67   :  { %565 = vmatpush1.msra.mxu1 %v361_v36  ;;  %465 = vmatprep.subr.mxu0 %v164_v37  ;;  %v331_v56 = vld [vmem:[#allocation2 + $0x660] sm:$0xff]  ;;  %v326_v58 = vld [vmem:[#allocation2 + $0x638] sm:$0xff]  ;;  %v133_v59 = vld [vmem:[#allocation2 + $0x30] sm:$0xff] }
  0x68   :  { %566 = vmatprep.subr.mxu1 %v356_v38  ;;  %466 = vmatpush1.msra.mxu0 %v163_v39  ;;  %v325_v60 = vld [vmem:[#allocation2 + $0x630] sm:$0xff]  ;;  %v128_v61 = vld [vmem:[#allocation2 + $0x8] sm:$0xff]  ;;  %v127_v63 = vld [vmem:[#allocation2] sm:$0xff] }
  0x69   :  { %567 = vmatpush1.msra.mxu1 %v355_v40  ;;  %467 = vmatprep.subr.mxu0 %v158_v41  ;;  %v320_v62 = vld [vmem:[#allocation2 + $0x608] sm:$0xff]  ;;  %v319_v1 = vld [vmem:[#allocation2 + $0x600] sm:$0xff]  ;;  %v314_v2 = vld [vmem:[#allocation2 + $0x5d8] sm:$0xff] }
  0x6a   :  { %568 = vmatprep.subr.mxu1 %v350_v42  ;;  %468 = vmatpush1.msra.mxu0 %v157_v43  ;;  %v5935_v3 = vld [vmem:[%s9445_s0 + $0x10] sm:$0xff]  ;;  %v220_v4 = vld [vmem:[#allocation2 + $0x2e8] sm:$0xff]  ;;  %v219_v6 = vld [vmem:[#allocation2 + $0x2e0] sm:$0xff] }
  0x6b   :  { %569 = vmatpush1.msra.mxu1 %v349_v44  ;;  %469 = vmatprep.subr.mxu0 %v152_v45  ;;  %v313_v5 = vld [vmem:[#allocation2 + $0x5d0] sm:$0xff]  ;;  %v308_v7 = vld [vmem:[#allocation2 + $0x5a8] sm:$0xff]  ;;  %v214_v8 = vld [vmem:[#allocation2 + $0x2b8] sm:$0xff] }
  0x6c   :  { %570 = vmatprep.subr.mxu1 %v344_v46  ;;  %470 = vmatpush1.msra.mxu0 %v151_v47  ;;  %v307_v9 = vld [vmem:[#allocation2 + $0x5a0] sm:$0xff]  ;;  %v213_v10 = vld [vmem:[#allocation2 + $0x2b0] sm:$0xff]  ;;  %v302_v11 = vld [vmem:[#allocation2 + $0x578] sm:$0xff] }
  0x6d   :  { %571 = vmatpush1.msra.mxu1 %v343_v48  ;;  %471 = vmatprep.subr.mxu0 %v146_v49  ;;  %v208_v12 = vld [vmem:[#allocation2 + $0x288] sm:$0xff]  ;;  %v301_v13 = vld [vmem:[#allocation2 + $0x570] sm:$0xff]  ;;  %v207_v14 = vld [vmem:[#allocation2 + $0x280] sm:$0xff] }
  0x6e   :  { %572 = vmatprep.subr.mxu1 %v338_v50  ;;  %472 = vmatpush1.msra.mxu0 %v145_v51  ;;  %v296_v15 = vld [vmem:[#allocation2 + $0x548] sm:$0xff]  ;;  %v202_v16 = vld [vmem:[#allocation2 + $0x258] sm:$0xff]  ;;  %v295_v17 = vld [vmem:[#allocation2 + $0x540] sm:$0xff] }
  0x6f   :  { %573 = vmatpush1.msra.mxu1 %v337_v52  ;;  %473 = vmatprep.subr.mxu0 %v140_v53  ;;  %v201_v18 = vld [vmem:[#allocation2 + $0x250] sm:$0xff]  ;;  %v290_v19 = vld [vmem:[#allocation2 + $0x518] sm:$0xff]  ;;  %v196_v20 = vld [vmem:[#allocation2 + $0x228] sm:$0xff] }
  0x70   :  { %574 = vmatprep.subr.mxu1 %v332_v54  ;;  %474 = vmatpush1.msra.mxu0 %v139_v55  ;;  %v289_v21 = vld [vmem:[#allocation2 + $0x510] sm:$0xff]  ;;  %v195_v22 = vld [vmem:[#allocation2 + $0x220] sm:$0xff]  ;;  %v284_v23 = vld [vmem:[#allocation2 + $0x4e8] sm:$0xff] }
  0x71   :  { %575 = vmatpush1.msra.mxu1 %v331_v56  ;;  %475 = vmatprep.subr.mxu0 %v134_v57  ;;  %v190_v24 = vld [vmem:[#allocation2 + $0x1f8] sm:$0xff]  ;;  %v283_v25 = vld [vmem:[#allocation2 + $0x4e0] sm:$0xff]  ;;  %v189_v26 = vld [vmem:[#allocation2 + $0x1f0] sm:$0xff] }
  0x72   :  { %576 = vmatprep.subr.mxu1 %v326_v58  ;;  %476 = vmatpush1.msra.mxu0 %v133_v59  ;;  %v278_v27 = vld [vmem:[#allocation2 + $0x4b8] sm:$0xff]  ;;  %v184_v28 = vld [vmem:[#allocation2 + $0x1c8] sm:$0xff]  ;;  %v277_v29 = vld [vmem:[#allocation2 + $0x4b0] sm:$0xff] }
  0x73   :  { %577 = vmatpush1.msra.mxu1 %v325_v60  ;;  %477 = vmatprep.subr.mxu0 %v128_v61  ;;  %v183_v30 = vld [vmem:[#allocation2 + $0x1c0] sm:$0xff]  ;;  %v272_v31 = vld [vmem:[#allocation2 + $0x488] sm:$0xff]  ;;  %v178_v32 = vld [vmem:[#allocation2 + $0x198] sm:$0xff] }
  0x74   :  { %578 = vmatprep.subr.mxu1 %v320_v62  ;;  %478 = vmatpush1.msra.mxu0 %v127_v63  ;;  %v271_v33 = vld [vmem:[#allocation2 + $0x480] sm:$0xff]  ;;  %v177_v34 = vld [vmem:[#allocation2 + $0x190] sm:$0xff]  ;;  %v266_v35 = vld [vmem:[#allocation2 + $0x458] sm:$0xff] }
  0x75   :  { %579 = vmatpush1.msra.mxu1 %v319_v1  ;;  %479 = vmatprep.subr.mxu0 %v314_v2  ;;  %v172_v36 = vld [vmem:[#allocation2 + $0x168] sm:$0xff]  ;;  %v265_v37 = vld [vmem:[#allocation2 + $0x450] sm:$0xff]  ;;  %v171_v38 = vld [vmem:[#allocation2 + $0x160] sm:$0xff] }
  0x76   :  { %613 = vmatmul.mubr.f32.vlgmr.msra.gmra.mxu1 %v5935_v3  ;;  %649 = vmatprep.subr.mxu1 %v220_v4  ;;  %v260_v39 = vld [vmem:[#allocation2 + $0x428] sm:$0xff]  ;;  %v166_v40 = vld [vmem:[#allocation2 + $0x138] sm:$0xff]  ;;  %v259_v41 = vld [vmem:[#allocation2 + $0x420] sm:$0xff] }
  0x77   :  { %480 = vmatpush2.msra.mxu0 %v313_v5  ;;  %650 = vmatpush1.msra.mxu1 %v219_v6  ;;  %v165_v42 = vld [vmem:[#allocation2 + $0x130] sm:$0xff]  ;;  %v254_v43 = vld [vmem:[#allocation2 + $0x3f8] sm:$0xff]  ;;  %v160_v44 = vld [vmem:[#allocation2 + $0x108] sm:$0xff] }
  0x78   :  { %481 = vmatprep.subr.mxu0 %v308_v7  ;;  %651 = vmatprep.subr.mxu1 %v214_v8  ;;  %v253_v45 = vld [vmem:[#allocation2 + $0x3f0] sm:$0xff]  ;;  %v159_v46 = vld [vmem:[#allocation2 + $0x100] sm:$0xff]  ;;  %v248_v47 = vld [vmem:[#allocation2 + $0x3c8] sm:$0xff] }
  0x79   :  { %482 = vmatpush2.msra.mxu0 %v307_v9  ;;  %652 = vmatpush1.msra.mxu1 %v213_v10  ;;  %v154_v48 = vld [vmem:[#allocation2 + $0xd8] sm:$0xff]  ;;  %v247_v49 = vld [vmem:[#allocation2 + $0x3c0] sm:$0xff]  ;;  %v153_v50 = vld [vmem:[#allocation2 + $0xd0] sm:$0xff] }
  0x7a   :  { %483 = vmatprep.subr.mxu0 %v302_v11  ;;  %653 = vmatprep.subr.mxu1 %v208_v12  ;;  %v242_v51 = vld [vmem:[#allocation2 + $0x398] sm:$0xff]  ;;  %v148_v52 = vld [vmem:[#allocation2 + $0xa8] sm:$0xff]  ;;  %v241_v53 = vld [vmem:[#allocation2 + $0x390] sm:$0xff] }
  0x7b   :  { %484 = vmatpush2.msra.mxu0 %v301_v13  ;;  %654 = vmatpush1.msra.mxu1 %v207_v14  ;;  %v147_v54 = vld [vmem:[#allocation2 + $0xa0] sm:$0xff]  ;;  %v236_v55 = vld [vmem:[#allocation2 + $0x368] sm:$0xff]  ;;  %v142_v56 = vld [vmem:[#allocation2 + $0x78] sm:$0xff] }
  0x7c   :  { %485 = vmatprep.subr.mxu0 %v296_v15  ;;  %655 = vmatprep.subr.mxu1 %v202_v16  ;;  %v235_v57 = vld [vmem:[#allocation2 + $0x360] sm:$0xff]  ;;  %v141_v58 = vld [vmem:[#allocation2 + $0x70] sm:$0xff]  ;;  %v230_v59 = vld [vmem:[#allocation2 + $0x338] sm:$0xff] }
  0x7d   :  { %486 = vmatpush2.msra.mxu0 %v295_v17  ;;  %656 = vmatpush1.msra.mxu1 %v201_v18  ;;  %v136_v60 = vld [vmem:[#allocation2 + $0x48] sm:$0xff]  ;;  %v229_v61 = vld [vmem:[#allocation2 + $0x330] sm:$0xff]  ;;  %v135_v62 = vld [vmem:[#allocation2 + $0x40] sm:$0xff] }
  0x7e   :  { %487 = vmatprep.subr.mxu0 %v290_v19  ;;  %657 = vmatprep.subr.mxu1 %v196_v20  ;;  %v224_v63 = vld [vmem:[#allocation2 + $0x308] sm:$0xff]  ;;  %v130_v1 = vld [vmem:[#allocation2 + $0x18] sm:$0xff]  ;;  %v223_v2 = vld [vmem:[#allocation2 + $0x300] sm:$0xff] }
  0x7f   :  { %488 = vmatpush2.msra.mxu0 %v289_v21  ;;  %658 = vmatpush1.msra.mxu1 %v195_v22  ;;  %v5941_v4 = vld [vmem:[%s9445_s0 + $0x8] sm:$0xff]  ;;  %v129_v5 = vld [vmem:[#allocation2 + $0x10] sm:$0xff]  ;;  %v5946_v6 = vld [vmem:[%s9445_s0] sm:$0xff] }
  0x80   :  { %489 = vmatprep.subr.mxu0 %v284_v23  ;;  %659 = vmatprep.subr.mxu1 %v190_v24  ;;  %v316_v7 = vld [vmem:[#allocation2 + $0x5e8] sm:$0xff]  ;;  %v315_v9 = vld [vmem:[#allocation2 + $0x5e0] sm:$0xff]  ;;  %v310_v11 = vld [vmem:[#allocation2 + $0x5b8] sm:$0xff] }
  0x81   :  { %490 = vmatpush2.msra.mxu0 %v283_v25  ;;  %660 = vmatpush1.msra.mxu1 %v189_v26  ;;  %v412_v8 = vld [vmem:[#allocation2 + $0x8e8] sm:$0xff]  ;;  %v411_v10 = vld [vmem:[#allocation2 + $0x8e0] sm:$0xff]  ;;  %v406_v12 = vld [vmem:[#allocation2 + $0x8b8] sm:$0xff] }
  0x82   :  { %491 = vmatprep.subr.mxu0 %v278_v27  ;;  %661 = vmatprep.subr.mxu1 %v184_v28  ;;  %v309_v13 = vld [vmem:[#allocation2 + $0x5b0] sm:$0xff]  ;;  %v304_v15 = vld [vmem:[#allocation2 + $0x588] sm:$0xff]  ;;  %v303_v17 = vld [vmem:[#allocation2 + $0x580] sm:$0xff] }
  0x83   :  { %492 = vmatpush2.msra.mxu0 %v277_v29  ;;  %662 = vmatpush1.msra.mxu1 %v183_v30  ;;  %v405_v14 = vld [vmem:[#allocation2 + $0x8b0] sm:$0xff]  ;;  %v400_v16 = vld [vmem:[#allocation2 + $0x888] sm:$0xff]  ;;  %v399_v18 = vld [vmem:[#allocation2 + $0x880] sm:$0xff] }
  0x84   :  { %493 = vmatprep.subr.mxu0 %v272_v31  ;;  %663 = vmatprep.subr.mxu1 %v178_v32  ;;  %v298_v19 = vld [vmem:[#allocation2 + $0x558] sm:$0xff]  ;;  %v393_v22 = vld [vmem:[#allocation2 + $0x850] sm:$0xff]  ;;  %v292_v24 = vld [vmem:[#allocation2 + $0x528] sm:$0xff] }
  0x85   :  { %494 = vmatpush2.msra.mxu0 %v271_v33  ;;  %664 = vmatpush1.msra.mxu1 %v177_v34  ;;  %v394_v20 = vld [vmem:[#allocation2 + $0x858] sm:$0xff]  ;;  %v297_v23 = vld [vmem:[#allocation2 + $0x550] sm:$0xff]  ;;  %v388_v25 = vld [vmem:[#allocation2 + $0x828] sm:$0xff] }
  0x86   :  { %495 = vmatprep.subr.mxu0 %v266_v35  ;;  %665 = vmatprep.subr.mxu1 %v172_v36  ;;  %v5955_v21 = vld [vmem:[%s9445_s0 + $0x18] sm:$0xff]  ;;  %v291_v26 = vld [vmem:[#allocation2 + $0x520] sm:$0xff]  ;;  %v381_v31 = vld [vmem:[#allocation2 + $0x7f0] sm:$0xff] }
  0x87   :  { %496 = vmatpush2.msra.mxu0 %v265_v37  ;;  %666 = vmatpush1.msra.mxu1 %v171_v38  ;;  %v387_v27 = vld [vmem:[#allocation2 + $0x820] sm:$0xff]  ;;  %v286_v28 = vld [vmem:[#allocation2 + $0x4f8] sm:$0xff]  ;;  %v285_v32 = vld [vmem:[#allocation2 + $0x4f0] sm:$0xff] }
  0x88   :  { %497 = vmatprep.subr.mxu0 %v260_v39  ;;  %667 = vmatprep.subr.mxu1 %v166_v40  ;;  %v382_v29 = vld [vmem:[#allocation2 + $0x7f8] sm:$0xff]  ;;  %v5964_v30 = vld [vmem:[%s9445_s0 + $0x20] sm:$0xff]  ;;  %v280_v33 = vld [vmem:[#allocation2 + $0x4c8] sm:$0xff] }
  0x89   :  { %498 = vmatpush2.msra.mxu0 %v259_v41  ;;  %668 = vmatpush1.msra.mxu1 %v165_v42  ;;  %v376_v34 = vld [vmem:[#allocation2 + $0x7c8] sm:$0xff]  ;;  %v279_v35 = vld [vmem:[#allocation2 + $0x4c0] sm:$0xff]  ;;  %v274_v37 = vld [vmem:[#allocation2 + $0x498] sm:$0xff] }
  0x8a   :  { %499 = vmatprep.subr.mxu0 %v254_v43  ;;  %669 = vmatprep.subr.mxu1 %v160_v44  ;;  %v375_v36 = vld [vmem:[#allocation2 + $0x7c0] sm:$0xff]  ;;  %v370_v38 = vld [vmem:[#allocation2 + $0x798] sm:$0xff]  ;;  %v5973_v39 = vld [vmem:[%s9445_s0 + $0x28] sm:$0xff] }
  0x8b   :  { %500 = vmatpush2.msra.mxu0 %v253_v45  ;;  %670 = vmatpush1.msra.mxu1 %v159_v46  ;;  %v369_v40 = vld [vmem:[#allocation2 + $0x790] sm:$0xff]  ;;  %v364_v42 = vld [vmem:[#allocation2 + $0x768] sm:$0xff]  ;;  %v363_v44 = vld [vmem:[#allocation2 + $0x760] sm:$0xff] }
  0x8c   :  { %501 = vmatprep.subr.mxu0 %v248_v47  ;;  %671 = vmatprep.subr.mxu1 %v154_v48  ;;  %v273_v41 = vld [vmem:[#allocation2 + $0x490] sm:$0xff]  ;;  %v268_v43 = vld [vmem:[#allocation2 + $0x468] sm:$0xff]  ;;  %v267_v45 = vld [vmem:[#allocation2 + $0x460] sm:$0xff] }
  0x8d   :  { %502 = vmatpush2.msra.mxu0 %v247_v49  ;;  %672 = vmatpush1.msra.mxu1 %v153_v50  ;;  %v358_v46 = vld [vmem:[#allocation2 + $0x738] sm:$0xff]  ;;  %v261_v48 = vld [vmem:[#allocation2 + $0x430] sm:$0xff]  ;;  %v256_v50 = vld [vmem:[#allocation2 + $0x408] sm:$0xff] }
  0x8e   :  { %503 = vmatprep.subr.mxu0 %v242_v51  ;;  %673 = vmatprep.subr.mxu1 %v148_v52  ;;  %v262_v47 = vld [vmem:[#allocation2 + $0x438] sm:$0xff]  ;;  %v357_v49 = vld [vmem:[#allocation2 + $0x730] sm:$0xff]  ;;  %v352_v51 = vld [vmem:[#allocation2 + $0x708] sm:$0xff] }
  0x8f   :  { %504 = vmatpush2.msra.mxu0 %v241_v53  ;;  %674 = vmatpush1.msra.mxu1 %v147_v54  ;;  %v255_v52 = vld [vmem:[#allocation2 + $0x400] sm:$0xff]  ;;  %v5982_v54 = vld [vmem:[%s9445_s0 + $0x30] sm:$0xff] }
  0x90   :  { %505 = vmatprep.subr.mxu0 %v236_v55  ;;  %675 = vmatprep.subr.mxu1 %v142_v56  ;;  %v351_v53 = vld [vmem:[#allocation2 + $0x700] sm:$0xff]  ;;  %v250_v55 = vld [vmem:[#allocation2 + $0x3d8] sm:$0xff] }
  0x91   :  { %506 = vmatpush2.msra.mxu0 %v235_v57  ;;  %676 = vmatpush1.msra.mxu1 %v141_v58  ;;  %v346_v56 = vld [vmem:[#allocation2 + $0x6d8] sm:$0xff]  ;;  %v249_v57 = vld [vmem:[#allocation2 + $0x3d0] sm:$0xff] }
  0x92   :  { %507 = vmatprep.subr.mxu0 %v230_v59  ;;  %677 = vmatprep.subr.mxu1 %v136_v60  ;;  %v345_v58 = vld [vmem:[#allocation2 + $0x6d0] sm:$0xff]  ;;  %v244_v59 = vld [vmem:[#allocation2 + $0x3a8] sm:$0xff] }
  0x93   :  { %508 = vmatpush2.msra.mxu0 %v229_v61  ;;  %678 = vmatpush1.msra.mxu1 %v135_v62  ;;  %v340_v60 = vld [vmem:[#allocation2 + $0x6a8] sm:$0xff]  ;;  %v243_v61 = vld [vmem:[#allocation2 + $0x3a0] sm:$0xff] }
  0x94   :  { %509 = vmatprep.subr.mxu0 %v224_v63  ;;  %679 = vmatprep.subr.mxu1 %v130_v1  ;;  %v339_v62 = vld [vmem:[#allocation2 + $0x6a0] sm:$0xff]  ;;  %v5991_v63 = vld [vmem:[%s9445_s0 + $0x38] sm:$0xff] }
  0x95   :  { %510 = vmatpush2.msra.mxu0 %v223_v2  ;;  %511 = vmatprep.mubr.f32.mxu0 %v5941_v4  ;;  %v238_v1 = vld [vmem:[#allocation2 + $0x378] sm:$0xff] }
  0x96   :  { %680 = vmatpush1.msra.mxu1 %v129_v5  ;;  %512 = vmatmul.mubr.f32.vlgmr.msra.gmra.mxu0 %v5946_v6  ;;  %v334_v2 = vld [vmem:[#allocation2 + $0x678] sm:$0xff]  ;;  %v237_v5 = vld [vmem:[#allocation2 + $0x370] sm:$0xff] }
  0x97   :  { %681 = vmatprep.subr.mxu1 %v316_v7  ;;  %750 = vmatprep.subr.mxu0 %v412_v8  ;;  %v333_v7 = vld [vmem:[#allocation2 + $0x670] sm:$0xff]  ;;  %v232_v8 = vld [vmem:[#allocation2 + $0x348] sm:$0xff] }
  0x98   :  { %682 = vmatpush2.msra.mxu1 %v315_v9  ;;  %751 = vmatpush1.msra.mxu0 %v411_v10  ;;  %v328_v9 = vld [vmem:[#allocation2 + $0x648] sm:$0xff]  ;;  %v231_v10 = vld [vmem:[#allocation2 + $0x340] sm:$0xff] }
  0x99   :  { %683 = vmatprep.subr.mxu1 %v310_v11  ;;  %752 = vmatprep.subr.mxu0 %v406_v12  ;;  %v327_v11 = vld [vmem:[#allocation2 + $0x640] sm:$0xff]  ;;  %v226_v12 = vld [vmem:[#allocation2 + $0x318] sm:$0xff] }
  0x9a   :  { %684 = vmatpush2.msra.mxu1 %v309_v13  ;;  %753 = vmatpush1.msra.mxu0 %v405_v14  ;;  %v322_v13 = vld [vmem:[#allocation2 + $0x618] sm:$0xff]  ;;  %v225_v14 = vld [vmem:[#allocation2 + $0x310] sm:$0xff] }
  0x9b   :  { %517 = vmatprep.mubr.f32.mxu0 %v5935_v3  ;;  %685 = vmatprep.subr.mxu1 %v304_v15  ;;  %v321_v15 = vld [vmem:[#allocation2 + $0x610] sm:$0xff] }
  0x9c   :  { %754 = vmatprep.subr.mxu0 %v400_v16  ;;  %518 = vmatmul.mubr.f32.gmra.mxu0 %v5941_v4  ;;  %v222_v16 = vld [vmem:[#allocation2 + $0x2f8] sm:$0xff] }
  0x9d   :  { %686 = vmatpush2.msra.mxu1 %v303_v17  ;;  %755 = vmatpush1.msra.mxu0 %v399_v18  ;;  %v221_v17 = vld [vmem:[#allocation2 + $0x2f0] sm:$0xff]  ;;  %v414_v18 = vld [vmem:[#allocation2 + $0x8f8] sm:$0xff] }
  0x9e   :  { %618 = vmatprep.mubr.f32.mxu1 %v5859_v0  ;;  %687 = vmatprep.subr.mxu1 %v298_v19  ;;  %v216_v19 = vld [vmem:[#allocation2 + $0x2c8] sm:$0xff] }
  0x9f   :  { %756 = vmatprep.subr.mxu0 %v394_v20  ;;  %619 = vmatmul.mubr.f32.gmra.mxu1 %v5955_v21  ;;  %v215_v20 = vld [vmem:[#allocation2 + $0x2c0] sm:$0xff] }
  0xa0   :  { %757 = vmatpush1.msra.mxu0 %v393_v22  ;;  %688 = vmatpush2.msra.mxu1 %v297_v23  ;;  %v210_v22 = vld [vmem:[#allocation2 + $0x298] sm:$0xff]  ;;  %v413_v23 = vld [vmem:[#allocation2 + $0x8f0] sm:$0xff] }
  0xa1   :  { %523 = vmatprep.mubr.f32.mxu0 %v5955_v21  ;;  %689 = vmatprep.subr.mxu1 %v292_v24  ;;  %v209_v24 = vld [vmem:[#allocation2 + $0x290] sm:$0xff] }
  0xa2   :  { %758 = vmatprep.subr.mxu0 %v388_v25  ;;  %524 = vmatmul.mubr.f32.gmra.mxu0 %v5935_v3  ;;  %v204_v25 = vld [vmem:[#allocation2 + $0x268] sm:$0xff] }
  0xa3   :  { %690 = vmatpush2.msra.mxu1 %v291_v26  ;;  %759 = vmatpush1.msra.mxu0 %v387_v27  ;;  %v203_v26 = vld [vmem:[#allocation2 + $0x260] sm:$0xff]  ;;  %v408_v27 = vld [vmem:[#allocation2 + $0x8c8] sm:$0xff] }
  0xa4   :  { %624 = vmatprep.mubr.f32.mxu1 %v5859_v0  ;;  %691 = vmatprep.subr.mxu1 %v286_v28  ;;  %v198_v28 = vld [vmem:[#allocation2 + $0x238] sm:$0xff] }
  0xa5   :  { %760 = vmatprep.subr.mxu0 %v382_v29  ;;  %625 = vmatmul.mubr.f32.gmra.mxu1 %v5964_v30  ;;  %v197_v29 = vld [vmem:[#allocation2 + $0x230] sm:$0xff] }
  0xa6   :  { %761 = vmatpush1.msra.mxu0 %v381_v31  ;;  %692 = vmatpush2.msra.mxu1 %v285_v32  ;;  %v192_v31 = vld [vmem:[#allocation2 + $0x208] sm:$0xff]  ;;  %v407_v32 = vld [vmem:[#allocation2 + $0x8c0] sm:$0xff] }
  0xa7   :  { %529 = vmatprep.mubr.f32.mxu0 %v5964_v30  ;;  %693 = vmatprep.subr.mxu1 %v280_v33  ;;  %v191_v33 = vld [vmem:[#allocation2 + $0x200] sm:$0xff] }
  0xa8   :  { %762 = vmatprep.subr.mxu0 %v376_v34  ;;  %530 = vmatmul.mubr.f32.gmra.mxu0 %v5955_v21  ;;  %v186_v34 = vld [vmem:[#allocation2 + $0x1d8] sm:$0xff] }
  0xa9   :  { %694 = vmatpush2.msra.mxu1 %v279_v35  ;;  %763 = vmatpush1.msra.mxu0 %v375_v36  ;;  %v185_v35 = vld [vmem:[#allocation2 + $0x1d0] sm:$0xff]  ;;  %v402_v36 = vld [vmem:[#allocation2 + $0x898] sm:$0xff] }
  0xaa   :  { %630 = vmatprep.mubr.f32.mxu1 %v5859_v0  ;;  %695 = vmatprep.subr.mxu1 %v274_v37  ;;  %v180_v37 = vld [vmem:[#allocation2 + $0x1a8] sm:$0xff] }
  0xab   :  { %764 = vmatprep.subr.mxu0 %v370_v38  ;;  %631 = vmatmul.mubr.f32.gmra.mxu1 %v5973_v39  ;;  %v401_v38 = vld [vmem:[#allocation2 + $0x890] sm:$0xff] }
  0xac   :  { %765 = vmatpush1.msra.mxu0 %v369_v40  ;;  %696 = vmatpush2.msra.mxu1 %v273_v41  ;;  %v179_v40 = vld [vmem:[#allocation2 + $0x1a0] sm:$0xff]  ;;  %v396_v41 = vld [vmem:[#allocation2 + $0x868] sm:$0xff] }
  0xad   :  { %766 = vmatprep.subr.mxu0 %v364_v42  ;;  %697 = vmatprep.subr.mxu1 %v268_v43  ;;  %v174_v42 = vld [vmem:[#allocation2 + $0x178] sm:$0xff]  ;;  %v395_v43 = vld [vmem:[#allocation2 + $0x860] sm:$0xff] }
  0xae   :  { %767 = vmatpush1.msra.mxu0 %v363_v44  ;;  %698 = vmatpush2.msra.mxu1 %v267_v45  ;;  %v173_v44 = vld [vmem:[#allocation2 + $0x170] sm:$0xff]  ;;  %v390_v45 = vld [vmem:[#allocation2 + $0x838] sm:$0xff] }
  0xaf   :  { %768 = vmatprep.subr.mxu0 %v358_v46  ;;  %699 = vmatprep.subr.mxu1 %v262_v47  ;;  %v168_v46 = vld [vmem:[#allocation2 + $0x148] sm:$0xff]  ;;  %v389_v47 = vld [vmem:[#allocation2 + $0x830] sm:$0xff] }
  0xb0   :  { %535 = vmatprep.mubr.f32.mxu0 %v5973_v39  ;;  %700 = vmatpush2.msra.mxu1 %v261_v48  ;;  %v167_v48 = vld [vmem:[#allocation2 + $0x140] sm:$0xff] }
  0xb1   :  { %769 = vmatpush1.msra.mxu0 %v357_v49  ;;  %701 = vmatprep.subr.mxu1 %v256_v50  ;;  %v384_v49 = vld [vmem:[#allocation2 + $0x808] sm:$0xff]  ;;  %v162_v50 = vld [vmem:[#allocation2 + $0x118] sm:$0xff] }
  0xb2   :  { %536 = vmatmul.mubr.f32.gmra.mxu0 %v5964_v30  ;;  %770 = vmatprep.subr.mxu0 %v352_v51  ;;  %v383_v51 = vld [vmem:[#allocation2 + $0x800] sm:$0xff] }
  0xb3   :  { %636 = vmatprep.mubr.f32.mxu1 %v5859_v0  ;;  %702 = vmatpush2.msra.mxu1 %v255_v52  ;;  %v161_v52 = vld [vmem:[#allocation2 + $0x110] sm:$0xff] }
  0xb4   :  { %771 = vmatpush1.msra.mxu0 %v351_v53  ;;  %637 = vmatmul.mubr.f32.gmra.mxu1 %v5982_v54  ;;  %v378_v53 = vld [vmem:[#allocation2 + $0x7d8] sm:$0xff] }
  0xb5   :  { %703 = vmatprep.subr.mxu1 %v250_v55  ;;  %772 = vmatprep.subr.mxu0 %v346_v56  ;;  %v156_v55 = vld [vmem:[#allocation2 + $0xe8] sm:$0xff]  ;;  %v377_v56 = vld [vmem:[#allocation2 + $0x7d0] sm:$0xff] }
  0xb6   :  { %541 = vmatprep.mubr.f32.mxu0 %v5982_v54  ;;  %704 = vmatpush2.msra.mxu1 %v249_v57  ;;  %v155_v57 = vld [vmem:[#allocation2 + $0xe0] sm:$0xff] }
  0xb7   :  { %773 = vmatpush1.msra.mxu0 %v345_v58  ;;  %705 = vmatprep.subr.mxu1 %v244_v59  ;;  %v372_v58 = vld [vmem:[#allocation2 + $0x7a8] sm:$0xff]  ;;  %v150_v59 = vld [vmem:[#allocation2 + $0xb8] sm:$0xff] }
  0xb8   :  { %542 = vmatmul.mubr.f32.gmra.mxu0 %v5973_v39  ;;  %774 = vmatprep.subr.mxu0 %v340_v60  ;;  %v371_v60 = vld [vmem:[#allocation2 + $0x7a0] sm:$0xff] }
  0xb9   :  { %642 = vmatprep.mubr.f32.mxu1 %v5859_v0  ;;  %706 = vmatpush2.msra.mxu1 %v243_v61  ;;  %v149_v61 = vld [vmem:[#allocation2 + $0xb0] sm:$0xff] }
  0xba   :  { %775 = vmatpush1.msra.mxu0 %v339_v62  ;;  %643 = vmatmul.mubr.f32.gmra.mxu1 %v5991_v63  ;;  %v366_v62 = vld [vmem:[#allocation2 + $0x778] sm:$0xff] }
  0xbb   :  { %707 = vmatprep.subr.mxu1 %v238_v1  ;;  %776 = vmatprep.subr.mxu0 %v334_v2  ;;  %v144_v1 = vld [vmem:[#allocation2 + $0x88] sm:$0xff]  ;;  %v365_v2 = vld [vmem:[#allocation2 + $0x770] sm:$0xff] }
  0xbc   :  { %708 = vmatpush2.msra.mxu1 %v237_v5  ;;  %777 = vmatpush1.msra.mxu0 %v333_v7  ;;  %v143_v5 = vld [vmem:[#allocation2 + $0x80] sm:$0xff]  ;;  %v360_v7 = vld [vmem:[#allocation2 + $0x748] sm:$0xff] }
  0xbd   :  { %709 = vmatprep.subr.mxu1 %v232_v8  ;;  %778 = vmatprep.subr.mxu0 %v328_v9  ;;  %v138_v8 = vld [vmem:[#allocation2 + $0x58] sm:$0xff]  ;;  %v359_v9 = vld [vmem:[#allocation2 + $0x740] sm:$0xff] }
  0xbe   :  { %710 = vmatpush2.msra.mxu1 %v231_v10  ;;  %779 = vmatpush1.msra.mxu0 %v327_v11  ;;  %v137_v10 = vld [vmem:[#allocation2 + $0x50] sm:$0xff]  ;;  %v354_v11 = vld [vmem:[#allocation2 + $0x718] sm:$0xff] }
  0xbf   :  { %711 = vmatprep.subr.mxu1 %v226_v12  ;;  %780 = vmatprep.subr.mxu0 %v322_v13  ;;  %v132_v12 = vld [vmem:[#allocation2 + $0x28] sm:$0xff]  ;;  %v353_v13 = vld [vmem:[#allocation2 + $0x710] sm:$0xff] }
  0xc0   :  { %712 = vmatpush2.msra.mxu1 %v225_v14  ;;  %713 = vmatprep.mubr.f32.mxu1 %v5941_v4  ;;  %v131_v14 = vld [vmem:[#allocation2 + $0x20] sm:$0xff] }
  0xc1   :  { %781 = vmatpush1.msra.mxu0 %v321_v15  ;;  %814 = vmatprep.mubr.f32.mxu0 %v5859_v0  ;;  %v348_v15 = vld [vmem:[#allocation2 + $0x6e8] sm:$0xff] }
  0xc2   :  { %714 = vmatmul.mubr.f32.vlgmr.msra.gmra.mxu1 %v5946_v6  ;;  %815 = vmatmul.mubr.f32.vlgmr.msra.gmra.mxu0 %v5935_v3 }
  0xc3   :  { %719 = vmatprep.mubr.f32.mxu1 %v5935_v3  ;;  %820 = vmatprep.mubr.f32.mxu0 %v5859_v0 }
  0xc4   :  { %851 = vmatprep.subr.mxu0 %v222_v16  ;;  %952 = vmatprep.subr.mxu1 %v414_v18  ;;  %v318_v16 = vld [vmem:[#allocation2 + $0x5f8] sm:$0xff]  ;;  %v317_v18 = vld [vmem:[#allocation2 + $0x5f0] sm:$0xff] }
  0xc5   :  { %852 = vmatpush1.msra.mxu0 %v221_v17  ;;  %953 = vmatpush1.msra.mxu1 %v413_v23  ;;  %v347_v17 = vld [vmem:[#allocation2 + $0x6e0] sm:$0xff] }
  0xc6   :  { %720 = vmatmul.mubr.f32.gmra.mxu1 %v5941_v4  ;;  %853 = vmatprep.subr.mxu0 %v216_v19  ;;  %v342_v19 = vld [vmem:[#allocation2 + $0x6b8] sm:$0xff]  ;;  %v311_v23 = vld [vmem:[#allocation2 + $0x5c0] sm:$0xff] }
  0xc7   :  { %821 = vmatmul.mubr.f32.gmra.mxu0 %v5955_v21  ;;  %725 = vmatprep.mubr.f32.mxu1 %v5955_v21 }
  0xc8   :  { %826 = vmatprep.mubr.f32.mxu0 %v5859_v0  ;;  %854 = vmatpush1.msra.mxu0 %v215_v20  ;;  %v312_v20 = vld [vmem:[#allocation2 + $0x5c8] sm:$0xff] }
  0xc9   :  { %855 = vmatprep.subr.mxu0 %v210_v22  ;;  %954 = vmatprep.subr.mxu1 %v408_v27  ;;  %v341_v22 = vld [vmem:[#allocation2 + $0x6b0] sm:$0xff] }
  0xca   :  { %726 = vmatmul.mubr.f32.gmra.mxu1 %v5935_v3  ;;  %856 = vmatpush1.msra.mxu0 %v209_v24  ;;  %v336_v24 = vld [vmem:[#allocation2 + $0x688] sm:$0xff]  ;;  %v305_v27 = vld [vmem:[#allocation2 + $0x590] sm:$0xff] }
  0xcb   :  { %827 = vmatmul.mubr.f32.gmra.mxu0 %v5964_v30  ;;  %731 = vmatprep.mubr.f32.mxu1 %v5964_v30 }
  0xcc   :  { %832 = vmatprep.mubr.f32.mxu0 %v5859_v0  ;;  %857 = vmatprep.subr.mxu0 %v204_v25  ;;  %v306_v25 = vld [vmem:[#allocation2 + $0x598] sm:$0xff] }
  0xcd   :  { %858 = vmatpush1.msra.mxu0 %v203_v26  ;;  %955 = vmatpush1.msra.mxu1 %v407_v32  ;;  %v335_v26 = vld [vmem:[#allocation2 + $0x680] sm:$0xff] }
  0xce   :  { %732 = vmatmul.mubr.f32.gmra.mxu1 %v5955_v21  ;;  %859 = vmatprep.subr.mxu0 %v198_v28  ;;  %v330_v28 = vld [vmem:[#allocation2 + $0x658] sm:$0xff]  ;;  %v299_v32 = vld [vmem:[#allocation2 + $0x560] sm:$0xff] }
  0xcf   :  { %833 = vmatmul.mubr.f32.gmra.mxu0 %v5973_v39  ;;  %737 = vmatprep.mubr.f32.mxu1 %v5973_v39 }
  0xd0   :  { %838 = vmatprep.mubr.f32.mxu0 %v5859_v0  ;;  %860 = vmatpush1.msra.mxu0 %v197_v29  ;;  %v300_v29 = vld [vmem:[#allocation2 + $0x568] sm:$0xff] }
  0xd1   :  { %861 = vmatprep.subr.mxu0 %v192_v31  ;;  %956 = vmatprep.subr.mxu1 %v402_v36  ;;  %v329_v31 = vld [vmem:[#allocation2 + $0x650] sm:$0xff]  ;;  %v323_v36 = vld [vmem:[#allocation2 + $0x620] sm:$0xff] }
  0xd2   :  { %738 = vmatmul.mubr.f32.gmra.mxu1 %v5964_v30  ;;  %862 = vmatpush1.msra.mxu0 %v191_v33  ;;  %v294_v33 = vld [vmem:[#allocation2 + $0x538] sm:$0xff] }
  0xd3   :  { %839 = vmatmul.mubr.f32.gmra.mxu0 %v5982_v54  ;;  %743 = vmatprep.mubr.f32.mxu1 %v5982_v54 }
  0xd4   :  { %844 = vmatprep.mubr.f32.mxu0 %v5859_v0  ;;  %863 = vmatprep.subr.mxu0 %v186_v34  ;;  %v324_v34 = vld [vmem:[#allocation2 + $0x628] sm:$0xff] }
  0xd5   :  { %864 = vmatpush1.msra.mxu0 %v185_v35  ;;  %957 = vmatpush1.msra.mxu1 %v401_v38  ;;  %v293_v35 = vld [vmem:[#allocation2 + $0x530] sm:$0xff]  ;;  %v287_v38 = vld [vmem:[#allocation2 + $0x500] sm:$0xff] }
  0xd6   :  { %744 = vmatmul.mubr.f32.gmra.mxu1 %v5973_v39  ;;  %865 = vmatprep.subr.mxu0 %v180_v37  ;;  %v288_v37 = vld [vmem:[#allocation2 + $0x508] sm:$0xff] }
  0xd7   :  { %845 = vmatmul.mubr.f32.gmra.mxu0 %v5991_v63  ;;  %958 = vmatprep.subr.mxu1 %v396_v41  ;;  %v282_v41 = vld [vmem:[#allocation2 + $0x4d8] sm:$0xff] }
  0xd8   :  { %866 = vmatpush1.msra.mxu0 %v179_v40  ;;  %959 = vmatpush1.msra.mxu1 %v395_v43  ;;  %v6023_v40 = vld [vmem:[%s9448_s3 + $0xf8] sm:$0xff] }
  0xd9   :  { %867 = vmatprep.subr.mxu0 %v174_v42  ;;  %960 = vmatprep.subr.mxu1 %v390_v45  ;;  %v281_v42 = vld [vmem:[#allocation2 + $0x4d0] sm:$0xff]  ;;  %v6029_v43 = vld [vmem:[%s9448_s3 + $0x78] sm:$0xff] }
  0xda   :  { %868 = vmatpush1.msra.mxu0 %v173_v44  ;;  %961 = vmatpush1.msra.mxu1 %v389_v47  ;;  %v276_v44 = vld [vmem:[#allocation2 + $0x4a8] sm:$0xff]  ;;  %v6035_v45 = vld [vmem:[%s9448_s3 + $0xf0] sm:$0xff] }
  0xdb   :  { %869 = vmatprep.subr.mxu0 %v168_v46  ;;  %962 = vmatprep.subr.mxu1 %v384_v49  ;;  %v275_v46 = vld [vmem:[#allocation2 + $0x4a0] sm:$0xff]  ;;  %v6041_v47 = vld [vmem:[%s9448_s3 + $0x70] sm:$0xff]  ;;  %v6047_v49 = vld [vmem:[%s9448_s3 + $0xe8] sm:$0xff] }
  0xdc   :  { %870 = vmatpush1.msra.mxu0 %v167_v48  ;;  %963 = vmatpush1.msra.mxu1 %v383_v51  ;;  %v270_v48 = vld [vmem:[#allocation2 + $0x478] sm:$0xff]  ;;  %v264_v51 = vld [vmem:[#allocation2 + $0x448] sm:$0xff] }
  0xdd   :  { %871 = vmatprep.subr.mxu0 %v162_v50  ;;  %964 = vmatprep.subr.mxu1 %v378_v53  ;;  %v269_v50 = vld [vmem:[#allocation2 + $0x470] sm:$0xff]  ;;  %v263_v53 = vld [vmem:[#allocation2 + $0x440] sm:$0xff] }
  0xde   :  { %872 = vmatpush1.msra.mxu0 %v161_v52  ;;  %965 = vmatpush1.msra.mxu1 %v377_v56  ;;  %v6059_v52 = vld [vmem:[%s9448_s3 + $0xe0] sm:$0xff]  ;;  %v258_v56 = vld [vmem:[#allocation2 + $0x418] sm:$0xff] }
  0xdf   :  { %873 = vmatprep.subr.mxu0 %v156_v55  ;;  %966 = vmatprep.subr.mxu1 %v372_v58  ;;  %v6065_v55 = vld [vmem:[%s9448_s3 + $0x60] sm:$0xff]  ;;  %v257_v58 = vld [vmem:[#allocation2 + $0x410] sm:$0xff] }
  0xe0   :  { %874 = vmatpush1.msra.mxu0 %v155_v57  ;;  %967 = vmatpush1.msra.mxu1 %v371_v60  ;;  %v6071_v57 = vld [vmem:[%s9448_s3 + $0xd8] sm:$0xff]  ;;  %v252_v60 = vld [vmem:[#allocation2 + $0x3e8] sm:$0xff] }
  0xe1   :  { %875 = vmatprep.subr.mxu0 %v150_v59  ;;  %968 = vmatprep.subr.mxu1 %v366_v62  ;;  %v6077_v59 = vld [vmem:[%s9448_s3 + $0x58] sm:$0xff]  ;;  %v251_v62 = vld [vmem:[#allocation2 + $0x3e0] sm:$0xff] }
  0xe2   :  { %876 = vmatpush1.msra.mxu0 %v149_v61  ;;  %969 = vmatpush1.msra.mxu1 %v365_v2  ;;  %v6083_v61 = vld [vmem:[%s9448_s3 + $0xd0] sm:$0xff] }
  0xe3   :  { %877 = vmatprep.subr.mxu0 %v144_v1  ;;  %970 = vmatprep.subr.mxu1 %v360_v7  ;;  %v246_v1 = vld [vmem:[#allocation2 + $0x3b8] sm:$0xff]  ;;  %v6090_v2 = vld [vmem:[%s9448_s3 + $0x50] sm:$0xff]  ;;  %v240_v7 = vld [vmem:[#allocation2 + $0x388] sm:$0xff] }
  0xe4   :  { %878 = vmatpush1.msra.mxu0 %v143_v5  ;;  %971 = vmatpush1.msra.mxu1 %v359_v9  ;;  %v245_v5 = vld [vmem:[#allocation2 + $0x3b0] sm:$0xff]  ;;  %v239_v9 = vld [vmem:[#allocation2 + $0x380] sm:$0xff] }
  0xe5   :  { %879 = vmatprep.subr.mxu0 %v138_v8  ;;  %972 = vmatprep.subr.mxu1 %v354_v11  ;;  %v6097_v8 = vld [vmem:[%s9448_s3 + $0xc8] sm:$0xff]  ;;  %v234_v11 = vld [vmem:[#allocation2 + $0x358] sm:$0xff] }
  0xe6   :  { %880 = vmatpush1.msra.mxu0 %v137_v10  ;;  %973 = vmatpush1.msra.mxu1 %v353_v13  ;;  %v6103_v10 = vld [vmem:[%s9448_s3 + $0x48] sm:$0xff]  ;;  %v233_v13 = vld [vmem:[#allocation2 + $0x350] sm:$0xff] }
  0xe7   :  { %881 = vmatprep.subr.mxu0 %v132_v12  ;;  %974 = vmatprep.subr.mxu1 %v348_v15  ;;  %v6109_v12 = vld [vmem:[%s9448_s3 + $0xc0] sm:$0xff] }
  0xe8   :  { %882 = vmatpush1.msra.mxu0 %v131_v14  ;;  %975 = vmatpush1.msra.mxu1 %v347_v17  ;;  %v228_v14 = vld [vmem:[#allocation2 + $0x328] sm:$0xff]  ;;  %v6116_v15 = vld [vmem:[%s9448_s3 + $0x40] sm:$0xff]  ;;  %v6123_v17 = vld [vmem:[%s9448_s3 + $0xb8] sm:$0xff] }
  0xe9   :  { %883 = vmatprep.subr.mxu0 %v318_v16  ;;  %976 = vmatprep.subr.mxu1 %v342_v19  ;;  %v227_v16 = vld [vmem:[#allocation2 + $0x320] sm:$0xff]  ;;  %v6135_v19 = vld [vmem:[%s9448_s3 + $0xb0] sm:$0xff] }
  0xea   :  { %884 = vmatpush2.msra.mxu0 %v317_v18  ;;  %977 = vmatpush1.msra.mxu1 %v341_v22  ;;  %v6129_v18 = vld [vmem:[%s9448_s3 + $0x38] sm:$0xff]  ;;  %9822 = vst [vmem:[#allocation17_spill] sm:$0xff] %v6135_v19 }
  0xeb   :  { %885 = vmatprep.subr.mxu0 %v312_v20  ;;  %978 = vmatprep.subr.mxu1 %v336_v24  ;;  %v6142_v20 = vld [vmem:[%s9448_s3 + $0x30] sm:$0xff]  ;;  %v6147_v22 = vld [vmem:[%s9448_s3 + $0x1f8] sm:$0xff]  ;;  %v6164_v24 = vld [vmem:[%s9448_s3 + $0x28] sm:$0xff] }
  0xec   :  { %886 = vmatpush2.msra.mxu0 %v311_v23  ;;  %979 = vmatpush1.msra.mxu1 %v335_v26  ;;  %9823 = vst [vmem:[#allocation18_spill] sm:$0xff] %v6142_v20  ;;  %v5553_v23 = vld [vmem:[%s9445_s0 + $0x10] sm:$0xff]  ;;  %9825 = vst [vmem:[#allocation20_spill] sm:$0xff] %v6164_v24  ;;  %v6177_v26 = vld [vmem:[%s9448_s3 + $0x178] sm:$0xff] }
  0xed   :  { %887 = vmatprep.subr.mxu0 %v306_v25  ;;  %980 = vmatprep.subr.mxu1 %v330_v28  ;;  %v6172_v25 = vld [vmem:[%s9448_s3 + $0xa0] sm:$0xff]  ;;  %v6199_v28 = vld [vmem:[%s9448_s3 + $0x18] sm:$0xff] }
  0xee   :  { %888 = vmatpush2.msra.mxu0 %v305_v27  ;;  %981 = vmatpush1.msra.mxu1 %v329_v31  ;;  %9826 = vst [vmem:[#allocation21_spill] sm:$0xff] %v6172_v25  ;;  %v6192_v27 = vld [vmem:[%s9448_s3 + $0x98] sm:$0xff]  ;;  %9829 = vst [vmem:[#allocation24_spill] sm:$0xff] %v6199_v28  ;;  %v6211_v31 = vld [vmem:[%s9448_s3 + $0x90] sm:$0xff] }
  0xef   :  { %889 = vmatprep.subr.mxu0 %v300_v29  ;;  %915 = vmatprep.mubr.f32.mxu0 %v5941_v4  ;;  %9828 = vst [vmem:[#allocation23_spill] sm:$0xff] %v6192_v27  ;;  %v6204_v29 = vld [vmem:[%s9448_s3 + $0x1f0] sm:$0xff]  ;;  %9830 = vst [vmem:[#allocation25_spill] sm:$0xff] %v6211_v31 }
  0xf0   :  { %890 = vmatpush2.msra.mxu0 %v299_v32  ;;  %982 = vmatprep.subr.mxu1 %v324_v34  ;;  %v6218_v32 = vld [vmem:[%s9448_s3 + $0x10] sm:$0xff] }
  0xf1   :  { %891 = vmatprep.subr.mxu0 %v294_v33  ;;  %983 = vmatpush1.msra.mxu1 %v323_v36  ;;  %9831 = vst [vmem:[#allocation26_spill] sm:$0xff] %v6218_v32  ;;  %v6224_v33 = vld [vmem:[%s9448_s3 + $0x88] sm:$0xff]  ;;  %v6237_v34 = vld [vmem:[%s9448_s3 + $0x170] sm:$0xff] }
  0xf2   :  { %892 = vmatpush2.msra.mxu0 %v293_v35  ;;  %1016 = vmatprep.mubr.f32.mxu1 %v5859_v0  ;;  %9832 = vst [vmem:[#allocation27_spill] sm:$0xff] %v6224_v33  ;;  %v6251_v35 = vld [vmem:[%s9448_s3] sm:$0xff]  ;;  %v6258_v36 = vld [vmem:[%s9448_s3 + $0x1e8] sm:$0xff] }
  0xf3   :  { %893 = vmatprep.subr.mxu0 %v288_v37  ;;  %4125 = vmatprep.subr.mxu1 %v6023_v40  ;;  %9835 = vst [vmem:[#allocation30_spill] sm:$0xff] %v6251_v35  ;;  %v6270_v37 = vld [vmem:[%s9448_s3 + $0x168] sm:$0xff] }
  0xf4   :  { %894 = vmatpush2.msra.mxu0 %v287_v38  ;;  %1017 = vmatmul.mubr.f32.vlgmr.msra.gmra.mxu1 %v5935_v3  ;;  %v6053_v3 = vld [vmem:[%s9448_s3 + $0x68] sm:$0xff]  ;;  %v6277_v38 = vld [vmem:[%s9448_s3 + $0x1e0] sm:$0xff] }
  0xf5   :  { %895 = vmatprep.subr.mxu0 %v282_v41  ;;  %4126 = vmatpush3.msra.mxu1 %v6029_v43  ;;  %v6297_v41 = vld [vmem:[%s9448_s3 + $0x158] sm:$0xff] }
  0xf6   :  { %896 = vmatpush2.msra.mxu0 %v281_v42  ;;  %4127 = vmatprep.subr.mxu1 %v6035_v45  ;;  %v6303_v42 = vld [vmem:[%s9448_s3 + $0x1d0] sm:$0xff] }
  0xf7   :  { %897 = vmatprep.subr.mxu0 %v276_v44  ;;  %4128 = vmatpush3.msra.mxu1 %v6041_v47  ;;  %v6315_v44 = vld [vmem:[%s9448_s3 + $0x1c8] sm:$0xff] }
  0xf8   :  { %898 = vmatpush2.msra.mxu0 %v275_v46  ;;  %4129 = vmatprep.subr.mxu1 %v6047_v49  ;;  %9837 = vst [vmem:[#allocation32_spill] sm:$0xff] %v6315_v44  ;;  %v6321_v46 = vld [vmem:[%s9448_s3 + $0x148] sm:$0xff] }
  0xf9   :  { %899 = vmatprep.subr.mxu0 %v270_v48  ;;  %4130 = vmatpush3.msra.mxu1 %v6053_v3  ;;  %9838 = vst [vmem:[#allocation33_spill] sm:$0xff] %v6321_v46  ;;  %v6327_v48 = vld [vmem:[%s9448_s3 + $0x1c0] sm:$0xff] }
  0xfa   :  { %900 = vmatpush2.msra.mxu0 %v269_v50  ;;  %4131 = vmatprep.subr.mxu1 %v6059_v52  ;;  %9839 = vst [vmem:[#allocation34_spill] sm:$0xff] %v6327_v48  ;;  %v6333_v50 = vld [vmem:[%s9448_s3 + $0x140] sm:$0xff] }
  0xfb   :  { %901 = vmatprep.subr.mxu0 %v264_v51  ;;  %4132 = vmatpush3.msra.mxu1 %v6065_v55  ;;  %9840 = vst [vmem:[#allocation35_spill] sm:$0xff] %v6333_v50  ;;  %v6339_v51 = vld [vmem:[%s9448_s3 + $0x1b8] sm:$0xff] }
  0xfc   :  { %902 = vmatpush2.msra.mxu0 %v263_v53  ;;  %4133 = vmatprep.subr.mxu1 %v6071_v57  ;;  %9841 = vst [vmem:[#allocation36_spill] sm:$0xff] %v6339_v51  ;;  %v6345_v53 = vld [vmem:[%s9448_s3 + $0x138] sm:$0xff] }
  0xfd   :  { %903 = vmatprep.subr.mxu0 %v258_v56  ;;  %4134 = vmatpush3.msra.mxu1 %v6077_v59  ;;  %9842 = vst [vmem:[#allocation37_spill] sm:$0xff] %v6345_v53  ;;  %v6351_v56 = vld [vmem:[%s9448_s3 + $0x1b0] sm:$0xff] }
  0xfe   :  { %904 = vmatpush2.msra.mxu0 %v257_v58  ;;  %4135 = vmatprep.subr.mxu1 %v6083_v61  ;;  %9843 = vst [vmem:[#allocation38_spill] sm:$0xff] %v6351_v56  ;;  %v6357_v58 = vld [vmem:[%s9448_s3 + $0x130] sm:$0xff] }
  0xff   :  { %905 = vmatprep.subr.mxu0 %v252_v60  ;;  %1022 = vmatprep.mubr.f32.mxu1 %v5859_v0  ;;  %9844 = vst [vmem:[#allocation39_spill] sm:$0xff] %v6357_v58  ;;  %v6363_v60 = vld [vmem:[%s9448_s3 + $0x1a8] sm:$0xff] }
 0x100   :  { %906 = vmatpush2.msra.mxu0 %v251_v62  ;;  %4136 = vmatpush3.msra.mxu1 %v6090_v2  ;;  %9845 = vst [vmem:[#allocation40_spill] sm:$0xff] %v6363_v60  ;;  %v6369_v62 = vld [vmem:[%s9448_s3 + $0x128] sm:$0xff] }
 0x101   :  { %907 = vmatprep.subr.mxu0 %v246_v1  ;;  %1023 = vmatmul.mubr.f32.gmra.mxu1 %v5955_v21  ;;  %9846 = vst [vmem:[#allocation41_spill] sm:$0xff] %v6369_v62  ;;  %v6375_v1 = vld [vmem:[%s9448_s3 + $0x1a0] sm:$0xff] }
 0x102   :  { %908 = vmatpush2.msra.mxu0 %v245_v5  ;;  %4137 = vmatprep.subr.mxu1 %v6097_v8  ;;  %9847 = vst [vmem:[#allocation42_spill] sm:$0xff] %v6375_v1  ;;  %v6381_v5 = vld [vmem:[%s9448_s3 + $0x120] sm:$0xff] }
 0x103   :  { %909 = vmatprep.subr.mxu0 %v240_v7  ;;  %4138 = vmatpush3.msra.mxu1 %v6103_v10  ;;  %9848 = vst [vmem:[#allocation43_spill] sm:$0xff] %v6381_v5  ;;  %v6387_v7 = vld [vmem:[%s9448_s3 + $0x198] sm:$0xff] }
 0x104   :  { %910 = vmatpush2.msra.mxu0 %v239_v9  ;;  %4139 = vmatprep.subr.mxu1 %v6109_v12  ;;  %9849 = vst [vmem:[#allocation44_spill] sm:$0xff] %v6387_v7  ;;  %v6393_v9 = vld [vmem:[%s9448_s3 + $0x118] sm:$0xff] }
 0x105   :  { %911 = vmatprep.subr.mxu0 %v234_v11  ;;  %1028 = vmatprep.mubr.f32.mxu1 %v5859_v0  ;;  %9850 = vst [vmem:[#allocation45_spill] sm:$0xff] %v6393_v9  ;;  %v6399_v11 = vld [vmem:[%s9448_s3 + $0x190] sm:$0xff] }
 0x106   :  { %912 = vmatpush2.msra.mxu0 %v233_v13  ;;  %4140 = vmatpush3.msra.mxu1 %v6116_v15  ;;  %9851 = vst [vmem:[#allocation46_spill] sm:$0xff] %v6399_v11  ;;  %v6405_v13 = vld [vmem:[%s9448_s3 + $0x110] sm:$0xff] }
 0x107   :  { %913 = vmatprep.subr.mxu0 %v228_v14  ;;  %1029 = vmatmul.mubr.f32.gmra.mxu1 %v5964_v30  ;;  %9852 = vst [vmem:[#allocation47_spill] sm:$0xff] %v6405_v13  ;;  %v6411_v14 = vld [vmem:[%s9448_s3 + $0x188] sm:$0xff] }
 0x108   :  { %914 = vmatpush2.msra.mxu0 %v227_v16  ;;  %4141 = vmatprep.subr.mxu1 %v6123_v17  ;;  %9853 = vst [vmem:[#allocation48_spill] sm:$0xff] %v6411_v14  ;;  %v6417_v16 = vld [vmem:[%s9448_s3 + $0x108] sm:$0xff] }
 0x109   :  { %916 = vmatmul.mubr.f32.vlgmr.msra.gmra.mxu0 %v5946_v6  ;;  %4142 = vmatpush3.msra.mxu1 %v6129_v18  ;;  %v6158_v6 = vld [vmem:[%s9448_s3 + $0xa8] sm:$0xff]  ;;  %9854 = vst [vmem:[#allocation49_spill] sm:$0xff] %v6417_v16 }
 0x10a   :  { %921 = vmatprep.mubr.f32.mxu0 %v5553_v23  ;;  %4143 = vmatprep.subr.mxu1 %v6135_v19  ;;  %9824 = vst [vmem:[#allocation19_spill] sm:$0xff] %v6158_v6 }
 0x10b   :  { %1034 = vmatprep.mubr.f32.mxu1 %v5859_v0  ;;  %4144 = vmatpush3.msra.mxu1 %v6142_v20 }
 0x10c   :  { %4169 = vmatprep.subr.mxu0 %v6147_v22  ;;  %1035 = vmatmul.mubr.f32.gmra.mxu1 %v5973_v39 }
 0x10d   :  { %922 = vmatmul.mubr.f32.gmra.mxu0 %v5941_v4  ;;  %4145 = vmatprep.subr.mxu1 %v6158_v6  ;;  %v6184_v4 = vld [vmem:[%s9448_s3 + $0x20] sm:$0xff] }
 0x10e   :  { %927 = vmatprep.mubr.f32.mxu0 %v5955_v21  ;;  %9827 = vst [vmem:[#allocation22_spill] sm:$0xff] %v6184_v4  ;;  %4146 = vmatpush3.msra.mxu1 %v6164_v24 }
 0x10f   :  { %1040 = vmatprep.mubr.f32.mxu1 %v5859_v0  ;;  %4147 = vmatprep.subr.mxu1 %v6172_v25 }
 0x110   :  { %4170 = vmatpush3.msra.mxu0 %v6177_v26  ;;  %4148 = vmatpush3.msra.mxu1 %v6184_v4 }
 0x111   :  { %928 = vmatmul.mubr.f32.gmra.mxu0 %v5553_v23  ;;  %1041 = vmatmul.mubr.f32.gmra.mxu1 %v5982_v54  ;;  %v6423_v23 = vld [vmem:[%s9448_s3 + $0x180] sm:$0xff] }
 0x112   :  { %933 = vmatprep.mubr.f32.mxu0 %v5964_v30  ;;  %4149 = vmatprep.subr.mxu1 %v6192_v27  ;;  %9855 = vst [vmem:[#allocation50_spill] sm:$0xff] %v6423_v23 }
 0x113   :  { %1046 = vmatprep.mubr.f32.mxu1 %v5859_v0  ;;  %4150 = vmatpush3.msra.mxu1 %v6199_v28  ;;  %v6232_v0 = vld [vmem:[%s9448_s3 + $0x8] sm:$0xff] }
 0x114   :  { %4171 = vmatprep.subr.mxu0 %v6204_v29  ;;  %4151 = vmatprep.subr.mxu1 %v6211_v31  ;;  %9833 = vst [vmem:[#allocation28_spill] sm:$0xff] %v6232_v0 }
 0x115   :  { %934 = vmatmul.mubr.f32.gmra.mxu0 %v5955_v21  ;;  %4152 = vmatpush3.msra.mxu1 %v6218_v32  ;;  %v6244_v21 = vld [vmem:[%s9448_s3 + $0x80] sm:$0xff] }
 0x116   :  { %939 = vmatprep.mubr.f32.mxu0 %v5973_v39  ;;  %9834 = vst [vmem:[#allocation29_spill] sm:$0xff] %v6244_v21  ;;  %1047 = vmatmul.mubr.f32.gmra.mxu1 %v5991_v63  ;;  %v6263_v63 = vld [vmem:[%s9448_s3 + $0x2f8] sm:$0xff] }
 0x117   :  { %4153 = vmatprep.subr.mxu1 %v6224_v33  ;;  %4172 = vmatpush3.msra.mxu0 %v6237_v34  ;;  %9836 = vst [vmem:[#allocation31_spill] sm:$0xff] %v6263_v63 }
 0x118   :  { %4154 = vmatpush3.msra.mxu1 %v6232_v0  ;;  %4173 = vmatprep.subr.mxu0 %v6258_v36 }
 0x119   :  { %940 = vmatmul.mubr.f32.gmra.mxu0 %v5964_v30  ;;  %4155 = vmatprep.subr.mxu1 %v6244_v21  ;;  %v6284_v30 = vld [vmem:[%s9448_s3 + $0x160] sm:$0xff] }
 0x11a   :  { %945 = vmatprep.mubr.f32.mxu0 %v5982_v54  ;;  %4156 = vmatpush3.msra.mxu1 %v6251_v35  ;;  %v6290_v54 = vld [vmem:[%s9448_s3 + $0x1d8] sm:$0xff] }
 0x11b   :  { %4213 = vmatprep.subr.mxu1 %v6263_v63  ;;  %4174 = vmatpush3.msra.mxu0 %v6270_v37  ;;  %v6429_v63 = vld [vmem:[%s9448_s3 + $0x100] sm:$0xff] }
 0x11c   :  { %4175 = vmatprep.subr.mxu0 %v6277_v38  ;;  %9856 = vst [vmem:[#allocation51_spill] sm:$0xff] %v6429_v63 }
 0x11d   :  { %946 = vmatmul.mubr.f32.gmra.mxu0 %v5973_v39  ;;  %v6309_v39 = vld [vmem:[%s9448_s3 + $0x150] sm:$0xff] }
 0x11e   :  { %4176 = vmatpush3.msra.mxu0 %v6284_v30 }
 0x11f   :  { %4177 = vmatprep.subr.mxu0 %v6290_v54 }
 0x120   :  { %4178 = vmatpush3.msra.mxu0 %v6297_v41 }
 0x121   :  { %4179 = vmatprep.subr.mxu0 %v6303_v42 }
 0x122   :  { %4180 = vmatpush3.msra.mxu0 %v6309_v39 }
 0x123   :  { %4181 = vmatprep.subr.mxu0 %v6315_v44 }
 0x124   :  { %4182 = vmatpush3.msra.mxu0 %v6321_v46  ;;  %v6747_v46 = vld [vmem:[%s9448_s3 + $0x368] sm:$0xff] }
 0x125   :  { %4183 = vmatprep.subr.mxu0 %v6327_v48  ;;  %9905 = vst [vmem:[#allocation98_spill] sm:$0xff] %v6747_v46 }
 0x126   :  { %4184 = vmatpush3.msra.mxu0 %v6333_v50 }
 0x127   :  { %4185 = vmatprep.subr.mxu0 %v6339_v51 }
 0x128   :  { %4186 = vmatpush3.msra.mxu0 %v6345_v53 }
 0x129   :  { %4187 = vmatprep.subr.mxu0 %v6351_v56 }
 0x12a   :  { %4188 = vmatpush3.msra.mxu0 %v6357_v58 }
 0x12b   :  { %4189 = vmatprep.subr.mxu0 %v6363_v60 }
 0x12c   :  { %4190 = vmatpush3.msra.mxu0 %v6369_v62 }
 0x12d   :  { %4191 = vmatprep.subr.mxu0 %v6375_v1 }
 0x12e   :  { %4192 = vmatpush3.msra.mxu0 %v6381_v5 }
 0x12f   :  { %4193 = vmatprep.subr.mxu0 %v6387_v7 }
 0x130   :  { %4194 = vmatpush3.msra.mxu0 %v6393_v9  ;;  %v6445_v9 = vld [vmem:[#allocation4] sm:$0x3f] }
 0x131   :  { %4195 = vmatprep.subr.mxu0 %v6399_v11  ;;  %v6435_v11 = vld [vmem:[%s9448_s3 + $0x3f8] sm:$0xff] }
 0x132   :  { %4196 = vmatpush3.msra.mxu0 %v6405_v13  ;;  %9857 = vst [vmem:[#allocation52_spill] sm:$0xff] %v6435_v11  ;;  %v417_v13 = vlaneseq }
 0x133   :  { %4197 = vmatprep.subr.mxu0 %v6411_v14 }
 0x134   :  { %4198 = vmatpush3.msra.mxu0 %v6417_v16  ;;  %v6440_v14 = vshrl.u32 %v417_v13, 7 }
 0x135   :  { %4199 = vmatprep.subr.mxu0 %v6423_v23 }
 0x136   :  { %4200 = vmatpush3.msra.mxu0 %v6429_v63  ;;  %9858 = vst [vmem:[#allocation53_spill] sm:$0xff] %v6440_v14  ;;  %v6443_v35 = vsub.s32 0, %v6440_v14  ;;  %v6448_v16 = vsub.s32 1, %v6440_v14 }
 0x137   :  { %4257 = vmatprep.subr.mxu0 %v6435_v11  ;;  %v614_v11 = vpop.f32.mrf.mxu1 }
 0x138   :  { %9859 = vst [vmem:[#allocation54_spill] sm:$0xff] %v6443_v35  ;;  %9860 = vst [vmem:[#allocation55_spill] sm:$0xff] %v6448_v16  ;;  %v6452_v21 = vrot.slane %v6445_v9, %v6443_v35  ;;  %v6456_v63 = vrot.slane %v6445_v9, %v6448_v16  ;;  %v6467_v16 = vld [vmem:[%s9448_s3 + $0x278] sm:$0xff] }
 0x139   :  { %v616_v5 = vpop.f32.mrf.mxu1  ;;  %9862 = vst [vmem:[#allocation57_spill] sm:$0xff] %v6467_v16 }
 0x156   :  { %v513_v23 = vpop.f32.mrf.mxu0 }
 0x157   :  { %v514_v13 = vadd.f32 %v513_v23, %v6452_v21 }
 0x158   :  { %v515_v7 = vpop.f32.mrf.mxu0 }
 0x159   :  { %v516_v0 = vadd.f32 %v515_v7, %v6456_v63  ;;  %v615_v33 = vadd.f32 %v614_v11, %v514_v13 }
 0x15b   :  { %v6460_v1 = vadd.f32 %v616_v5, %v516_v0  ;;  %v1053_v31 = vmax.f32 %v615_v33, 0.0  ;;  %v6475_v0 = vld [vmem:[%s9448_s3 + $0x2f0] sm:$0xff] }
 0x15c   :  { %v519_v32 = vpop.f32.mrf.mxu0  ;;  %9863 = vst [vmem:[#allocation58_spill] sm:$0xff] %v6475_v0  ;;  %v6480_v33 = vld [vmem:[%s9448_s3 + $0x270] sm:$0xff] }
 0x15d   :  { %9861 = vst [vmem:[#allocation56_spill] sm:$0xff] %v6460_v1  ;;  %v520_v62 = vadd.f32 %v519_v32, %v6452_v21  ;;  %v9480_v35 = vmax.f32 %v6460_v1, 0.0  ;;  %9864 = vst [vmem:[#allocation59_spill] sm:$0xff] %v6480_v33  ;;  %v6672_v1 = vld [vmem:[%s9448_s3 + $0x280] sm:$0xff] }
 0x15e   :  { %v521_v60 = vpop.f32.mrf.mxu0  ;;  %9891 = vst [vmem:[#allocation86_spill] sm:$0xff] %v6672_v1 }
 0x15f   :  { %v522_v23 = vadd.f32 %v521_v60, %v6456_v63  ;;  %v620_v28 = vpop.f32.mrf.mxu1  ;;  %1297 = vmatprep.mubr.f32.mxu1 %v9480_v35  ;;  %v6486_v60 = vld [vmem:[%s9448_s3 + $0x2e8] sm:$0xff] }
 0x160   :  { %v621_v32 = vadd.f32 %v620_v28, %v520_v62  ;;  %1298 = vmatmul.mubr.f32.vlgmr.msra.gmra.mxu1 %v1053_v31  ;;  %9865 = vst [vmem:[#allocation60_spill] sm:$0xff] %v6486_v60  ;;  %v6492_v28 = vld [vmem:[%s9448_s3 + $0x268] sm:$0xff]  ;;  %v6499_v62 = vld [vmem:[%s9448_s3 + $0x2e0] sm:$0xff] }
 0x161   :  { %v622_v5 = vpop.f32.mrf.mxu1  ;;  %4214 = vmatpush3.msra.mxu1 %v6467_v16  ;;  %9866 = vst [vmem:[#allocation61_spill] sm:$0xff] %v6492_v28  ;;  %9867 = vst [vmem:[#allocation62_spill] sm:$0xff] %v6499_v62 }
 0x162   :  { %v1059_v7 = vmax.f32 %v621_v32, 0.0  ;;  %v525_v11 = vpop.f32.mrf.mxu0  ;;  %v623_v13 = vadd.f32 %v622_v5, %v522_v23  ;;  %4215 = vmatprep.subr.mxu1 %v6475_v0 }
 0x163   :  { %v526_v31 = vadd.f32 %v525_v11, %v6452_v21  ;;  %4216 = vmatpush3.msra.mxu1 %v6480_v33  ;;  %v6509_v11 = vld [vmem:[%s9448_s3 + $0x260] sm:$0xff] }
 0x164   :  { %v6501_v35 = vmax.f32 %v623_v13, 0.0  ;;  %v527_v32 = vpop.f32.mrf.mxu0  ;;  %4217 = vmatprep.subr.mxu1 %v6486_v60  ;;  %1382 = vmatprep.mubr.f32.mxu0 %v1059_v7  ;;  %9868 = vst [vmem:[#allocation63_spill] sm:$0xff] %v6509_v11  ;;  %v6516_v13 = vld [vmem:[%s9448_s3 + $0x2d8] sm:$0xff] }
 0x165   :  { %v528_v23 = vadd.f32 %v527_v32, %v6456_v63  ;;  %v626_v5 = vpop.f32.mrf.mxu1  ;;  %4218 = vmatpush3.msra.mxu1 %v6492_v28  ;;  %9869 = vst [vmem:[#allocation64_spill] sm:$0xff] %v6516_v13  ;;  %v6521_v32 = vld [vmem:[%s9448_s3 + $0x258] sm:$0xff] }
 0x166   :  { %v627_v33 = vadd.f32 %v626_v5, %v526_v31  ;;  %1302 = vmatprep.mubr.f32.mxu1 %v6501_v35  ;;  %4219 = vmatprep.subr.mxu1 %v6499_v62  ;;  %9870 = vst [vmem:[#allocation65_spill] sm:$0xff] %v6521_v32  ;;  %v6527_v31 = vld [vmem:[%s9448_s3 + $0x2d0] sm:$0xff] }
 0x167   :  { %v628_v60 = vpop.f32.mrf.mxu1  ;;  %1303 = vmatmul.mubr.f32.gmra.mxu1 %v1059_v7  ;;  %9871 = vst [vmem:[#allocation66_spill] sm:$0xff] %v6527_v31  ;;  %v6536_v7 = vld [vmem:[%s9448_s3 + $0x250] sm:$0xff] }
 0x168   :  { %v531_v28 = vpop.f32.mrf.mxu0  ;;  %v629_v0 = vadd.f32 %v628_v60, %v528_v23  ;;  %4220 = vmatpush3.msra.mxu1 %v6509_v11  ;;  %v6529_v5 = vmax.f32 %v627_v33, 0.0  ;;  %9872 = vst [vmem:[#allocation67_spill] sm:$0xff] %v6536_v7  ;;  %v6544_v23 = vld [vmem:[%s9448_s3 + $0x2c8] sm:$0xff] }
 0x169   :  { %v532_v62 = vadd.f32 %v531_v28, %v6452_v21  ;;  %4221 = vmatprep.subr.mxu1 %v6516_v13  ;;  %9873 = vst [vmem:[#allocation68_spill] sm:$0xff] %v6544_v23  ;;  %v6551_v13 = vld [vmem:[%s9448_s3 + $0x248] sm:$0xff] }
 0x16a   :  { %v6538_v16 = vmax.f32 %v629_v0, 0.0  ;;  %v533_v60 = vpop.f32.mrf.mxu0  ;;  %4222 = vmatpush3.msra.mxu1 %v6521_v32  ;;  %9874 = vst [vmem:[#allocation69_spill] sm:$0xff] %v6551_v13  ;;  %v6558_v32 = vld [vmem:[%s9448_s3 + $0x2c0] sm:$0xff] }
 0x16b   :  { %v534_v33 = vadd.f32 %v533_v60, %v6456_v63  ;;  %v632_v28 = vpop.f32.mrf.mxu1  ;;  %4223 = vmatprep.subr.mxu1 %v6527_v31  ;;  %9875 = vst [vmem:[#allocation70_spill] sm:$0xff] %v6558_v32  ;;  %v6565_v60 = vld [vmem:[%s9448_s3 + $0x240] sm:$0xff] }
 0x16c   :  { %v633_v0 = vadd.f32 %v632_v28, %v532_v62  ;;  %1307 = vmatprep.mubr.f32.mxu1 %v6538_v16  ;;  %4224 = vmatpush3.msra.mxu1 %v6536_v7  ;;  %9876 = vst [vmem:[#allocation71_spill] sm:$0xff] %v6565_v60  ;;  %v6571_v28 = vld [vmem:[%s9448_s3 + $0x2b8] sm:$0xff] }
 0x16d   :  { %v634_v11 = vpop.f32.mrf.mxu1  ;;  %1308 = vmatmul.mubr.f32.gmra.mxu1 %v6529_v5  ;;  %4225 = vmatprep.subr.mxu1 %v6544_v23  ;;  %9877 = vst [vmem:[#allocation72_spill] sm:$0xff] %v6571_v28  ;;  %v6579_v23 = vld [vmem:[%s9448_s3 + $0x238] sm:$0xff] }
 0x16e   :  { %v635_v62 = vadd.f32 %v634_v11, %v534_v33  ;;  %4226 = vmatpush3.msra.mxu1 %v6551_v13  ;;  %v6573_v7 = vmax.f32 %v633_v0, 0.0  ;;  %9878 = vst [vmem:[#allocation73_spill] sm:$0xff] %v6579_v23  ;;  %v6587_v11 = vld [vmem:[%s9448_s3 + $0x2b0] sm:$0xff]  ;;  %v6600_v0 = vld [vmem:[%s9448_s3 + $0x2a8] sm:$0xff] }
 0x16f   :  { %4227 = vmatprep.subr.mxu1 %v6558_v32  ;;  %9879 = vst [vmem:[#allocation74_spill] sm:$0xff] %v6587_v11  ;;  %v6593_v33 = vld [vmem:[%s9448_s3 + $0x230] sm:$0xff]  ;;  %9881 = vst [vmem:[#allocation76_spill] sm:$0xff] %v6600_v0  ;;  %v6627_v32 = vld [vmem:[%s9448_s3 + $0x298] sm:$0xff] }
 0x170   :  { %v6581_v31 = vmax.f32 %v635_v62, 0.0  ;;  %4228 = vmatpush3.msra.mxu1 %v6565_v60  ;;  %9880 = vst [vmem:[#allocation75_spill] sm:$0xff] %v6593_v33  ;;  %v6607_v62 = vld [vmem:[%s9448_s3 + $0x228] sm:$0xff]  ;;  %9885 = vst [vmem:[#allocation80_spill] sm:$0xff] %v6627_v32 }
 0x171   :  { %4229 = vmatprep.subr.mxu1 %v6571_v28  ;;  %9882 = vst [vmem:[#allocation77_spill] sm:$0xff] %v6607_v62 }
 0x172   :  { %1312 = vmatprep.mubr.f32.mxu1 %v6581_v31  ;;  %4230 = vmatpush3.msra.mxu1 %v6579_v23  ;;  %v537_v28 = vpop.f32.mrf.mxu0  ;;  %v6615_v23 = vld [vmem:[%s9448_s3 + $0x2a0] sm:$0xff] }
 0x173   :  { %1313 = vmatmul.mubr.f32.gmra.mxu1 %v6573_v7  ;;  %4231 = vmatprep.subr.mxu1 %v6587_v11  ;;  %9883 = vst [vmem:[#allocation78_spill] sm:$0xff] %v6615_v23  ;;  %v6621_v11 = vld [vmem:[%s9448_s3 + $0x220] sm:$0xff] }
 0x174   :  { %v6609_v60 = vpop.f32.mrf.mxu1  ;;  %4232 = vmatpush3.msra.mxu1 %v6593_v33  ;;  %9884 = vst [vmem:[#allocation79_spill] sm:$0xff] %v6621_v11  ;;  %v6637_v13 = vpop.f32.mrf.mxu0 }
 0x175   :  { %4233 = vmatprep.subr.mxu1 %v6600_v0  ;;  %v6635_v0 = vld [vmem:[%s9448_s3 + $0x218] sm:$0xff] }
 0x176   :  { %4234 = vmatpush3.msra.mxu1 %v6607_v62  ;;  %v6629_v33 = vpop.f32.mrf.mxu1  ;;  %9886 = vst [vmem:[#allocation81_spill] sm:$0xff] %v6635_v0  ;;  %v6643_v62 = vld [vmem:[%s9448_s3 + $0x290] sm:$0xff] }
 0x177   :  { %4235 = vmatprep.subr.mxu1 %v6615_v23  ;;  %9887 = vst [vmem:[#allocation82_spill] sm:$0xff] %v6643_v62  ;;  %v6649_v23 = vld [vmem:[%s9448_s3 + $0x210] sm:$0xff] }
 0x178   :  { %4236 = vmatpush3.msra.mxu1 %v6621_v11  ;;  %9888 = vst [vmem:[#allocation83_spill] sm:$0xff] %v6649_v23  ;;  %v6656_v11 = vld [vmem:[%s9448_s3 + $0x288] sm:$0xff]  ;;  %v6666_v27 = vpop.f32.mrf.mxu0 }
 0x179   :  { %4237 = vmatprep.subr.mxu1 %v6627_v32  ;;  %9889 = vst [vmem:[#allocation84_spill] sm:$0xff] %v6656_v11  ;;  %v6664_v32 = vld [vmem:[%s9448_s3 + $0x208] sm:$0xff] }
 0x17a   :  { %4238 = vmatpush3.msra.mxu1 %v6635_v0  ;;  %v6658_v58 = vpop.f32.mrf.mxu1  ;;  %9890 = vst [vmem:[#allocation85_spill] sm:$0xff] %v6664_v32  ;;  %v9893_v0 = vsub.s32 2, %v6440_v14 }
 0x17b   :  { %4239 = vmatprep.subr.mxu1 %v6643_v62  ;;  %v6678_v62 = vld [vmem:[%s9448_s3 + $0x200] sm:$0xff] }
 0x17c   :  { %4240 = vmatpush3.msra.mxu1 %v6649_v23  ;;  %9892 = vst [vmem:[#allocation87_spill] sm:$0xff] %v6678_v62  ;;  %v6683_v56 = vrot.slane %v6445_v9, %v9893_v0  ;;  %v6689_v23 = vld [vmem:[%s9448_s3 + $0x478] sm:$0xff]  ;;  %v6691_v4 = vpop.f32.mrf.mxu1 }
 0x17d   :  { %4241 = vmatprep.subr.mxu1 %v6656_v11  ;;  %9894 = vst [vmem:[#allocation88_spill] sm:$0xff] %v6689_v23  ;;  %v6694_v11 = vpop.f32.mrf.mxu0 }
 0x17e   :  { %4242 = vmatpush3.msra.mxu1 %v6664_v32 }
 0x17f   :  { %4243 = vmatprep.subr.mxu1 %v6672_v1 }
 0x180   :  { %4244 = vmatpush3.msra.mxu1 %v6678_v62  ;;  %v6710_v62 = vld [vmem:[%s9448_s3 + $0x378] sm:$0xff] }
 0x181   :  { %5319 = vmatprep.subr.mxu1 %v6689_v23  ;;  %9897 = vst [vmem:[#allocation91_spill] sm:$0xff] %v6710_v62 }
 0x182   :  { %v715_v53 = vpop.f32.mrf.mxu1  ;;  %v816_v25 = vpop.f32.mrf.mxu0 }
 0x183   :  { %v716_v0 = vadd.f32 %v715_v53, %v6683_v56 }
 0x184   :  { %v6699_v32 = vpop.f32.mrf.mxu1  ;;  %v6701_v24 = vpop.f32.mrf.mxu0 }
 0x185   :  { %9895 = vst [vmem:[#allocation89_spill] sm:$0xff] %v6699_v32  ;;  %v817_v51 = vadd.f32 %v816_v25, %v716_v0  ;;  %9896 = vst [vmem:[#allocation90_spill] sm:$0xff] %v6701_v24  ;;  %v6717_v25 = vld [vmem:[%s9448_s3 + $0x3f0] sm:$0xff] }
 0x186   :  { %v721_v50 = vpop.f32.mrf.mxu1  ;;  %9899 = vst [vmem:[#allocation93_spill] sm:$0xff] %v6717_v25 }
 0x187   :  { %v6703_v6 = vmax.f32 %v817_v51, 0.0  ;;  %v722_v48 = vadd.f32 %v721_v50, %v6683_v56  ;;  %v822_v20 = vpop.f32.mrf.mxu0  ;;  %v6725_v50 = vld [vmem:[%s9448_s3 + $0x370] sm:$0xff] }
 0x188   :  { %v6712_v53 = vpop.f32.mrf.mxu1  ;;  %9901 = vst [vmem:[#allocation95_spill] sm:$0xff] %v6725_v50 }
 0x189   :  { %9898 = vst [vmem:[#allocation92_spill] sm:$0xff] %v6712_v53  ;;  %v823_v0 = vadd.f32 %v822_v20, %v722_v48  ;;  %v6719_v51 = vpop.f32.mrf.mxu0  ;;  %1383 = vmatmul.mubr.f32.vlgmr.msra.gmra.mxu0 %v6703_v6  ;;  %v6732_v53 = vld [vmem:[%s9448_s3 + $0x3e8] sm:$0xff]  ;;  %v538_v20 = vadd.f32 %v537_v28, %v6452_v21  ;;  %v9903_v48 = vsub.s32 3, %v6440_v14 }
 0x18a   :  { %9900 = vst [vmem:[#allocation94_spill] sm:$0xff] %v6719_v51  ;;  %4258 = vmatpush3.msra.mxu0 %v6710_v62  ;;  %v727_v1 = vpop.f32.mrf.mxu1  ;;  %1387 = vmatprep.mubr.f32.mxu0 %v6529_v5  ;;  %9902 = vst [vmem:[#allocation96_spill] sm:$0xff] %v6732_v53 }
 0x18b   :  { %v6738_v51 = vrot.slane %v6445_v9, %v9903_v48  ;;  %v6740_v24 = vmax.f32 %v823_v0, 0.0  ;;  %v728_v32 = vadd.f32 %v727_v1, %v6683_v56  ;;  %4259 = vmatprep.subr.mxu0 %v6717_v25  ;;  %v828_v62 = vpop.f32.mrf.mxu0  ;;  %v6756_v1 = vld [vmem:[%s9448_s3 + $0x3e0] sm:$0xff] }
 0x18c   :  { %4260 = vmatpush3.msra.mxu0 %v6725_v50  ;;  %v729_v28 = vpop.f32.mrf.mxu1  ;;  %9906 = vst [vmem:[#allocation99_spill] sm:$0xff] %v6756_v1 }
 0x18d   :  { %9904 = vst [vmem:[#allocation97_spill] sm:$0xff] %v6740_v24  ;;  %v730_v19 = vadd.f32 %v729_v28, %v6738_v51  ;;  %v829_v44 = vadd.f32 %v828_v62, %v728_v32  ;;  %4261 = vmatprep.subr.mxu0 %v6732_v53  ;;  %1388 = vmatmul.mubr.f32.gmra.mxu0 %v6740_v24  ;;  %v830_v0 = vpop.f32.mrf.mxu0  ;;  %v6763_v28 = vld [vmem:[%s9448_s3 + $0x360] sm:$0xff]  ;;  %v6768_v32 = vld [vmem:[%s9448_s3 + $0x470] sm:$0xff] }
 0x18e   :  { %1467 = vmatprep.mubr.f32.mxu1 %v6740_v24  ;;  %4262 = vmatpush3.msra.mxu0 %v6747_v46  ;;  %v733_v48 = vpop.f32.mrf.mxu1  ;;  %9907 = vst [vmem:[#allocation100_spill] sm:$0xff] %v6763_v28  ;;  %9908 = vst [vmem:[#allocation101_spill] sm:$0xff] %v6768_v32  ;;  %v6771_v62 = vadd.f32 %v6609_v60, %v538_v20  ;;  %v6783_v24 = vld [vmem:[%s9448_s3 + $0x3d8] sm:$0xff] }
 0x18f   :  { %v6773_v53 = vmax.f32 %v829_v44, 0.0  ;;  %v734_v50 = vadd.f32 %v733_v48, %v6683_v56  ;;  %v6776_v25 = vadd.f32 %v830_v0, %v730_v19  ;;  %1392 = vmatprep.mubr.f32.mxu0 %v6573_v7  ;;  %1468 = vmatmul.mubr.f32.vlgmr.msra.gmra.mxu1 %v6501_v35  ;;  %v834_v46 = vpop.f32.mrf.mxu0  ;;  %9910 = vst [vmem:[#allocation103_spill] sm:$0xff] %v6783_v24  ;;  %v6793_v20 = vld [vmem:[%s9448_s3 + $0x358] sm:$0xff]  ;;  %v6798_v0 = vld [vmem:[%s9448_s3 + $0x468] sm:$0xff] }
 0x190   :  { %4263 = vmatprep.subr.mxu0 %v6756_v1  ;;  %5320 = vmatpush3.msra.mxu1 %v6689_v23  ;;  %v735_v44 = vpop.f32.mrf.mxu1  ;;  %9911 = vst [vmem:[#allocation104_spill] sm:$0xff] %v6793_v20  ;;  %9912 = vst [vmem:[#allocation105_spill] sm:$0xff] %v6798_v0 }
 0x191   :  { %9909 = vst [vmem:[#allocation102_spill] sm:$0xff] %v6776_v25  ;;  %4264 = vmatpush3.msra.mxu0 %v6763_v28  ;;  %5321 = vmatprep.subr.mxu1 %v6768_v32  ;;  %v736_v19 = vadd.f32 %v735_v44, %v6738_v51  ;;  %v835_v60 = vadd.f32 %v834_v46, %v734_v50  ;;  %v836_v48 = vpop.f32.mrf.mxu0  ;;  %v6811_v44 = vld [vmem:[%s9448_s3 + $0x3d0] sm:$0xff] }
 0x192   :  { %4265 = vmatprep.subr.mxu0 %v6783_v24  ;;  %5322 = vmatpush3.msra.mxu1 %v6768_v32  ;;  %v739_v23 = vpop.f32.mrf.mxu1  ;;  %v6818_v28 = vld [vmem:[%s9448_s3 + $0x350] sm:$0xff]  ;;  %v9915_v32 = vmax.f32 %v6771_v62, 0.0  ;;  %v540_v25 = vadd.f32 %v6637_v13, %v6456_v63 }
 0x193   :  { %1393 = vmatmul.mubr.f32.gmra.mxu0 %v6773_v53  ;;  %1472 = vmatprep.mubr.f32.mxu1 %v6773_v53  ;;  %v740_v46 = vadd.f32 %v739_v23, %v6683_v56  ;;  %v6806_v50 = vadd.f32 %v836_v48, %v736_v19  ;;  %v840_v1 = vpop.f32.mrf.mxu0  ;;  %v6823_v23 = vld [vmem:[%s9448_s3 + $0x460] sm:$0xff]  ;;  %v6825_v48 = vmax.f32 %v835_v60, 0.0  ;;  %v6845_v60 = vld [vmem:[%s9448_s3 + $0x348] sm:$0xff] }
 0x194   :  { %4266 = vmatpush3.msra.mxu0 %v6793_v20  ;;  %5323 = vmatprep.subr.mxu1 %v6798_v0  ;;  %9914 = vst [vmem:[#allocation107_spill] sm:$0xff] %v6823_v23  ;;  %v741_v19 = vpop.f32.mrf.mxu1 }
 0x195   :  { %9913 = vst [vmem:[#allocation106_spill] sm:$0xff] %v6806_v50  ;;  %1397 = vmatprep.mubr.f32.mxu0 %v9915_v32  ;;  %1473 = vmatmul.mubr.f32.gmra.mxu1 %v6538_v16  ;;  %v6833_v50 = vld [vmem:[%s9448_s3 + $0x3c8] sm:$0xff]  ;;  %v742_v20 = vadd.f32 %v741_v19, %v6738_v51  ;;  %v842_v24 = vpop.f32.mrf.mxu0  ;;  %v841_v32 = vadd.f32 %v840_v1, %v740_v46  ;;  %v6850_v19 = vld [vmem:[%s9448_s3 + $0x458] sm:$0xff]  ;;  %v6859_v1 = vld [vmem:[%s9448_s3 + $0x3c0] sm:$0xff] }
 0x196   :  { %4267 = vmatprep.subr.mxu0 %v6811_v44  ;;  %5324 = vmatpush3.msra.mxu1 %v6798_v0  ;;  %9916 = vst [vmem:[#allocation108_spill] sm:$0xff] %v6850_v19  ;;  %v641_v46 = vadd.f32 %v6629_v33, %v540_v25  ;;  %v6883_v33 = vld [vmem:[%s9448_s3 + $0x3b8] sm:$0xff]  ;;  %v6913_v0 = vld [vmem:[%s9448_s3 + $0x330] sm:$0xff] }
 0x197   :  { %4268 = vmatpush3.msra.mxu0 %v6818_v28  ;;  %5325 = vmatprep.subr.mxu1 %v6823_v23  ;;  %v6852_v13 = vadd.f32 %v842_v24, %v742_v20  ;;  %v6869_v24 = vld [vmem:[%s9448_s3 + $0x340] sm:$0xff]  ;;  %v6874_v20 = vld [vmem:[%s9448_s3 + $0x450] sm:$0xff]  ;;  %9920 = vst [vmem:[#allocation112_spill] sm:$0xff] %v6883_v33  ;;  %v6890_v25 = vld [vmem:[%s9448_s3 + $0x338] sm:$0xff] }
 0x198   :  { %4269 = vmatprep.subr.mxu0 %v6833_v50  ;;  %5326 = vmatpush3.msra.mxu1 %v6823_v23  ;;  %9918 = vst [vmem:[#allocation110_spill] sm:$0xff] %v6869_v24  ;;  %9919 = vst [vmem:[#allocation111_spill] sm:$0xff] %v6874_v20  ;;  %v6899_v23 = vmax.f32 %v641_v46, 0.0  ;;  %v6918_v46 = vld [vmem:[%s9448_s3 + $0x440] sm:$0xff] }
 0x199   :  { %9917 = vst [vmem:[#allocation109_spill] sm:$0xff] %v6852_v13  ;;  %1398 = vmatmul.mubr.f32.gmra.mxu0 %v6825_v48  ;;  %1477 = vmatprep.mubr.f32.mxu1 %v6825_v48  ;;  %v6876_v13 = vmax.f32 %v841_v32, 0.0  ;;  %9921 = vst [vmem:[#allocation113_spill] sm:$0xff] %v6890_v25  ;;  %v6897_v32 = vld [vmem:[%s9448_s3 + $0x448] sm:$0xff] }
 0x19a   :  { %4270 = vmatpush3.msra.mxu0 %v6845_v60  ;;  %5327 = vmatprep.subr.mxu1 %v6850_v19  ;;  %9922 = vst [vmem:[#allocation114_spill] sm:$0xff] %v6897_v32  ;;  %9924 = vst [vmem:[#allocation116_spill] sm:$0xff] %v6913_v0 }
 0x19b   :  { %1478 = vmatmul.mubr.f32.gmra.mxu1 %v6581_v31  ;;  %4271 = vmatprep.subr.mxu0 %v6859_v1  ;;  %9925 = vst [vmem:[#allocation117_spill] sm:$0xff] %v6918_v46 }
 0x19c   :  { %1552 = vmatprep.mubr.f32.mxu0 %v6538_v16  ;;  %5328 = vmatpush3.msra.mxu1 %v6850_v19  ;;  %v6906_v19 = vld [vmem:[%s9448_s3 + $0x3b0] sm:$0xff] }
 0x19d   :  { %4272 = vmatpush3.msra.mxu0 %v6869_v24  ;;  %5329 = vmatprep.subr.mxu1 %v6874_v20  ;;  %9923 = vst [vmem:[#allocation115_spill] sm:$0xff] %v6906_v19  ;;  %v7020_v24 = vld [vmem:[%s9448_s3 + $0x380] sm:$0xff] }
 0x19e   :  { %4273 = vmatprep.subr.mxu0 %v6883_v33  ;;  %5330 = vmatpush3.msra.mxu1 %v6874_v20  ;;  %v6925_v20 = vld [vmem:[%s9448_s3 + $0x3a8] sm:$0xff]  ;;  %v6937_v33 = vld [vmem:[%s9448_s3 + $0x438] sm:$0xff]  ;;  %9940 = vst [vmem:[#allocation132_spill] sm:$0xff] %v7020_v24 }
 0x19f   :  { %1482 = vmatprep.mubr.f32.mxu1 %v6876_v13  ;;  %4274 = vmatpush3.msra.mxu0 %v6890_v25  ;;  %9926 = vst [vmem:[#allocation118_spill] sm:$0xff] %v6925_v20  ;;  %v6932_v25 = vld [vmem:[%s9448_s3 + $0x328] sm:$0xff]  ;;  %9928 = vst [vmem:[#allocation120_spill] sm:$0xff] %v6937_v33 }
 0x1a0   :  { %5331 = vmatprep.subr.mxu1 %v6897_v32  ;;  %1483 = vmatmul.mubr.f32.gmra.mxu1 %v6899_v23  ;;  %9927 = vst [vmem:[#allocation119_spill] sm:$0xff] %v6932_v25 }
 0x1a1   :  { %4275 = vmatprep.subr.mxu0 %v6906_v19  ;;  %5332 = vmatpush3.msra.mxu1 %v6897_v32  ;;  %v6944_v19 = vld [vmem:[%s9448_s3 + $0x3a0] sm:$0xff] }
 0x1a2   :  { %4276 = vmatpush3.msra.mxu0 %v6913_v0  ;;  %5333 = vmatprep.subr.mxu1 %v6918_v46  ;;  %9929 = vst [vmem:[#allocation121_spill] sm:$0xff] %v6944_v19  ;;  %v6951_v32 = vld [vmem:[%s9448_s3 + $0x320] sm:$0xff]  ;;  %v6956_v0 = vld [vmem:[%s9448_s3 + $0x430] sm:$0xff] }
 0x1a3   :  { %4277 = vmatprep.subr.mxu0 %v6925_v20  ;;  %5334 = vmatpush3.msra.mxu1 %v6918_v46  ;;  %9930 = vst [vmem:[#allocation122_spill] sm:$0xff] %v6951_v32  ;;  %9931 = vst [vmem:[#allocation123_spill] sm:$0xff] %v6956_v0  ;;  %v6963_v20 = vld [vmem:[%s9448_s3 + $0x398] sm:$0xff] }
 0x1a4   :  { %4278 = vmatpush3.msra.mxu0 %v6932_v25  ;;  %5335 = vmatprep.subr.mxu1 %v6937_v33  ;;  %9932 = vst [vmem:[#allocation124_spill] sm:$0xff] %v6963_v20  ;;  %v6970_v46 = vld [vmem:[%s9448_s3 + $0x318] sm:$0xff]  ;;  %v6975_v25 = vld [vmem:[%s9448_s3 + $0x428] sm:$0xff] }
 0x1a5   :  { %4279 = vmatprep.subr.mxu0 %v6944_v19  ;;  %5336 = vmatpush3.msra.mxu1 %v6937_v33  ;;  %9933 = vst [vmem:[#allocation125_spill] sm:$0xff] %v6970_v46  ;;  %9934 = vst [vmem:[#allocation126_spill] sm:$0xff] %v6975_v25  ;;  %v6982_v19 = vld [vmem:[%s9448_s3 + $0x390] sm:$0xff] }
 0x1a6   :  { %4280 = vmatpush3.msra.mxu0 %v6951_v32  ;;  %5337 = vmatprep.subr.mxu1 %v6956_v0  ;;  %9935 = vst [vmem:[#allocation127_spill] sm:$0xff] %v6982_v19  ;;  %v6989_v33 = vld [vmem:[%s9448_s3 + $0x310] sm:$0xff]  ;;  %v6996_v32 = vld [vmem:[%s9448_s3 + $0x420] sm:$0xff] }
 0x1a7   :  { %4281 = vmatprep.subr.mxu0 %v6963_v20  ;;  %5338 = vmatpush3.msra.mxu1 %v6956_v0  ;;  %9936 = vst [vmem:[#allocation128_spill] sm:$0xff] %v6989_v33  ;;  %9937 = vst [vmem:[#allocation129_spill] sm:$0xff] %v6996_v32  ;;  %v7001_v20 = vld [vmem:[%s9448_s3 + $0x388] sm:$0xff] }
 0x1a8   :  { %4282 = vmatpush3.msra.mxu0 %v6970_v46  ;;  %5339 = vmatprep.subr.mxu1 %v6975_v25  ;;  %v7008_v0 = vld [vmem:[%s9448_s3 + $0x308] sm:$0xff]  ;;  %v7015_v46 = vld [vmem:[%s9448_s3 + $0x418] sm:$0xff] }
 0x1a9   :  { %5351 = vmatprep.mubr.f32.mxu1 %v6773_v53  ;;  %4283 = vmatprep.subr.mxu0 %v6982_v19  ;;  %9938 = vst [vmem:[#allocation130_spill] sm:$0xff] %v7008_v0  ;;  %9939 = vst [vmem:[#allocation131_spill] sm:$0xff] %v7015_v46  ;;  %v745_v19 = vpop.f32.mrf.mxu1 }
 0x1aa   :  { %5340 = vmatpush3.msra.mxu1 %v6975_v25  ;;  %4284 = vmatpush3.msra.mxu0 %v6989_v33  ;;  %v7027_v25 = vld [vmem:[%s9448_s3 + $0x300] sm:$0xff]  ;;  %v7034_v33 = vld [vmem:[%s9448_s3 + $0x410] sm:$0xff] }
 0x1ab   :  { %5341 = vmatprep.subr.mxu1 %v6996_v32  ;;  %4285 = vmatprep.subr.mxu0 %v7001_v20  ;;  %9941 = vst [vmem:[#allocation133_spill] sm:$0xff] %v7027_v25 }
 0x1ac   :  { %5342 = vmatpush3.msra.mxu1 %v6996_v32  ;;  %4286 = vmatpush3.msra.mxu0 %v7008_v0  ;;  %v7043_v32 = vld [vmem:[%s9448_s3 + $0x408] sm:$0xff]  ;;  %v546_v0 = vadd.f32 %v6694_v11, %v6456_v63  ;;  %v544_v63 = vadd.f32 %v6666_v27, %v6452_v21 }
 0x1ad   :  { %5343 = vmatprep.subr.mxu1 %v7015_v46  ;;  %4287 = vmatprep.subr.mxu0 %v7020_v24  ;;  %v746_v24 = vadd.f32 %v745_v19, %v6683_v56  ;;  %v9950_v21 = vld [vmem:[#allocation20_spill] sm:$0xff]  ;;  %v9956_v56 = vld [vmem:[#allocation23_spill] sm:$0xff] }
 0x1ae   :  { %5344 = vmatpush3.msra.mxu1 %v7015_v46  ;;  %4288 = vmatpush3.msra.mxu0 %v7027_v25  ;;  %v7053_v46 = vld [vmem:[%s9448_s3 + $0x400] sm:$0xff]  ;;  %v846_v25 = vpop.f32.mrf.mxu0 }
 0x1af   :  { %5345 = vmatprep.subr.mxu1 %v7034_v33  ;;  %1553 = vmatmul.mubr.f32.vlgmr.msra.gmra.mxu0 %v6529_v5  ;;  %v9958_v5 = vld [vmem:[#allocation24_spill] sm:$0xff] }
 0x1b0   :  { %5346 = vmatpush3.msra.mxu1 %v7034_v33  ;;  %4321 = vmatprep.subr.mxu0 %v6023_v40  ;;  %v847_v40 = vadd.f32 %v846_v25, %v746_v24  ;;  %v9960_v11 = vld [vmem:[#allocation40_spill] sm:$0xff]  ;;  %v9962_v24 = vld [vmem:[#allocation41_spill] sm:$0xff]  ;;  %v9963_v25 = vld [vmem:[#allocation26_spill] sm:$0xff] }
 0x1b1   :  { %1557 = vmatprep.mubr.f32.mxu0 %v6581_v31  ;;  %5347 = vmatprep.subr.mxu1 %v7043_v32 }
 0x1b2   :  { %4322 = vmatpush3.msra.mxu0 %v6029_v43  ;;  %5348 = vmatpush3.msra.mxu1 %v7043_v32  ;;  %v7070_v43 = vadd.f32 %v6691_v4, %v546_v0 }
 0x1b3   :  { %4323 = vmatprep.subr.mxu0 %v6035_v45  ;;  %5349 = vmatprep.subr.mxu1 %v7053_v46  ;;  %v7076_v45 = vmax.f32 %v847_v40, 0.0 }
 0x1b4   :  { %4324 = vmatpush3.msra.mxu0 %v6041_v47  ;;  %5350 = vmatpush3.msra.mxu1 %v7053_v46  ;;  %v645_v47 = vadd.f32 %v6658_v58, %v544_v63  ;;  %v9964_v63 = vld [vmem:[#allocation42_spill] sm:$0xff] }
 0x1b5   :  { %1558 = vmatmul.mubr.f32.gmra.mxu0 %v6573_v7  ;;  %4325 = vmatprep.subr.mxu0 %v6047_v49  ;;  %v1084_v49 = vmax.f32 %v7070_v43, 0.0  ;;  %v7417_v43 = vld [vmem:[%s9448_s3 + $0xc0] sm:$0xff] }
 0x1b6   :  { %1562 = vmatprep.mubr.f32.mxu0 %v6899_v23  ;;  %5352 = vmatmul.mubr.f32.vlgmr.msra.gmra.mxu1 %v6825_v48 }
 0x1b7   :  { %4326 = vmatpush3.msra.mxu0 %v6053_v3  ;;  %4365 = vmatprep.subr.mxu1 %v6147_v22  ;;  %v9942_v3 = vmax.f32 %v6771_v62, 0.0  ;;  %v7087_v22 = vpop.f32.mrf.mxu1  ;;  %v9961_v62 = vld [vmem:[#allocation25_spill] sm:$0xff] }
 0x1b8   :  { %5354 = vmatprep.mubr.f32.mxu1 %v6876_v13  ;;  %4327 = vmatprep.subr.mxu0 %v6059_v52 }
 0x1b9   :  { %4366 = vmatpush3.msra.mxu1 %v6177_v26  ;;  %4328 = vmatpush3.msra.mxu0 %v6065_v55  ;;  %v7094_v52 = vpop.f32.mrf.mxu1  ;;  %v1083_v55 = vmax.f32 %v645_v47, 0.0  ;;  %v9945_v26 = vld [vmem:[#allocation33_spill] sm:$0xff]  ;;  %v9965_v47 = vld [vmem:[#allocation27_spill] sm:$0xff] }
 0x1ba   :  { %4367 = vmatprep.subr.mxu1 %v6204_v29  ;;  %1563 = vmatmul.mubr.f32.gmra.mxu0 %v9942_v3  ;;  %v9948_v29 = vld [vmem:[#allocation19_spill] sm:$0xff] }
 0x1bb   :  { %4329 = vmatprep.subr.mxu0 %v6071_v57  ;;  %4368 = vmatpush3.msra.mxu1 %v6237_v34  ;;  %v1020_v57 = vpop.f32.mrf.mxu1  ;;  %v9949_v34 = vld [vmem:[#allocation35_spill] sm:$0xff] }
 0x1bc   :  { %1567 = vmatprep.mubr.f32.mxu0 %v1084_v49  ;;  %5355 = vmatmul.mubr.f32.gmra.mxu1 %v7076_v45 }
 0x1bd   :  { %4330 = vmatpush3.msra.mxu0 %v6077_v59  ;;  %4369 = vmatprep.subr.mxu1 %v6258_v36  ;;  %v9951_v36 = vld [vmem:[#allocation36_spill] sm:$0xff] }
 0x1be   :  { %4331 = vmatprep.subr.mxu0 %v6083_v61  ;;  %4370 = vmatpush3.msra.mxu1 %v6270_v37  ;;  %v439_v61 = vsub.s32 5, %v6440_v14  ;;  %v9952_v37 = vld [vmem:[#allocation21_spill] sm:$0xff] }
 0x1bf   :  { %1807 = vmatprep.mubr.f32.mxu1 %v6501_v35  ;;  %4332 = vmatpush3.msra.mxu0 %v6090_v2 }
 0x1c0   :  { %4371 = vmatprep.subr.mxu1 %v6277_v38  ;;  %1568 = vmatmul.mubr.f32.gmra.mxu0 %v1083_v55  ;;  %v7125_v4 = vrot.slane %v6445_v9, %v439_v61  ;;  %v9957_v9 = vld [vmem:[#allocation39_spill] sm:$0xff]  ;;  %v9966_v55 = vld [vmem:[#allocation89_spill] sm:$0xff] }
 0x1c1   :  { %4333 = vmatprep.subr.mxu0 %v6097_v8  ;;  %4372 = vmatpush3.msra.mxu1 %v6284_v30  ;;  %v7107_v59 = vpop.f32.mrf.mxu1  ;;  %v9943_v8 = vld [vmem:[#allocation32_spill] sm:$0xff]  ;;  %v9967_v61 = vld [vmem:[#allocation43_spill] sm:$0xff] }
 0x1c2   :  { %4334 = vmatpush3.msra.mxu0 %v6103_v10  ;;  %1722 = vmatprep.mubr.f32.mxu0 %v6703_v6  ;;  %v9944_v10 = vld [vmem:[#allocation17_spill] sm:$0xff] }
 0x1c3   :  { %4373 = vmatprep.subr.mxu1 %v6290_v54  ;;  %4335 = vmatprep.subr.mxu0 %v6109_v12  ;;  %v1026_v2 = vpop.f32.mrf.mxu1  ;;  %v7120_v12 = vpop.f32.mrf.mxu0  ;;  %v9953_v54 = vld [vmem:[#allocation37_spill] sm:$0xff] }
 0x1c4   :  { %4374 = vmatpush3.msra.mxu1 %v6297_v41  ;;  %4336 = vmatpush3.msra.mxu0 %v6116_v15  ;;  %v9946_v15 = vld [vmem:[#allocation18_spill] sm:$0xff] }
 0x1c5   :  { %4375 = vmatprep.subr.mxu1 %v6303_v42  ;;  %4337 = vmatprep.subr.mxu0 %v6123_v17  ;;  %v9947_v17 = vld [vmem:[#allocation34_spill] sm:$0xff] }
 0x1c6   :  { %4376 = vmatpush3.msra.mxu1 %v6309_v39  ;;  %4338 = vmatpush3.msra.mxu0 %v6129_v18  ;;  %v9954_v41 = vld [vmem:[#allocation22_spill] sm:$0xff] }
 0x1c7   :  { %4377 = vmatprep.subr.mxu1 %v9943_v8  ;;  %4339 = vmatprep.subr.mxu0 %v9944_v10  ;;  %v7127_v27 = vpop.f32.mrf.mxu1  ;;  %v9955_v39 = vld [vmem:[#allocation38_spill] sm:$0xff]  ;;  %v9968_v8 = vld [vmem:[#allocation28_spill] sm:$0xff] }
 0x1c8   :  { %4378 = vmatpush3.msra.mxu1 %v9945_v26  ;;  %4340 = vmatpush3.msra.mxu0 %v9946_v15  ;;  %v9970_v26 = vld [vmem:[#allocation44_spill] sm:$0xff]  ;;  %v9971_v15 = vld [vmem:[#allocation29_spill] sm:$0xff] }
 0x1c9   :  { %4379 = vmatprep.subr.mxu1 %v9947_v17  ;;  %4341 = vmatprep.subr.mxu0 %v9948_v29  ;;  %v7131_v18 = vpop.f32.mrf.mxu0  ;;  %v1032_v30 = vpop.f32.mrf.mxu1 }
 0x1ca   :  { %4380 = vmatpush3.msra.mxu1 %v9949_v34  ;;  %4342 = vmatpush3.msra.mxu0 %v9950_v21  ;;  %v9972_v34 = vld [vmem:[#allocation45_spill] sm:$0xff]  ;;  %v9973_v21 = vld [vmem:[#allocation30_spill] sm:$0xff] }
 0x1cb   :  { %4381 = vmatprep.subr.mxu1 %v9951_v36  ;;  %4343 = vmatprep.subr.mxu0 %v9952_v37  ;;  %v919_v38 = vpop.f32.mrf.mxu0  ;;  %v9974_v37 = vld [vmem:[#allocation46_spill] sm:$0xff] }
 0x1cc   :  { %4382 = vmatpush3.msra.mxu1 %v9953_v54  ;;  %4344 = vmatpush3.msra.mxu0 %v9954_v41  ;;  %v920_v42 = vadd.f32 %v919_v38, %v7125_v4  ;;  %v7150_v19 = vpop.f32.mrf.mxu1  ;;  %v9975_v38 = vld [vmem:[#allocation56_spill] sm:$0xff] }
 0x1cd   :  { %4383 = vmatprep.subr.mxu1 %v9955_v39  ;;  %4345 = vmatprep.subr.mxu0 %v9956_v56  ;;  %v7142_v58 = vpop.f32.mrf.mxu0  ;;  %v9976_v54 = vmax.f32 %v9975_v38, 0.0  ;;  %v9978_v39 = vld [vmem:[#allocation47_spill] sm:$0xff] }
 0x1ce   :  { %4384 = vmatpush3.msra.mxu1 %v9957_v9  ;;  %4346 = vmatpush3.msra.mxu0 %v9958_v5  ;;  %v7146_v7 = vadd.f32 %v1020_v57, %v920_v42  ;;  %v718_v57 = vadd.f32 %v9966_v55, %v6738_v51  ;;  %v1038_v29 = vpop.f32.mrf.mxu1  ;;  %v9979_v56 = vld [vmem:[#allocation31_spill] sm:$0xff]  ;;  %v9981_v5 = vld [vmem:[#allocation97_spill] sm:$0xff]  ;;  %v9986_v55 = vld [vmem:[#allocation58_spill] sm:$0xff] }
 0x1cf   :  { %4385 = vmatprep.subr.mxu1 %v9960_v11  ;;  %4347 = vmatprep.subr.mxu0 %v9961_v62  ;;  %v925_v0 = vpop.f32.mrf.mxu0  ;;  %v9982_v11 = vld [vmem:[#allocation48_spill] sm:$0xff] }
 0x1d0   :  { %9959 = vst [vmem:[#allocation32_spill] sm:$0xff] %v7146_v7  ;;  %4386 = vmatpush3.msra.mxu1 %v9962_v24  ;;  %4348 = vmatpush3.msra.mxu0 %v9963_v25  ;;  %v926_v40 = vadd.f32 %v925_v0, %v7125_v4  ;;  %v9983_v24 = vld [vmem:[#allocation92_spill] sm:$0xff] }
 0x1d1   :  { %4387 = vmatprep.subr.mxu1 %v9964_v63  ;;  %4349 = vmatprep.subr.mxu0 %v9965_v47  ;;  %v7157_v3 = vpop.f32.mrf.mxu0  ;;  %v7182_v0 = vpop.f32.mrf.mxu1  ;;  %v724_v25 = vadd.f32 %v9983_v24, %v6738_v51  ;;  %v9985_v63 = vld [vmem:[#allocation49_spill] sm:$0xff] }
 0x1d2   :  { %4388 = vmatpush3.msra.mxu1 %v9967_v61  ;;  %4350 = vmatpush3.msra.mxu0 %v9968_v8  ;;  %v7163_v10 = vadd.f32 %v1026_v2, %v926_v40  ;;  %v9977_v2 = vld [vmem:[#allocation90_spill] sm:$0xff]  ;;  %v9984_v40 = vld [vmem:[#allocation57_spill] sm:$0xff]  ;;  %v9989_v8 = vld [vmem:[#allocation59_spill] sm:$0xff] }
 0x1d3   :  { %4389 = vmatprep.subr.mxu1 %v9970_v26  ;;  %4351 = vmatprep.subr.mxu0 %v9971_v15  ;;  %v931_v17 = vpop.f32.mrf.mxu0  ;;  %v819_v42 = vadd.f32 %v9977_v2, %v718_v57  ;;  %v9990_v26 = vld [vmem:[#allocation51_spill] sm:$0xff]  ;;  %v9995_v2 = vld [vmem:[#allocation52_spill] sm:$0xff]  ;;  %v10000_v24 = vld [vmem:[#allocation93_spill] sm:$0xff] }
 0x1d4   :  { %9969 = vst [vmem:[#allocation17_spill] sm:$0xff] %v7163_v10  ;;  %4390 = vmatpush3.msra.mxu1 %v9972_v34  ;;  %4352 = vmatpush3.msra.mxu0 %v9973_v21  ;;  %v932_v36 = vadd.f32 %v931_v17, %v7125_v4  ;;  %v9992_v17 = vld [vmem:[#allocation60_spill] sm:$0xff]  ;;  %v1044_v21 = vpop.f32.mrf.mxu1 }
 0x1d5   :  { %4391 = vmatprep.subr.mxu1 %v9974_v37  ;;  %1723 = vmatmul.mubr.f32.vlgmr.msra.gmra.mxu0 %v9976_v54  ;;  %v7173_v41 = vpop.f32.mrf.mxu0  ;;  %v7193_v61 = vmax.f32 %v819_v42, 0.0  ;;  %v9994_v54 = vld [vmem:[#allocation61_spill] sm:$0xff] }
 0x1d6   :  { %4392 = vmatpush3.msra.mxu1 %v9978_v39  ;;  %4409 = vmatprep.subr.mxu0 %v9979_v56  ;;  %v7178_v9 = vadd.f32 %v1032_v30, %v932_v36  ;;  %v9987_v30 = vld [vmem:[#allocation50_spill] sm:$0xff]  ;;  %v9998_v39 = vld [vmem:[#allocation91_spill] sm:$0xff]  ;;  %v7581_v10 = vld [vmem:[%s9448_s3 + $0x1e8] sm:$0xff] }
 0x1d7   :  { %1727 = vmatprep.mubr.f32.mxu0 %v9981_v5  ;;  %4393 = vmatprep.subr.mxu1 %v9982_v11  ;;  %v937_v62 = vpop.f32.mrf.mxu0  ;;  %9988 = vst [vmem:[#allocation18_spill] sm:$0xff] %v7193_v61  ;;  %v9993_v36 = vld [vmem:[#allocation94_spill] sm:$0xff]  ;;  %v9999_v56 = vld [vmem:[#allocation63_spill] sm:$0xff]  ;;  %v7588_v7 = vld [vmem:[%s9448_s3 + $0x168] sm:$0xff] }
 0x1d8   :  { %9980 = vst [vmem:[#allocation33_spill] sm:$0xff] %v7178_v9  ;;  %4410 = vmatpush3.msra.mxu0 %v9984_v40  ;;  %4394 = vmatpush3.msra.mxu1 %v9985_v63  ;;  %v938_v47 = vadd.f32 %v937_v62, %v7125_v4  ;;  %v825_v37 = vadd.f32 %v9993_v36, %v724_v25  ;;  %v10002_v40 = vld [vmem:[#allocation64_spill] sm:$0xff]  ;;  %v10003_v63 = vld [vmem:[#allocation95_spill] sm:$0xff] }
 0x1d9   :  { %4411 = vmatprep.subr.mxu0 %v9986_v55  ;;  %4395 = vmatprep.subr.mxu1 %v9987_v30  ;;  %v7191_v57 = vpop.f32.mrf.mxu0  ;;  %v10005_v55 = vld [vmem:[#allocation96_spill] sm:$0xff]  ;;  %v10006_v30 = vld [vmem:[#allocation66_spill] sm:$0xff] }
 0x1da   :  { %4412 = vmatpush3.msra.mxu0 %v9989_v8  ;;  %4396 = vmatpush3.msra.mxu1 %v9990_v26  ;;  %v7197_v15 = vadd.f32 %v1038_v29, %v938_v47  ;;  %v7215_v62 = vmax.f32 %v825_v37, 0.0  ;;  %v10004_v47 = vld [vmem:[#allocation65_spill] sm:$0xff]  ;;  %v10007_v8 = vld [vmem:[#allocation98_spill] sm:$0xff]  ;;  %v10012_v36 = vld [vmem:[#allocation100_spill] sm:$0xff] }
 0x1db   :  { %1728 = vmatmul.mubr.f32.gmra.mxu0 %v6501_v35  ;;  %4413 = vmatprep.subr.mxu0 %v9992_v17  ;;  %v943_v34 = vpop.f32.mrf.mxu0  ;;  %v9996_v35 = vld [vmem:[#allocation62_spill] sm:$0xff]  ;;  %v10013_v37 = vld [vmem:[#allocation69_spill] sm:$0xff] }
 0x1dc   :  { %9991 = vst [vmem:[#allocation34_spill] sm:$0xff] %v7197_v15  ;;  %1732 = vmatprep.mubr.f32.mxu0 %v6773_v53  ;;  %1808 = vmatmul.mubr.f32.vlgmr.msra.gmra.mxu1 %v7193_v61  ;;  %v944_v38 = vadd.f32 %v943_v34, %v7125_v4  ;;  %v10009_v26 = vld [vmem:[#allocation102_spill] sm:$0xff]  ;;  %v10010_v34 = vld [vmem:[#allocation99_spill] sm:$0xff] }
 0x1dd   :  { %4414 = vmatpush3.msra.mxu0 %v9994_v54  ;;  %4453 = vmatprep.subr.mxu1 %v9995_v2  ;;  %v7207_v29 = vpop.f32.mrf.mxu0  ;;  %v7233_v17 = vmax.f32 %v10009_v26, 0.0  ;;  %v10015_v54 = vld [vmem:[#allocation70_spill] sm:$0xff]  ;;  %v10016_v2 = vld [vmem:[#allocation104_spill] sm:$0xff] }
 0x1de   :  { %1812 = vmatprep.mubr.f32.mxu1 %v6538_v16  ;;  %4415 = vmatprep.subr.mxu0 %v9996_v35  ;;  %v7211_v42 = vadd.f32 %v1044_v21, %v944_v38  ;;  %v10011_v21 = vld [vmem:[#allocation68_spill] sm:$0xff]  ;;  %v10014_v38 = vld [vmem:[#allocation103_spill] sm:$0xff] }
 0x1df   :  { %4454 = vmatpush3.msra.mxu1 %v9998_v39  ;;  %4416 = vmatpush3.msra.mxu0 %v9999_v56  ;;  %v949_v11 = vpop.f32.mrf.mxu0  ;;  %v10017_v35 = vld [vmem:[#allocation71_spill] sm:$0xff]  ;;  %v10018_v39 = vld [vmem:[#allocation106_spill] sm:$0xff]  ;;  %v10032_v26 = vld [vmem:[#allocation116_spill] sm:$0xff] }
 0x1e0   :  { %9997 = vst [vmem:[#allocation19_spill] sm:$0xff] %v7211_v42  ;;  %4455 = vmatprep.subr.mxu1 %v10000_v24  ;;  %1733 = vmatmul.mubr.f32.gmra.mxu0 %v6538_v16  ;;  %v7220_v25 = vadd.f32 %v949_v11, %v7125_v4  ;;  %v10008_v4 = vld [vmem:[#allocation67_spill] sm:$0xff]  ;;  %v7248_v56 = vmax.f32 %v10018_v39, 0.0  ;;  %v10019_v11 = vld [vmem:[#allocation72_spill] sm:$0xff]  ;;  %v10020_v24 = vld [vmem:[#allocation73_spill] sm:$0xff] }
 0x1e1   :  { %4417 = vmatprep.subr.mxu0 %v10002_v40  ;;  %4456 = vmatpush3.msra.mxu1 %v10003_v63  ;;  %v10021_v40 = vld [vmem:[#allocation74_spill] sm:$0xff]  ;;  %v10022_v63 = vld [vmem:[#allocation75_spill] sm:$0xff]  ;;  %v10042_v39 = vld [vmem:[#allocation124_spill] sm:$0xff] }
 0x1e2   :  { %10001 = vst [vmem:[#allocation35_spill] sm:$0xff] %v7220_v25  ;;  %1737 = vmatprep.mubr.f32.mxu0 %v6825_v48  ;;  %1813 = vmatmul.mubr.f32.gmra.mxu1 %v7215_v62  ;;  %v7544_v25 = vld [vmem:[%s9448_s3 + $0x8] sm:$0xff]  ;;  %v7554_v42 = vld [vmem:[%s9448_s3 + $0x1f0] sm:$0xff]  ;;  %v7560_v15 = vld [vmem:[%s9448_s3 + $0x80] sm:$0xff] }
 0x1e3   :  { %4418 = vmatpush3.msra.mxu0 %v10004_v47  ;;  %4457 = vmatprep.subr.mxu1 %v10005_v55  ;;  %v10024_v47 = vld [vmem:[#allocation110_spill] sm:$0xff]  ;;  %v10026_v55 = vld [vmem:[#allocation112_spill] sm:$0xff]  ;;  %10077 = vst [vmem:[#allocation26_spill] sm:$0xff] %v7544_v25  ;;  %10079 = vst [vmem:[#allocation27_spill] sm:$0xff] %v7560_v15 }
 0x1e4   :  { %1817 = vmatprep.mubr.f32.mxu1 %v6581_v31  ;;  %4419 = vmatprep.subr.mxu0 %v10006_v30  ;;  %v10027_v30 = vld [vmem:[#allocation78_spill] sm:$0xff] }
 0x1e5   :  { %4458 = vmatpush3.msra.mxu1 %v10007_v8  ;;  %4420 = vmatpush3.msra.mxu0 %v10008_v4  ;;  %v10029_v8 = vld [vmem:[#allocation79_spill] sm:$0xff]  ;;  %v10031_v4 = vld [vmem:[#allocation80_spill] sm:$0xff] }
 0x1e6   :  { %4459 = vmatprep.subr.mxu1 %v10010_v34  ;;  %1738 = vmatmul.mubr.f32.gmra.mxu0 %v6581_v31  ;;  %v10034_v34 = vld [vmem:[#allocation118_spill] sm:$0xff] }
 0x1e7   :  { %4421 = vmatprep.subr.mxu0 %v10011_v21  ;;  %4460 = vmatpush3.msra.mxu1 %v10012_v36  ;;  %v10035_v21 = vld [vmem:[#allocation82_spill] sm:$0xff]  ;;  %v10036_v36 = vld [vmem:[#allocation119_spill] sm:$0xff] }
 0x1e8   :  { %1818 = vmatmul.mubr.f32.gmra.mxu1 %v7233_v17  ;;  %4422 = vmatpush3.msra.mxu0 %v10013_v37  ;;  %v10037_v37 = vld [vmem:[#allocation83_spill] sm:$0xff] }
 0x1e9   :  { %1892 = vmatprep.mubr.f32.mxu0 %v7215_v62  ;;  %4461 = vmatprep.subr.mxu1 %v10014_v38  ;;  %v10038_v38 = vld [vmem:[#allocation121_spill] sm:$0xff] }
 0x1ea   :  { %1822 = vmatprep.mubr.f32.mxu1 %v6899_v23  ;;  %4423 = vmatprep.subr.mxu0 %v10015_v54  ;;  %v10039_v54 = vld [vmem:[#allocation84_spill] sm:$0xff] }
 0x1eb   :  { %4462 = vmatpush3.msra.mxu1 %v10016_v2  ;;  %4424 = vmatpush3.msra.mxu0 %v10017_v35  ;;  %v10040_v2 = vld [vmem:[#allocation122_spill] sm:$0xff]  ;;  %v10041_v35 = vld [vmem:[#allocation85_spill] sm:$0xff] }
 0x1ec   :  { %4463 = vmatprep.subr.mxu1 %v6811_v44  ;;  %4425 = vmatprep.subr.mxu0 %v10019_v11  ;;  %v10023_v44 = vld [vmem:[#allocation76_spill] sm:$0xff]  ;;  %v10043_v11 = vld [vmem:[#allocation86_spill] sm:$0xff] }
 0x1ed   :  { %4464 = vmatpush3.msra.mxu1 %v6818_v28  ;;  %4426 = vmatpush3.msra.mxu0 %v10020_v24  ;;  %v10025_v28 = vld [vmem:[#allocation77_spill] sm:$0xff] }
 0x1ee   :  { %1823 = vmatmul.mubr.f32.gmra.mxu1 %v7248_v56  ;;  %4465 = vmatprep.subr.mxu1 %v6833_v50  ;;  %v10028_v50 = vld [vmem:[#allocation113_spill] sm:$0xff] }
 0x1ef   :  { %4427 = vmatprep.subr.mxu0 %v10021_v40  ;;  %4466 = vmatpush3.msra.mxu1 %v6845_v60  ;;  %v10030_v60 = vld [vmem:[#allocation115_spill] sm:$0xff]  ;;  %v10044_v24 = vld [vmem:[#allocation125_spill] sm:$0xff] }
 0x1f0   :  { %1977 = vmatprep.mubr.f32.mxu1 %v6773_v53  ;;  %4428 = vmatpush3.msra.mxu0 %v10022_v63  ;;  %v10045_v40 = vld [vmem:[#allocation87_spill] sm:$0xff] }
 0x1f1   :  { %4467 = vmatprep.subr.mxu1 %v6859_v1  ;;  %4429 = vmatprep.subr.mxu0 %v10023_v44  ;;  %v10033_v1 = vld [vmem:[#allocation81_spill] sm:$0xff]  ;;  %v10046_v63 = vld [vmem:[#allocation127_spill] sm:$0xff]  ;;  %v10047_v44 = vld [vmem:[#allocation128_spill] sm:$0xff] }
 0x1f2   :  { %4468 = vmatpush3.msra.mxu1 %v10024_v47  ;;  %4430 = vmatpush3.msra.mxu0 %v10025_v28  ;;  %v10048_v47 = vld [vmem:[#allocation88_spill] sm:$0xff]  ;;  %v10049_v28 = vld [vmem:[#allocation130_spill] sm:$0xff] }
 0x1f3   :  { %4469 = vmatprep.subr.mxu1 %v10026_v55  ;;  %4431 = vmatprep.subr.mxu0 %v10027_v30  ;;  %v10050_v55 = vld [vmem:[#allocation101_spill] sm:$0xff]  ;;  %v10051_v30 = vld [vmem:[#allocation132_spill] sm:$0xff] }
 0x1f4   :  { %4470 = vmatpush3.msra.mxu1 %v10028_v50  ;;  %4432 = vmatpush3.msra.mxu0 %v10029_v8  ;;  %v10052_v50 = vld [vmem:[#allocation133_spill] sm:$0xff] }
 0x1f5   :  { %4471 = vmatprep.subr.mxu1 %v10030_v60  ;;  %4433 = vmatprep.subr.mxu0 %v10031_v4  ;;  %v10053_v8 = vld [vmem:[#allocation105_spill] sm:$0xff]  ;;  %v10054_v60 = vld [vmem:[#allocation107_spill] sm:$0xff] }
 0x1f6   :  { %4472 = vmatpush3.msra.mxu1 %v10032_v26  ;;  %4434 = vmatpush3.msra.mxu0 %v10033_v1  ;;  %v7312_v4 = vld [vmem:[%s9448_s3 + $0x78] sm:$0xff]  ;;  %v7322_v1 = vld [vmem:[%s9448_s3 + $0xf0] sm:$0xff] }
 0x1f7   :  { %4473 = vmatprep.subr.mxu1 %v10034_v34  ;;  %4435 = vmatprep.subr.mxu0 %v10035_v21  ;;  %v10056_v34 = vld [vmem:[#allocation108_spill] sm:$0xff]  ;;  %v7330_v21 = vld [vmem:[%s9448_s3 + $0x70] sm:$0xff] }
 0x1f8   :  { %4474 = vmatpush3.msra.mxu1 %v10036_v36  ;;  %4436 = vmatpush3.msra.mxu0 %v10037_v37  ;;  %v7339_v36 = vld [vmem:[%s9448_s3 + $0xe8] sm:$0xff]  ;;  %v10057_v37 = vld [vmem:[#allocation111_spill] sm:$0xff] }
 0x1f9   :  { %4475 = vmatprep.subr.mxu1 %v10038_v38  ;;  %4437 = vmatprep.subr.mxu0 %v10039_v54  ;;  %v7347_v38 = vld [vmem:[%s9448_s3 + $0x68] sm:$0xff]  ;;  %v10058_v54 = vld [vmem:[#allocation114_spill] sm:$0xff] }
 0x1fa   :  { %4476 = vmatpush3.msra.mxu1 %v10040_v2  ;;  %4438 = vmatpush3.msra.mxu0 %v10041_v35  ;;  %v7362_v2 = vld [vmem:[%s9448_s3 + $0x60] sm:$0xff]  ;;  %v7371_v35 = vld [vmem:[%s9448_s3 + $0xd8] sm:$0xff] }
 0x1fb   :  { %4477 = vmatprep.subr.mxu1 %v10042_v39  ;;  %4439 = vmatprep.subr.mxu0 %v10043_v11  ;;  %v10059_v39 = vld [vmem:[#allocation117_spill] sm:$0xff]  ;;  %v7379_v11 = vld [vmem:[%s9448_s3 + $0x58] sm:$0xff] }
 0x1fc   :  { %4478 = vmatpush3.msra.mxu1 %v10044_v24  ;;  %4440 = vmatpush3.msra.mxu0 %v10045_v40  ;;  %v10060_v24 = vld [vmem:[#allocation120_spill] sm:$0xff]  ;;  %v7393_v40 = vld [vmem:[%s9448_s3 + $0x50] sm:$0xff] }
 0x1fd   :  { %4479 = vmatprep.subr.mxu1 %v10046_v63  ;;  %1893 = vmatmul.mubr.f32.vlgmr.msra.gmra.mxu0 %v9981_v5  ;;  %v7402_v63 = vld [vmem:[%s9448_s3 + $0xc8] sm:$0xff] }
 0x1fe   :  { %4480 = vmatpush3.msra.mxu1 %v10047_v44  ;;  %5357 = vmatprep.subr.mxu0 %v10048_v47  ;;  %v10061_v44 = vld [vmem:[#allocation123_spill] sm:$0xff] }
 0x1ff   :  { %1897 = vmatprep.mubr.f32.mxu0 %v7233_v17  ;;  %4481 = vmatprep.subr.mxu1 %v7001_v20  ;;  %v7304_v20 = vld [vmem:[%s9448_s3 + $0xf8] sm:$0xff] }
 0x200   :  { %5358 = vmatpush3.msra.mxu0 %v10048_v47  ;;  %4482 = vmatpush3.msra.mxu1 %v10049_v28  ;;  %v7409_v47 = vld [vmem:[%s9448_s3 + $0x48] sm:$0xff]  ;;  %v7421_v28 = vpop.f32.mrf.mxu1 }
 0x201   :  { %5359 = vmatprep.subr.mxu0 %v10050_v55  ;;  %4483 = vmatprep.subr.mxu1 %v10051_v30  ;;  %v7433_v30 = vld [vmem:[%s9448_s3 + $0xb8] sm:$0xff] }
 0x202   :  { %5360 = vmatpush3.msra.mxu0 %v10050_v55  ;;  %4484 = vmatpush3.msra.mxu1 %v10052_v50  ;;  %v7426_v55 = vld [vmem:[%s9448_s3 + $0x40] sm:$0xff]  ;;  %v10063_v50 = vld [vmem:[#allocation129_spill] sm:$0xff] }
 0x203   :  { %1898 = vmatmul.mubr.f32.gmra.mxu0 %v6773_v53  ;;  %5361 = vmatprep.subr.mxu0 %v10053_v8 }
 0x204   :  { %1902 = vmatprep.mubr.f32.mxu0 %v7248_v56  ;;  %1978 = vmatmul.mubr.f32.vlgmr.msra.gmra.mxu1 %v6538_v16  ;;  %v10055_v16 = vld [vmem:[#allocation109_spill] sm:$0xff] }
 0x205   :  { %5362 = vmatpush3.msra.mxu0 %v10053_v8  ;;  %4517 = vmatprep.subr.mxu1 %v7304_v20  ;;  %v7317_v26 = vmax.f32 %v10055_v16, 0.0  ;;  %v7440_v8 = vld [vmem:[%s9448_s3 + $0x38] sm:$0xff] }
 0x206   :  { %1982 = vmatprep.mubr.f32.mxu1 %v6825_v48  ;;  %5363 = vmatprep.subr.mxu0 %v10054_v60  ;;  %v10064_v16 = vld [vmem:[#allocation131_spill] sm:$0xff] }
 0x207   :  { %4518 = vmatpush3.msra.mxu1 %v7312_v4  ;;  %5364 = vmatpush3.msra.mxu0 %v10054_v60  ;;  %v7447_v60 = vld [vmem:[%s9448_s3 + $0xb0] sm:$0xff] }
 0x208   :  { %4519 = vmatprep.subr.mxu1 %v7322_v1  ;;  %1903 = vmatmul.mubr.f32.gmra.mxu0 %v6825_v48 }
 0x209   :  { %5365 = vmatprep.subr.mxu0 %v10056_v34  ;;  %4520 = vmatpush3.msra.mxu1 %v7330_v21 }
 0x20a   :  { %1907 = vmatprep.mubr.f32.mxu0 %v7317_v26  ;;  %1983 = vmatmul.mubr.f32.gmra.mxu1 %v6581_v31  ;;  %v7354_v31 = vld [vmem:[%s9448_s3 + $0xe0] sm:$0xff] }
 0x20b   :  { %5366 = vmatpush3.msra.mxu0 %v10056_v34  ;;  %4521 = vmatprep.subr.mxu1 %v7339_v36  ;;  %v7451_v34 = vpop.f32.mrf.mxu1 }
 0x20c   :  { %1987 = vmatprep.mubr.f32.mxu1 %v6876_v13  ;;  %5367 = vmatprep.subr.mxu0 %v10057_v37  ;;  %10065 = vst [vmem:[#allocation20_spill] sm:$0xff] %v7451_v34  ;;  %v7519_v34 = vld [vmem:[%s9448_s3 + $0x10] sm:$0xff] }
 0x20d   :  { %4522 = vmatpush3.msra.mxu1 %v7347_v38  ;;  %5368 = vmatpush3.msra.mxu0 %v10057_v37  ;;  %v7456_v37 = vld [vmem:[%s9448_s3 + $0x30] sm:$0xff]  ;;  %10075 = vst [vmem:[#allocation25_spill] sm:$0xff] %v7519_v34 }
 0x20e   :  { %4523 = vmatprep.subr.mxu1 %v7354_v31  ;;  %1908 = vmatmul.mubr.f32.gmra.mxu0 %v6876_v13 }
 0x20f   :  { %5369 = vmatprep.subr.mxu0 %v10058_v54  ;;  %4524 = vmatpush3.msra.mxu1 %v7362_v2 }
 0x210   :  { %1988 = vmatmul.mubr.f32.gmra.mxu1 %v6899_v23  ;;  %5370 = vmatpush3.msra.mxu0 %v10058_v54  ;;  %v7386_v23 = vld [vmem:[%s9448_s3 + $0xd0] sm:$0xff]  ;;  %v7463_v54 = vld [vmem:[%s9448_s3 + $0xa8] sm:$0xff] }
 0x211   :  { %5389 = vmatprep.mubr.f32.mxu0 %v7233_v17  ;;  %4525 = vmatprep.subr.mxu1 %v7371_v35  ;;  %10066 = vst [vmem:[#allocation36_spill] sm:$0xff] %v7463_v54 }
 0x212   :  { %1992 = vmatprep.mubr.f32.mxu1 %v7076_v45  ;;  %5371 = vmatprep.subr.mxu0 %v10059_v39 }
 0x213   :  { %4526 = vmatpush3.msra.mxu1 %v7379_v11  ;;  %5372 = vmatpush3.msra.mxu0 %v10059_v39  ;;  %v7470_v39 = vld [vmem:[%s9448_s3 + $0x28] sm:$0xff] }
 0x214   :  { %4527 = vmatprep.subr.mxu1 %v7386_v23  ;;  %5373 = vmatprep.subr.mxu0 %v10060_v24  ;;  %10067 = vst [vmem:[#allocation21_spill] sm:$0xff] %v7470_v39 }
 0x215   :  { %4528 = vmatpush3.msra.mxu1 %v7393_v40  ;;  %5374 = vmatpush3.msra.mxu0 %v10060_v24  ;;  %v748_v24 = vadd.f32 %v7087_v22, %v6738_v51  ;;  %v7495_v51 = vld [vmem:[%s9448_s3 + $0x98] sm:$0xff] }
 0x216   :  { %1993 = vmatmul.mubr.f32.gmra.mxu1 %v1084_v49  ;;  %4529 = vmatprep.subr.mxu1 %v7402_v63  ;;  %v10062_v49 = vld [vmem:[#allocation126_spill] sm:$0xff]  ;;  %10071 = vst [vmem:[#allocation23_spill] sm:$0xff] %v7495_v51 }
 0x217   :  { %5375 = vmatprep.subr.mxu0 %v10061_v44  ;;  %4530 = vmatpush3.msra.mxu1 %v7409_v47 }
 0x218   :  { %2147 = vmatprep.mubr.f32.mxu1 %v7193_v61  ;;  %5376 = vmatpush3.msra.mxu0 %v10061_v44  ;;  %v7479_v44 = vld [vmem:[%s9448_s3 + $0xa0] sm:$0xff] }
 0x219   :  { %4531 = vmatprep.subr.mxu1 %v7417_v43  ;;  %5377 = vmatprep.subr.mxu0 %v10062_v49  ;;  %10068 = vst [vmem:[#allocation37_spill] sm:$0xff] %v7479_v44 }
 0x21a   :  { %4532 = vmatpush3.msra.mxu1 %v7426_v55  ;;  %5378 = vmatpush3.msra.mxu0 %v10062_v49 }
 0x21b   :  { %4533 = vmatprep.subr.mxu1 %v7433_v30  ;;  %5379 = vmatprep.subr.mxu0 %v10063_v50 }
 0x21c   :  { %4534 = vmatpush3.msra.mxu1 %v7440_v8  ;;  %5380 = vmatpush3.msra.mxu0 %v10063_v50  ;;  %v7488_v50 = vld [vmem:[%s9448_s3 + $0x20] sm:$0xff] }
 0x21d   :  { %4535 = vmatprep.subr.mxu1 %v7447_v60  ;;  %5381 = vmatprep.subr.mxu0 %v10064_v16  ;;  %10070 = vst [vmem:[#allocation38_spill] sm:$0xff] %v7488_v50 }
 0x21e   :  { %4536 = vmatpush3.msra.mxu1 %v7456_v37  ;;  %5382 = vmatpush3.msra.mxu0 %v10064_v16  ;;  %v7512_v16 = vld [vmem:[%s9448_s3 + $0x90] sm:$0xff] }
 0x21f   :  { %4537 = vmatprep.subr.mxu1 %v7463_v54  ;;  %5383 = vmatprep.subr.mxu0 %v7034_v33  ;;  %10074 = vst [vmem:[#allocation40_spill] sm:$0xff] %v7512_v16  ;;  %v7717_v54 = vld [vmem:[%s9448_s3 + $0x258] sm:$0xff] }
 0x220   :  { %4538 = vmatpush3.msra.mxu1 %v7470_v39  ;;  %5384 = vmatpush3.msra.mxu0 %v7034_v33  ;;  %v7483_v49 = vpop.f32.mrf.mxu1  ;;  %v7502_v33 = vld [vmem:[%s9448_s3 + $0x18] sm:$0xff]  ;;  %10091 = vst [vmem:[#allocation31_spill] sm:$0xff] %v7717_v54 }
 0x221   :  { %4539 = vmatprep.subr.mxu1 %v7479_v44  ;;  %5385 = vmatprep.subr.mxu0 %v7043_v32  ;;  %10069 = vst [vmem:[#allocation22_spill] sm:$0xff] %v7483_v49  ;;  %10072 = vst [vmem:[#allocation39_spill] sm:$0xff] %v7502_v33 }
 0x222   :  { %4540 = vmatpush3.msra.mxu1 %v7488_v50  ;;  %5386 = vmatpush3.msra.mxu0 %v7043_v32  ;;  %v7506_v22 = vpop.f32.mrf.mxu1  ;;  %v849_v32 = vadd.f32 %v7120_v12, %v748_v24  ;;  %v7532_v12 = vld [vmem:[%s9448_s3 + $0x88] sm:$0xff]  ;;  %v7538_v24 = vld [vmem:[%s9448_s3 + $0x178] sm:$0xff]  ;;  %v7687_v50 = vld [vmem:[%s9448_s3 + $0x260] sm:$0xff] }
 0x223   :  { %4541 = vmatprep.subr.mxu1 %v7495_v51  ;;  %5387 = vmatprep.subr.mxu0 %v7053_v46  ;;  %10073 = vst [vmem:[#allocation24_spill] sm:$0xff] %v7506_v22  ;;  %10076 = vst [vmem:[#allocation41_spill] sm:$0xff] %v7532_v12 }
 0x224   :  { %4542 = vmatpush3.msra.mxu1 %v7502_v33  ;;  %5388 = vmatpush3.msra.mxu0 %v7053_v46  ;;  %v7525_v46 = vld [vmem:[%s9448_s3 + $0x1f8] sm:$0xff]  ;;  %v7549_v49 = vmax.f32 %v849_v32, 0.0  ;;  %v7572_v32 = vld [vmem:[%s9448_s3] sm:$0xff]  ;;  %v7648_v33 = vld [vmem:[%s9448_s3 + $0x2e8] sm:$0xff]  ;;  %10089 = vst [vmem:[#allocation90_spill] sm:$0xff] %v7687_v50 }
 0x225   :  { %4543 = vmatprep.subr.mxu1 %v7512_v16  ;;  %5390 = vmatmul.mubr.f32.vlgmr.msra.gmra.mxu0 %v7248_v56  ;;  %10080 = vst [vmem:[#allocation89_spill] sm:$0xff] %v7572_v32  ;;  %v435_v16 = vsub.s32 4, %v6440_v14  ;;  %10086 = vst [vmem:[#allocation30_spill] sm:$0xff] %v7648_v33  ;;  %v7673_v14 = vld [vmem:[%s9448_s3 + $0x2e0] sm:$0xff] }
 0x226   :  { %4544 = vmatpush3.msra.mxu1 %v7519_v34  ;;  %4561 = vmatprep.subr.mxu0 %v7525_v46  ;;  %v7638_v34 = vld [vmem:[%s9448_s3 + $0x158] sm:$0xff]  ;;  %10088 = vst [vmem:[#allocation56_spill] sm:$0xff] %v7673_v14 }
 0x227   :  { %5392 = vmatprep.mubr.f32.mxu0 %v7317_v26  ;;  %4545 = vmatprep.subr.mxu1 %v7532_v12  ;;  %v7547_v22 = vpop.f32.mrf.mxu1  ;;  %v7632_v12 = vld [vmem:[%s9448_s3 + $0x270] sm:$0xff] }
 0x228   :  { %4562 = vmatpush3.msra.mxu0 %v7538_v24  ;;  %4546 = vmatpush3.msra.mxu1 %v7544_v25  ;;  %10078 = vst [vmem:[#allocation42_spill] sm:$0xff] %v7547_v22  ;;  %v7566_v22 = vld [vmem:[%s9448_s3 + $0x170] sm:$0xff]  ;;  %v7626_v25 = vld [vmem:[%s9448_s3 + $0x1d8] sm:$0xff]  ;;  %10085 = vst [vmem:[#allocation45_spill] sm:$0xff] %v7632_v12 }
 0x229   :  { %4563 = vmatprep.subr.mxu0 %v7554_v42  ;;  %4547 = vmatprep.subr.mxu1 %v7560_v15  ;;  %v7575_v9 = vpop.f32.mrf.mxu1  ;;  %v7620_v15 = vld [vmem:[%s9448_s3 + $0x2f0] sm:$0xff] }
 0x22a   :  { %4564 = vmatpush3.msra.mxu0 %v7566_v22  ;;  %4548 = vmatpush3.msra.mxu1 %v7572_v32  ;;  %10081 = vst [vmem:[#allocation43_spill] sm:$0xff] %v7575_v9  ;;  %v7595_v9 = vld [vmem:[%s9448_s3 + $0x2f8] sm:$0xff]  ;;  %10084 = vst [vmem:[#allocation29_spill] sm:$0xff] %v7620_v15 }
 0x22b   :  { %5393 = vmatmul.mubr.f32.gmra.mxu0 %v7549_v49  ;;  %4565 = vmatprep.subr.mxu0 %v7581_v10  ;;  %10082 = vst [vmem:[#allocation28_spill] sm:$0xff] %v7595_v9  ;;  %v7608_v32 = vld [vmem:[%s9448_s3 + $0x278] sm:$0xff] }
 0x22c   :  { %2148 = vmatmul.mubr.f32.vlgmr.msra.gmra.mxu1 %v6703_v6  ;;  %4566 = vmatpush3.msra.mxu0 %v7588_v7  ;;  %v7602_v6 = vld [vmem:[%s9448_s3 + $0x1e0] sm:$0xff]  ;;  %10083 = vst [vmem:[#allocation44_spill] sm:$0xff] %v7608_v32 }
 0x22d   :  { %2232 = vmatprep.mubr.f32.mxu0 %v9981_v5  ;;  %4605 = vmatprep.subr.mxu1 %v7595_v9  ;;  %v4163_v61 = vpop.f32.mrf.mxu1  ;;  %v7614_v9 = vld [vmem:[%s9448_s3 + $0x160] sm:$0xff] }
 0x22e   :  { %2152 = vmatprep.mubr.f32.mxu1 %v7215_v62  ;;  %4567 = vmatprep.subr.mxu0 %v7602_v6 }
 0x22f   :  { %4606 = vmatpush3.msra.mxu1 %v7608_v32  ;;  %4568 = vmatpush3.msra.mxu0 %v7614_v9  ;;  %v4164_v32 = vpop.f32.mrf.mxu1 }
 0x230   :  { %4607 = vmatprep.subr.mxu1 %v7620_v15  ;;  %4569 = vmatprep.subr.mxu0 %v7626_v25  ;;  %v7641_v15 = vadd.f32 %v4164_v32, %v4163_v61  ;;  %v7667_v61 = vld [vmem:[%s9448_s3 + $0x150] sm:$0xff] }
 0x231   :  { %4608 = vmatpush3.msra.mxu1 %v7632_v12  ;;  %4570 = vmatpush3.msra.mxu0 %v7638_v34  ;;  %v7655_v12 = vld [vmem:[%s9448_s3 + $0x1d0] sm:$0xff] }
 0x232   :  { %2153 = vmatmul.mubr.f32.gmra.mxu1 %v9981_v5  ;;  %4609 = vmatprep.subr.mxu1 %v7648_v33  ;;  %v7661_v5 = vld [vmem:[%s9448_s3 + $0x268] sm:$0xff] }
 0x233   :  { %2157 = vmatprep.mubr.f32.mxu1 %v7233_v17  ;;  %4571 = vmatprep.subr.mxu0 %v7655_v12  ;;  %10087 = vst [vmem:[#allocation46_spill] sm:$0xff] %v7661_v5  ;;  %v4166_v32 = vpop.f32.mrf.mxu1  ;;  %v7679_v33 = vld [vmem:[%s9448_s3 + $0x1c8] sm:$0xff] }
 0x234   :  { %4610 = vmatpush3.msra.mxu1 %v7661_v5  ;;  %4572 = vmatpush3.msra.mxu0 %v7667_v61  ;;  %v5606_v5 = vld [vmem:[#allocation4] sm:$0x3f] }
 0x235   :  { %4611 = vmatprep.subr.mxu1 %v7673_v14  ;;  %4573 = vmatprep.subr.mxu0 %v7679_v33  ;;  %v7682_v51 = vrot.slane %v5606_v5, %v435_v16  ;;  %v7693_v14 = vld [vmem:[%s9448_s3 + $0x148] sm:$0xff]  ;;  %v4167_v44 = vpop.f32.mrf.mxu1  ;;  %v7700_v16 = vld [vmem:[%s9448_s3 + $0x2d8] sm:$0xff] }
 0x236   :  { %4612 = vmatpush3.msra.mxu1 %v7687_v50  ;;  %4574 = vmatpush3.msra.mxu0 %v7693_v14  ;;  %10090 = vst [vmem:[#allocation47_spill] sm:$0xff] %v7700_v16  ;;  %v7703_v5 = vadd.f32 %v4167_v44, %v4166_v32  ;;  %v7709_v50 = vld [vmem:[%s9448_s3 + $0x1c0] sm:$0xff]  ;;  %v7729_v32 = vld [vmem:[%s9448_s3 + $0x2d0] sm:$0xff] }
 0x237   :  { %2158 = vmatmul.mubr.f32.gmra.mxu1 %v6773_v53  ;;  %4613 = vmatprep.subr.mxu1 %v7700_v16  ;;  %v924_v39 = vadd.f32 %v7142_v58, %v7682_v51  ;;  %v7723_v44 = vld [vmem:[%s9448_s3 + $0x140] sm:$0xff]  ;;  %10092 = vst [vmem:[#allocation97_spill] sm:$0xff] %v7729_v32  ;;  %v7735_v58 = vld [vmem:[%s9448_s3 + $0x1b8] sm:$0xff] }
 0x238   :  { %2162 = vmatprep.mubr.f32.mxu1 %v7248_v56  ;;  %4575 = vmatprep.subr.mxu0 %v7709_v50  ;;  %10093 = vst [vmem:[#allocation48_spill] sm:$0xff] %v7735_v58  ;;  %v7747_v16 = vld [vmem:[%s9448_s3 + $0x138] sm:$0xff] }
 0x239   :  { %4614 = vmatpush3.msra.mxu1 %v7717_v54  ;;  %4576 = vmatpush3.msra.mxu0 %v7723_v44  ;;  %v7741_v54 = vld [vmem:[%s9448_s3 + $0x250] sm:$0xff]  ;;  %10095 = vst [vmem:[#allocation57_spill] sm:$0xff] %v7747_v16 }
 0x23a   :  { %4615 = vmatprep.subr.mxu1 %v7729_v32  ;;  %4577 = vmatprep.subr.mxu0 %v7735_v58  ;;  %10094 = vst [vmem:[#allocation92_spill] sm:$0xff] %v7741_v54  ;;  %v1025_v32 = vadd.f32 %v7107_v59, %v924_v39  ;;  %v7755_v58 = vld [vmem:[%s9448_s3 + $0x2c8] sm:$0xff]  ;;  %v7773_v39 = vld [vmem:[%s9448_s3 + $0x130] sm:$0xff] }
 0x23b   :  { %4616 = vmatpush3.msra.mxu1 %v7741_v54  ;;  %4578 = vmatpush3.msra.mxu0 %v7747_v16  ;;  %10096 = vst [vmem:[#allocation49_spill] sm:$0xff] %v7755_v58  ;;  %v7761_v54 = vld [vmem:[%s9448_s3 + $0x1b0] sm:$0xff]  ;;  %v7767_v59 = vld [vmem:[%s9448_s3 + $0x248] sm:$0xff]  ;;  %10099 = vst [vmem:[#allocation59_spill] sm:$0xff] %v7773_v39  ;;  %v918_v16 = vadd.f32 %v7131_v18, %v7682_v51 }
 0x23c   :  { %2163 = vmatmul.mubr.f32.gmra.mxu1 %v6825_v48  ;;  %4617 = vmatprep.subr.mxu1 %v7755_v58  ;;  %10097 = vst [vmem:[#allocation58_spill] sm:$0xff] %v7761_v54  ;;  %10098 = vst [vmem:[#allocation50_spill] sm:$0xff] %v7767_v59  ;;  %v7779_v58 = vld [vmem:[%s9448_s3 + $0x2c0] sm:$0xff]  ;;  %v7831_v18 = vld [vmem:[%s9448_s3 + $0x2b0] sm:$0xff] }
 0x23d   :  { %4579 = vmatprep.subr.mxu0 %v7761_v54  ;;  %4618 = vmatpush3.msra.mxu1 %v7767_v59  ;;  %10100 = vst [vmem:[#allocation51_spill] sm:$0xff] %v7779_v58  ;;  %v7785_v54 = vld [vmem:[%s9448_s3 + $0x1a8] sm:$0xff]  ;;  %v7791_v59 = vld [vmem:[%s9448_s3 + $0x240] sm:$0xff]  ;;  %10108 = vst [vmem:[#allocation93_spill] sm:$0xff] %v7831_v18 }
 0x23e   :  { %4580 = vmatpush3.msra.mxu0 %v7773_v39  ;;  %4619 = vmatprep.subr.mxu1 %v7779_v58  ;;  %10101 = vst [vmem:[#allocation60_spill] sm:$0xff] %v7785_v54  ;;  %10102 = vst [vmem:[#allocation94_spill] sm:$0xff] %v7791_v59  ;;  %v7794_v39 = vmax.f32 %v1025_v32, 0.0  ;;  %v7799_v58 = vld [vmem:[%s9448_s3 + $0x128] sm:$0xff]  ;;  %v7813_v32 = vld [vmem:[%s9448_s3 + $0x1a0] sm:$0xff] }
 0x23f   :  { %4581 = vmatprep.subr.mxu0 %v7785_v54  ;;  %4620 = vmatpush3.msra.mxu1 %v7791_v59  ;;  %v7805_v54 = vld [vmem:[%s9448_s3 + $0x2b8] sm:$0xff]  ;;  %10105 = vst [vmem:[#allocation62_spill] sm:$0xff] %v7813_v32 }
 0x240   :  { %10103 = vst [vmem:[#allocation61_spill] sm:$0xff] %v7794_v39  ;;  %4582 = vmatpush3.msra.mxu0 %v7799_v58  ;;  %10104 = vst [vmem:[#allocation52_spill] sm:$0xff] %v7805_v54  ;;  %4621 = vmatprep.subr.mxu1 %v7805_v54  ;;  %v7819_v59 = vld [vmem:[%s9448_s3 + $0x238] sm:$0xff]  ;;  %v7825_v54 = vld [vmem:[%s9448_s3 + $0x120] sm:$0xff] }
 0x241   :  { %4583 = vmatprep.subr.mxu0 %v7813_v32  ;;  %10106 = vst [vmem:[#allocation91_spill] sm:$0xff] %v7819_v59  ;;  %4622 = vmatpush3.msra.mxu1 %v7819_v59  ;;  %10107 = vst [vmem:[#allocation63_spill] sm:$0xff] %v7825_v54  ;;  %v7837_v32 = vld [vmem:[%s9448_s3 + $0x198] sm:$0xff]  ;;  %v7843_v59 = vld [vmem:[%s9448_s3 + $0x230] sm:$0xff] }
 0x242   :  { %4584 = vmatpush3.msra.mxu0 %v7825_v54  ;;  %4623 = vmatprep.subr.mxu1 %v7831_v18  ;;  %10109 = vst [vmem:[#allocation64_spill] sm:$0xff] %v7837_v32  ;;  %10110 = vst [vmem:[#allocation95_spill] sm:$0xff] %v7843_v59  ;;  %v7850_v18 = vld [vmem:[%s9448_s3 + $0x118] sm:$0xff]  ;;  %v7854_v54 = vadd.f32 %v7094_v52, %v918_v16  ;;  %v7877_v52 = vld [vmem:[%s9448_s3 + $0x110] sm:$0xff] }
 0x243   :  { %4585 = vmatprep.subr.mxu0 %v7837_v32  ;;  %4624 = vmatpush3.msra.mxu1 %v7843_v59  ;;  %10111 = vst [vmem:[#allocation65_spill] sm:$0xff] %v7850_v18  ;;  %v7859_v32 = vld [vmem:[%s9448_s3 + $0x2a8] sm:$0xff]  ;;  %v7865_v59 = vld [vmem:[%s9448_s3 + $0x190] sm:$0xff]  ;;  %10115 = vst [vmem:[#allocation67_spill] sm:$0xff] %v7877_v52 }
 0x244   :  { %2317 = vmatprep.mubr.f32.mxu1 %v7794_v39  ;;  %4586 = vmatpush3.msra.mxu0 %v7850_v18  ;;  %10112 = vst [vmem:[#allocation96_spill] sm:$0xff] %v7859_v32  ;;  %10113 = vst [vmem:[#allocation66_spill] sm:$0xff] %v7865_v59  ;;  %v7871_v18 = vld [vmem:[%s9448_s3 + $0x228] sm:$0xff]  ;;  %v7883_v16 = vld [vmem:[%s9448_s3 + $0x2a0] sm:$0xff] }
 0x245   :  { %4625 = vmatprep.subr.mxu1 %v7859_v32  ;;  %4587 = vmatprep.subr.mxu0 %v7865_v59  ;;  %10114 = vst [vmem:[#allocation98_spill] sm:$0xff] %v7871_v18  ;;  %10116 = vst [vmem:[#allocation102_spill] sm:$0xff] %v7883_v16  ;;  %v7889_v32 = vld [vmem:[%s9448_s3 + $0x188] sm:$0xff] }
 0x246   :  { %4626 = vmatpush3.msra.mxu1 %v7871_v18  ;;  %4588 = vmatpush3.msra.mxu0 %v7877_v52  ;;  %10117 = vst [vmem:[#allocation99_spill] sm:$0xff] %v7889_v32  ;;  %v7895_v18 = vld [vmem:[%s9448_s3 + $0x220] sm:$0xff]  ;;  %v7901_v52 = vld [vmem:[%s9448_s3 + $0x108] sm:$0xff] }
 0x247   :  { %4627 = vmatprep.subr.mxu1 %v7883_v16  ;;  %4589 = vmatprep.subr.mxu0 %v7889_v32  ;;  %10118 = vst [vmem:[#allocation68_spill] sm:$0xff] %v7895_v18  ;;  %10119 = vst [vmem:[#allocation100_spill] sm:$0xff] %v7901_v52  ;;  %v7908_v32 = vld [vmem:[%s9448_s3 + $0x298] sm:$0xff] }
 0x248   :  { %4628 = vmatpush3.msra.mxu1 %v7895_v18  ;;  %4590 = vmatpush3.msra.mxu0 %v7901_v52  ;;  %10120 = vst [vmem:[#allocation69_spill] sm:$0xff] %v7908_v32  ;;  %v7914_v18 = vld [vmem:[%s9448_s3 + $0x180] sm:$0xff]  ;;  %v930_v52 = vadd.f32 %v7157_v3, %v7682_v51  ;;  %v7924_v16 = vld [vmem:[%s9448_s3 + $0x218] sm:$0xff]  ;;  %v10126_v3 = vmax.f32 %v7854_v54, 0.0 }
 0x249   :  { %4629 = vmatprep.subr.mxu1 %v7908_v32  ;;  %10121 = vst [vmem:[#allocation103_spill] sm:$0xff] %v7914_v18  ;;  %4591 = vmatprep.subr.mxu0 %v7914_v18  ;;  %v7917_v59 = vpop.f32.mrf.mxu0  ;;  %10123 = vst [vmem:[#allocation104_spill] sm:$0xff] %v7924_v16  ;;  %v7930_v32 = vld [vmem:[%s9448_s3 + $0x100] sm:$0xff] }
 0x24a   :  { %10122 = vst [vmem:[#allocation70_spill] sm:$0xff] %v7917_v59  ;;  %4630 = vmatpush3.msra.mxu1 %v7924_v16  ;;  %10124 = vst [vmem:[#allocation71_spill] sm:$0xff] %v7930_v32  ;;  %4592 = vmatpush3.msra.mxu0 %v7930_v32  ;;  %v7936_v59 = vld [vmem:[%s9448_s3 + $0x290] sm:$0xff]  ;;  %v7952_v32 = vld [vmem:[%s9448_s3 + $0x3f8] sm:$0xff] }
 0x24b   :  { %10125 = vst [vmem:[#allocation106_spill] sm:$0xff] %v7936_v59  ;;  %4631 = vmatprep.subr.mxu1 %v7936_v59  ;;  %2233 = vmatmul.mubr.f32.vlgmr.msra.gmra.mxu0 %v10126_v3  ;;  %v7941_v18 = vpop.f32.mrf.mxu0  ;;  %v7946_v16 = vld [vmem:[%s9448_s3 + $0x210] sm:$0xff]  ;;  %10129 = vst [vmem:[#allocation74_spill] sm:$0xff] %v7952_v32  ;;  %v7959_v3 = vld [vmem:[%s9448_s3 + $0x288] sm:$0xff] }
 0x24c   :  { %10127 = vst [vmem:[#allocation72_spill] sm:$0xff] %v7941_v18  ;;  %10128 = vst [vmem:[#allocation73_spill] sm:$0xff] %v7946_v16  ;;  %4632 = vmatpush3.msra.mxu1 %v7946_v16  ;;  %4649 = vmatprep.subr.mxu0 %v7952_v32  ;;  %v1031_v16 = vadd.f32 %v7127_v27, %v930_v52  ;;  %v7968_v59 = vld [vmem:[%s9448_s3 + $0x378] sm:$0xff]  ;;  %v7974_v32 = vld [vmem:[%s9448_s3 + $0x208] sm:$0xff] }
 0x24d   :  { %2237 = vmatprep.mubr.f32.mxu0 %v6773_v53  ;;  %10130 = vst [vmem:[#allocation75_spill] sm:$0xff] %v7959_v3  ;;  %4633 = vmatprep.subr.mxu1 %v7959_v3  ;;  %v7962_v18 = vpop.f32.mrf.mxu0  ;;  %10132 = vst [vmem:[#allocation110_spill] sm:$0xff] %v7968_v59  ;;  %v7986_v27 = vld [vmem:[%s9448_s3 + $0x280] sm:$0xff] }
 0x24e   :  { %10131 = vst [vmem:[#allocation76_spill] sm:$0xff] %v7962_v18  ;;  %4650 = vmatpush3.msra.mxu0 %v7968_v59  ;;  %10133 = vst [vmem:[#allocation77_spill] sm:$0xff] %v7974_v32  ;;  %4634 = vmatpush3.msra.mxu1 %v7974_v32  ;;  %v7980_v18 = vld [vmem:[%s9448_s3 + $0x3f0] sm:$0xff]  ;;  %v936_v32 = vadd.f32 %v7173_v41, %v7682_v51  ;;  %v8011_v41 = vld [vmem:[%s9448_s3 + $0x3e8] sm:$0xff] }
 0x24f   :  { %10134 = vst [vmem:[#allocation112_spill] sm:$0xff] %v7980_v18  ;;  %4651 = vmatprep.subr.mxu0 %v7980_v18  ;;  %10135 = vst [vmem:[#allocation78_spill] sm:$0xff] %v7986_v27  ;;  %4635 = vmatprep.subr.mxu1 %v7986_v27  ;;  %v7989_v52 = vpop.f32.mrf.mxu1  ;;  %v7991_v3 = vpop.f32.mrf.mxu0  ;;  %v7998_v59 = vld [vmem:[%s9448_s3 + $0x370] sm:$0xff]  ;;  %v8004_v18 = vld [vmem:[%s9448_s3 + $0x200] sm:$0xff] }
 0x250   :  { %10136 = vst [vmem:[#allocation113_spill] sm:$0xff] %v7989_v52  ;;  %10137 = vst [vmem:[#allocation79_spill] sm:$0xff] %v7991_v3  ;;  %4652 = vmatpush3.msra.mxu0 %v7998_v59  ;;  %4636 = vmatpush3.msra.mxu1 %v8004_v18  ;;  %v8016_v3 = vmax.f32 %v1031_v16, 0.0  ;;  %v8029_v27 = vld [vmem:[%s9448_s3 + $0x478] sm:$0xff] }
 0x251   :  { %10138 = vst [vmem:[#allocation115_spill] sm:$0xff] %v7998_v59  ;;  %10139 = vst [vmem:[#allocation80_spill] sm:$0xff] %v8004_v18  ;;  %2238 = vmatmul.mubr.f32.gmra.mxu0 %v7794_v39  ;;  %4653 = vmatprep.subr.mxu0 %v8011_v41  ;;  %v8014_v52 = vpop.f32.mrf.mxu1  ;;  %v8023_v18 = vld [vmem:[%s9448_s3 + $0x368] sm:$0xff]  ;;  %v8054_v39 = vld [vmem:[%s9448_s3 + $0x470] sm:$0xff] }
 0x252   :  { %10140 = vst [vmem:[#allocation116_spill] sm:$0xff] %v8011_v41  ;;  %10141 = vst [vmem:[#allocation81_spill] sm:$0xff] %v8014_v52  ;;  %2242 = vmatprep.mubr.f32.mxu0 %v6825_v48  ;;  %2318 = vmatmul.mubr.f32.vlgmr.msra.gmra.mxu1 %v7215_v62  ;;  %v1037_v52 = vadd.f32 %v7150_v19, %v936_v32  ;;  %v8037_v41 = vld [vmem:[%s9448_s3 + $0x3e0] sm:$0xff]  ;;  %v942_v32 = vadd.f32 %v7191_v57, %v7682_v51 }
 0x253   :  { %10142 = vst [vmem:[#allocation118_spill] sm:$0xff] %v8023_v18  ;;  %4654 = vmatpush3.msra.mxu0 %v8023_v18  ;;  %10143 = vst [vmem:[#allocation82_spill] sm:$0xff] %v8029_v27  ;;  %5395 = vmatprep.subr.mxu1 %v8029_v27  ;;  %v4207_v16 = vpop.f32.mrf.mxu0  ;;  %v8044_v18 = vld [vmem:[%s9448_s3 + $0x360] sm:$0xff] }
 0x254   :  { %2322 = vmatprep.mubr.f32.mxu1 %v8016_v3  ;;  %10144 = vst [vmem:[#allocation119_spill] sm:$0xff] %v8037_v41  ;;  %4655 = vmatprep.subr.mxu0 %v8037_v41  ;;  %10145 = vst [vmem:[#allocation83_spill] sm:$0xff] %v8044_v18 }
 0x255   :  { %5396 = vmatpush3.msra.mxu1 %v8029_v27  ;;  %4656 = vmatpush3.msra.mxu0 %v8044_v18  ;;  %v8047_v59 = vpop.f32.mrf.mxu1  ;;  %v4208_v19 = vpop.f32.mrf.mxu0  ;;  %10147 = vst [vmem:[#allocation84_spill] sm:$0xff] %v8054_v39  ;;  %v8061_v18 = vld [vmem:[%s9448_s3 + $0x3d8] sm:$0xff] }
 0x256   :  { %10146 = vst [vmem:[#allocation121_spill] sm:$0xff] %v8047_v59  ;;  %5397 = vmatprep.subr.mxu1 %v8054_v39  ;;  %2243 = vmatmul.mubr.f32.gmra.mxu0 %v8016_v3  ;;  %v4209_v27 = vadd.f32 %v4208_v19, %v4207_v16  ;;  %10148 = vst [vmem:[#allocation122_spill] sm:$0xff] %v8061_v18  ;;  %v8067_v59 = vmax.f32 %v1037_v52, 0.0  ;;  %v8075_v16 = vld [vmem:[%s9448_s3 + $0x358] sm:$0xff]  ;;  %v8081_v19 = vld [vmem:[%s9448_s3 + $0x468] sm:$0xff] }
 0x257   :  { %4657 = vmatprep.subr.mxu0 %v8061_v18  ;;  %5398 = vmatpush3.msra.mxu1 %v8054_v39  ;;  %v8065_v57 = vpop.f32.mrf.mxu1  ;;  %10150 = vst [vmem:[#allocation124_spill] sm:$0xff] %v8075_v16  ;;  %10151 = vst [vmem:[#allocation86_spill] sm:$0xff] %v8081_v19  ;;  %v8119_v18 = vld [vmem:[%s9448_s3 + $0x348] sm:$0xff] }
 0x258   :  { %10149 = vst [vmem:[#allocation85_spill] sm:$0xff] %v8065_v57  ;;  %2247 = vmatprep.mubr.f32.mxu0 %v6876_v13  ;;  %2323 = vmatmul.mubr.f32.gmra.mxu1 %v7233_v17  ;;  %v1395_v41 = vadd.f32 %v4209_v27, %v7641_v15  ;;  %v1043_v57 = vadd.f32 %v7182_v0, %v942_v32  ;;  %v8089_v15 = vld [vmem:[%s9448_s3 + $0x3d0] sm:$0xff]  ;;  %v8102_v32 = vld [vmem:[%s9448_s3 + $0x460] sm:$0xff] }
 0x259   :  { %4658 = vmatpush3.msra.mxu0 %v8075_v16  ;;  %5399 = vmatprep.subr.mxu1 %v8081_v19  ;;  %v4210_v52 = vpop.f32.mrf.mxu0  ;;  %10152 = vst [vmem:[#allocation125_spill] sm:$0xff] %v8089_v15  ;;  %v8096_v27 = vld [vmem:[%s9448_s3 + $0x350] sm:$0xff]  ;;  %10154 = vst [vmem:[#allocation127_spill] sm:$0xff] %v8102_v32 }
 0x25a   :  { %2327 = vmatprep.mubr.f32.mxu1 %v8067_v59  ;;  %4659 = vmatprep.subr.mxu0 %v8089_v15  ;;  %10153 = vst [vmem:[#allocation87_spill] sm:$0xff] %v8096_v27  ;;  %v8113_v16 = vmax.f32 %v1043_v57, 0.0  ;;  %v8134_v57 = vld [vmem:[%s9448_s3 + $0x3c0] sm:$0xff] }
 0x25b   :  { %5400 = vmatpush3.msra.mxu1 %v8081_v19  ;;  %4660 = vmatpush3.msra.mxu0 %v8096_v27  ;;  %v4251_v39 = vpop.f32.mrf.mxu1  ;;  %v4211_v0 = vpop.f32.mrf.mxu0  ;;  %v8109_v19 = vld [vmem:[%s9448_s3 + $0x3c8] sm:$0xff]  ;;  %10156 = vst [vmem:[#allocation88_spill] sm:$0xff] %v8134_v57 }
 0x25c   :  { %5401 = vmatprep.subr.mxu1 %v8102_v32  ;;  %2248 = vmatmul.mubr.f32.gmra.mxu0 %v8067_v59  ;;  %v4212_v15 = vadd.f32 %v4211_v0, %v4210_v52 }
 0x25d   :  { %4661 = vmatprep.subr.mxu0 %v8109_v19  ;;  %5402 = vmatpush3.msra.mxu1 %v8102_v32  ;;  %v4252_v27 = vpop.f32.mrf.mxu1  ;;  %v8127_v32 = vld [vmem:[%s9448_s3 + $0x458] sm:$0xff] }
 0x25e   :  { %2328 = vmatmul.mubr.f32.gmra.mxu1 %v7248_v56  ;;  %4662 = vmatpush3.msra.mxu0 %v8119_v18  ;;  %v1400_v52 = vadd.f32 %v4212_v15, %v7703_v5  ;;  %v4253_v0 = vadd.f32 %v4252_v27, %v4251_v39  ;;  %10155 = vst [vmem:[#allocation128_spill] sm:$0xff] %v8127_v32  ;;  %v8143_v15 = vld [vmem:[%s9448_s3 + $0x340] sm:$0xff]  ;;  %v8149_v27 = vld [vmem:[%s9448_s3 + $0x450] sm:$0xff] }
 0x25f   :  { %2402 = vmatprep.mubr.f32.mxu0 %v7233_v17  ;;  %5403 = vmatprep.subr.mxu1 %v8127_v32  ;;  %10157 = vst [vmem:[#allocation130_spill] sm:$0xff] %v8143_v15  ;;  %10158 = vst [vmem:[#allocation101_spill] sm:$0xff] %v8149_v27 }
 0x260   :  { %2332 = vmatprep.mubr.f32.mxu1 %v8113_v16  ;;  %4663 = vmatprep.subr.mxu0 %v8134_v57  ;;  %v8137_v5 = vadd.f32 %v4253_v0, %v1395_v41  ;;  %v4254_v39 = vpop.f32.mrf.mxu1  ;;  %v8155_v41 = vld [vmem:[%s9448_s3 + $0x3b8] sm:$0xff]  ;;  %v8169_v57 = vld [vmem:[%s9448_s3 + $0x448] sm:$0xff] }
 0x261   :  { %5404 = vmatpush3.msra.mxu1 %v8127_v32  ;;  %4664 = vmatpush3.msra.mxu0 %v8143_v15  ;;  %v8162_v32 = vld [vmem:[%s9448_s3 + $0x338] sm:$0xff]  ;;  %10160 = vst [vmem:[#allocation133_spill] sm:$0xff] %v8169_v57 }
 0x262   :  { %5405 = vmatprep.subr.mxu1 %v8149_v27  ;;  %4665 = vmatprep.subr.mxu0 %v8155_v41  ;;  %v4255_v0 = vpop.f32.mrf.mxu1  ;;  %10159 = vst [vmem:[#allocation132_spill] sm:$0xff] %v8162_v32 }
 0x263   :  { %5406 = vmatpush3.msra.mxu1 %v8149_v27  ;;  %4666 = vmatpush3.msra.mxu0 %v8162_v32  ;;  %v4256_v15 = vadd.f32 %v4255_v0, %v4254_v39  ;;  %v8175_v27 = vld [vmem:[%s9448_s3 + $0x3b0] sm:$0xff]  ;;  %v8191_v0 = vld [vmem:[%s9448_s3 + $0x440] sm:$0xff] }
 0x264   :  { %2333 = vmatmul.mubr.f32.gmra.mxu1 %v7317_v26  ;;  %5407 = vmatprep.subr.mxu1 %v8169_v57  ;;  %v8185_v39 = vld [vmem:[%s9448_s3 + $0x330] sm:$0xff]  ;;  %10162 = vst [vmem:[#allocation107_spill] sm:$0xff] %v8191_v0 }
 0x265   :  { %4667 = vmatprep.subr.mxu0 %v8175_v27  ;;  %5408 = vmatpush3.msra.mxu1 %v8169_v57  ;;  %v8179_v32 = vadd.f32 %v4256_v15, %v1400_v52  ;;  %10161 = vst [vmem:[#allocation105_spill] sm:$0xff] %v8185_v39  ;;  %v8197_v52 = vld [vmem:[%s9448_s3 + $0x3a8] sm:$0xff]  ;;  %v8210_v57 = vld [vmem:[%s9448_s3 + $0x438] sm:$0xff] }
 0x266   :  { %5427 = vmatprep.mubr.f32.mxu1 %v8016_v3  ;;  %4668 = vmatpush3.msra.mxu0 %v8185_v39  ;;  %10163 = vst [vmem:[#allocation109_spill] sm:$0xff] %v8197_v52  ;;  %v8204_v15 = vld [vmem:[%s9448_s3 + $0x328] sm:$0xff]  ;;  %10165 = vst [vmem:[#allocation111_spill] sm:$0xff] %v8210_v57  ;;  %v8288_v39 = vld [vmem:[%s9448_s3 + $0x418] sm:$0xff] }
 0x267   :  { %5409 = vmatprep.subr.mxu1 %v8191_v0  ;;  %4669 = vmatprep.subr.mxu0 %v8197_v52  ;;  %10164 = vst [vmem:[#allocation108_spill] sm:$0xff] %v8204_v15  ;;  %v8216_v52 = vld [vmem:[%s9448_s3 + $0x3a0] sm:$0xff]  ;;  %10178 = vst [vmem:[#allocation139_spill] sm:$0xff] %v8288_v39 }
 0x268   :  { %5410 = vmatpush3.msra.mxu1 %v8191_v0  ;;  %4670 = vmatpush3.msra.mxu0 %v8204_v15  ;;  %10166 = vst [vmem:[#allocation114_spill] sm:$0xff] %v8216_v52  ;;  %v8223_v0 = vld [vmem:[%s9448_s3 + $0x320] sm:$0xff]  ;;  %v8229_v15 = vld [vmem:[%s9448_s3 + $0x430] sm:$0xff] }
 0x269   :  { %5411 = vmatprep.subr.mxu1 %v8210_v57  ;;  %4671 = vmatprep.subr.mxu0 %v8216_v52  ;;  %10167 = vst [vmem:[#allocation117_spill] sm:$0xff] %v8223_v0  ;;  %10168 = vst [vmem:[#allocation120_spill] sm:$0xff] %v8229_v15  ;;  %v8235_v52 = vld [vmem:[%s9448_s3 + $0x398] sm:$0xff] }
 0x26a   :  { %5412 = vmatpush3.msra.mxu1 %v8210_v57  ;;  %4672 = vmatpush3.msra.mxu0 %v8223_v0  ;;  %10169 = vst [vmem:[#allocation123_spill] sm:$0xff] %v8235_v52  ;;  %v8242_v57 = vld [vmem:[%s9448_s3 + $0x318] sm:$0xff]  ;;  %v8248_v0 = vld [vmem:[%s9448_s3 + $0x428] sm:$0xff] }
 0x26b   :  { %5413 = vmatprep.subr.mxu1 %v8229_v15  ;;  %4673 = vmatprep.subr.mxu0 %v8235_v52  ;;  %10170 = vst [vmem:[#allocation126_spill] sm:$0xff] %v8242_v57  ;;  %10171 = vst [vmem:[#allocation129_spill] sm:$0xff] %v8248_v0  ;;  %v8254_v52 = vld [vmem:[%s9448_s3 + $0x390] sm:$0xff] }
 0x26c   :  { %5414 = vmatpush3.msra.mxu1 %v8229_v15  ;;  %4674 = vmatpush3.msra.mxu0 %v8242_v57  ;;  %10172 = vst [vmem:[#allocation131_spill] sm:$0xff] %v8254_v52  ;;  %v8261_v15 = vld [vmem:[%s9448_s3 + $0x310] sm:$0xff]  ;;  %v8267_v57 = vld [vmem:[%s9448_s3 + $0x420] sm:$0xff] }
 0x26d   :  { %5415 = vmatprep.subr.mxu1 %v8248_v0  ;;  %4675 = vmatprep.subr.mxu0 %v8254_v52  ;;  %10173 = vst [vmem:[#allocation134_spill] sm:$0xff] %v8261_v15  ;;  %10174 = vst [vmem:[#allocation135_spill] sm:$0xff] %v8267_v57  ;;  %v8273_v52 = vld [vmem:[%s9448_s3 + $0x388] sm:$0xff] }
 0x26e   :  { %5416 = vmatpush3.msra.mxu1 %v8248_v0  ;;  %4676 = vmatpush3.msra.mxu0 %v8261_v15  ;;  %10175 = vst [vmem:[#allocation136_spill] sm:$0xff] %v8273_v52  ;;  %v8282_v15 = vld [vmem:[%s9448_s3 + $0x308] sm:$0xff] }
 0x26f   :  { %5417 = vmatprep.subr.mxu1 %v8267_v57  ;;  %4677 = vmatprep.subr.mxu0 %v8273_v52  ;;  %v8276_v0 = vpop.f32.mrf.mxu0  ;;  %10177 = vst [vmem:[#allocation138_spill] sm:$0xff] %v8282_v15  ;;  %v8309_v52 = vld [vmem:[%s9448_s3 + $0x410] sm:$0xff] }
 0x270   :  { %10176 = vst [vmem:[#allocation137_spill] sm:$0xff] %v8276_v0  ;;  %5418 = vmatpush3.msra.mxu1 %v8267_v57  ;;  %4678 = vmatpush3.msra.mxu0 %v8282_v15  ;;  %v8294_v0 = vld [vmem:[%s9448_s3 + $0x380] sm:$0xff]  ;;  %10181 = vst [vmem:[#allocation142_spill] sm:$0xff] %v8309_v52 }
 0x271   :  { %5419 = vmatprep.subr.mxu1 %v8288_v39  ;;  %4679 = vmatprep.subr.mxu0 %v8294_v0  ;;  %v8297_v57 = vpop.f32.mrf.mxu0  ;;  %v8303_v15 = vld [vmem:[%s9448_s3 + $0x300] sm:$0xff] }
 0x272   :  { %10179 = vst [vmem:[#allocation140_spill] sm:$0xff] %v8297_v57  ;;  %5420 = vmatpush3.msra.mxu1 %v8288_v39  ;;  %10180 = vst [vmem:[#allocation141_spill] sm:$0xff] %v8303_v15  ;;  %4680 = vmatpush3.msra.mxu0 %v8303_v15  ;;  %v8319_v57 = vld [vmem:[%s9448_s3 + $0x408] sm:$0xff]  ;;  %v948_v15 = vadd.f32 %v7207_v29, %v7682_v51 }
 0x273   :  { %5421 = vmatprep.subr.mxu1 %v8309_v52  ;;  %2403 = vmatmul.mubr.f32.vlgmr.msra.gmra.mxu0 %v6773_v53 }
 0x274   :  { %5422 = vmatpush3.msra.mxu1 %v8309_v52  ;;  %4713 = vmatprep.subr.mxu0 %v7304_v20  ;;  %v8334_v20 = vld [vmem:[%s9448_s3 + $0x400] sm:$0xff]  ;;  %v8344_v29 = vadd.f32 %v7421_v28, %v948_v15  ;;  %v10206_v15 = vld [vmem:[#allocation18_spill] sm:$0xff] }
 0x275   :  { %2407 = vmatprep.mubr.f32.mxu0 %v7248_v56  ;;  %5423 = vmatprep.subr.mxu1 %v8319_v57  ;;  %v8322_v39 = vpop.f32.mrf.mxu0 }
 0x276   :  { %4714 = vmatpush3.msra.mxu0 %v7312_v4  ;;  %5424 = vmatpush3.msra.mxu1 %v8319_v57  ;;  %v8328_v53 = vpop.f32.mrf.mxu1  ;;  %v1087_v28 = vmax.f32 %v8344_v29, 0.0 }
 0x277   :  { %4715 = vmatprep.subr.mxu0 %v7322_v1  ;;  %5425 = vmatprep.subr.mxu1 %v8334_v20  ;;  %v8337_v52 = vpop.f32.mrf.mxu0 }
 0x278   :  { %4716 = vmatpush3.msra.mxu0 %v7330_v21  ;;  %5426 = vmatpush3.msra.mxu1 %v8334_v20  ;;  %v8348_v4 = vpop.f32.mrf.mxu1 }
 0x279   :  { %2408 = vmatmul.mubr.f32.gmra.mxu0 %v6825_v48  ;;  %4717 = vmatprep.subr.mxu0 %v7339_v36 }
 0x27a   :  { %2412 = vmatprep.mubr.f32.mxu0 %v7317_v26  ;;  %5428 = vmatmul.mubr.f32.vlgmr.msra.gmra.mxu1 %v8067_v59  ;;  %v4295_v1 = vpop.f32.mrf.mxu0 }
 0x27b   :  { %4718 = vmatpush3.msra.mxu0 %v7347_v38  ;;  %4757 = vmatprep.subr.mxu1 %v7525_v46  ;;  %v8359_v38 = vld [vmem:[#allocation6] sm:$0xf] }
 0x27c   :  { %5430 = vmatprep.mubr.f32.mxu1 %v8113_v16  ;;  %4719 = vmatprep.subr.mxu0 %v7354_v31  ;;  %v4296_v48 = vpop.f32.mrf.mxu0  ;;  %v5356_v21 = vpop.f32.mrf.mxu1 }
 0x27d   :  { %4758 = vmatpush3.msra.mxu1 %v7538_v24  ;;  %4720 = vmatpush3.msra.mxu0 %v7362_v2  ;;  %v4297_v36 = vadd.f32 %v4296_v48, %v4295_v1  ;;  %v10207_v1 = vld [vmem:[#allocation67_spill] sm:$0xff]  ;;  %v10208_v48 = vld [vmem:[#allocation28_spill] sm:$0xff] }
 0x27e   :  { %4759 = vmatprep.subr.mxu1 %v7554_v42  ;;  %2413 = vmatmul.mubr.f32.gmra.mxu0 %v6876_v13  ;;  %v1649_v51 = vpop.f32.mrf.mxu1  ;;  %v10182_v13 = vld [vmem:[#allocation54_spill] sm:$0xff] }
 0x27f   :  { %4721 = vmatprep.subr.mxu0 %v7371_v35  ;;  %4760 = vmatpush3.msra.mxu1 %v7566_v22  ;;  %v1565_v31 = vadd.f32 %v4297_v36, %v8137_v5  ;;  %v8371_v42 = vrot.slane %v8359_v38, %v10182_v13  ;;  %v10205_v5 = vld [vmem:[#allocation66_spill] sm:$0xff]  ;;  %v10210_v36 = vld [vmem:[#allocation99_spill] sm:$0xff] }
 0x280   :  { %2417 = vmatprep.mubr.f32.mxu0 %v7549_v49  ;;  %5431 = vmatmul.mubr.f32.gmra.mxu1 %v1087_v28  ;;  %v4298_v2 = vpop.f32.mrf.mxu0  ;;  %v8843_v13 = vld [vmem:[#allocation7 + $0x2d0] sm:$0xff] }
 0x281   :  { %4722 = vmatpush3.msra.mxu0 %v7379_v11  ;;  %4761 = vmatprep.subr.mxu1 %v7581_v10  ;;  %v1650_v46 = vadd.f32 %v1649_v51, %v1565_v31  ;;  %v10211_v31 = vld [vmem:[#allocation44_spill] sm:$0xff] }
 0x282   :  { %4723 = vmatprep.subr.mxu0 %v7386_v23  ;;  %4762 = vmatpush3.msra.mxu1 %v7588_v7  ;;  %v4299_v35 = vpop.f32.mrf.mxu0  ;;  %v10183_v7 = vmax.f32 %v7854_v54, 0.0  ;;  %v10186_v23 = vld [vmem:[#allocation48_spill] sm:$0xff]  ;;  %v10198_v54 = vld [vmem:[#allocation41_spill] sm:$0xff] }
 0x283   :  { %2657 = vmatprep.mubr.f32.mxu1 %v7215_v62  ;;  %4724 = vmatpush3.msra.mxu0 %v7393_v40  ;;  %v4300_v22 = vadd.f32 %v4299_v35, %v4298_v2  ;;  %v8378_v24 = vadd.f32 %v8371_v42, %v1650_v46  ;;  %v10187_v40 = vld [vmem:[#allocation37_spill] sm:$0xff]  ;;  %v10212_v2 = vld [vmem:[#allocation100_spill] sm:$0xff] }
 0x284   :  { %4763 = vmatprep.subr.mxu1 %v7602_v6  ;;  %2418 = vmatmul.mubr.f32.gmra.mxu0 %v7076_v45  ;;  %v10201_v6 = vld [vmem:[#allocation64_spill] sm:$0xff]  ;;  %v10213_v35 = vld [vmem:[#allocation29_spill] sm:$0xff] }
 0x285   :  { %4725 = vmatprep.subr.mxu0 %v7402_v63  ;;  %4764 = vmatpush3.msra.mxu1 %v7614_v9  ;;  %v1570_v10 = vadd.f32 %v4300_v22, %v8179_v32  ;;  %v10184_v9 = vld [vmem:[#allocation36_spill] sm:$0xff]  ;;  %v10188_v63 = vld [vmem:[#allocation57_spill] sm:$0xff]  ;;  %v10214_v22 = vld [vmem:[#allocation103_spill] sm:$0xff] }
 0x286   :  { %4726 = vmatpush3.msra.mxu0 %v7409_v47  ;;  %2572 = vmatprep.mubr.f32.mxu0 %v10183_v7  ;;  %v10189_v47 = vld [vmem:[#allocation38_spill] sm:$0xff]  ;;  %v10203_v32 = vld [vmem:[#allocation65_spill] sm:$0xff]  ;;  %v10215_v7 = vld [vmem:[#allocation32_spill] sm:$0xff] }
 0x287   :  { %4765 = vmatprep.subr.mxu1 %v7626_v25  ;;  %4727 = vmatprep.subr.mxu0 %v7417_v43  ;;  %v1655_v11 = vadd.f32 %v5356_v21, %v1570_v10  ;;  %v10185_v25 = vld [vmem:[#allocation21_spill] sm:$0xff]  ;;  %v10190_v43 = vld [vmem:[#allocation58_spill] sm:$0xff] }
 0x288   :  { %4766 = vmatpush3.msra.mxu1 %v7638_v34  ;;  %4728 = vmatpush3.msra.mxu0 %v7426_v55  ;;  %v10192_v55 = vld [vmem:[#allocation59_spill] sm:$0xff]  ;;  %v10196_v34 = vld [vmem:[#allocation25_spill] sm:$0xff] }
 0x289   :  { %4767 = vmatprep.subr.mxu1 %v7655_v12  ;;  %4729 = vmatprep.subr.mxu0 %v7433_v30  ;;  %v8395_v45 = vadd.f32 %v8371_v42, %v1655_v11  ;;  %v10193_v30 = vld [vmem:[#allocation39_spill] sm:$0xff]  ;;  %v10200_v12 = vld [vmem:[#allocation26_spill] sm:$0xff]  ;;  %v10209_v21 = vld [vmem:[#allocation61_spill] sm:$0xff]  ;;  %v1058_v11 = vmax.f32 %v10215_v7, 0.0 }
 0x28a   :  { %4768 = vmatpush3.msra.mxu1 %v7667_v61  ;;  %4730 = vmatpush3.msra.mxu0 %v7440_v8  ;;  %v10194_v8 = vld [vmem:[#allocation60_spill] sm:$0xff]  ;;  %v10202_v61 = vld [vmem:[#allocation27_spill] sm:$0xff] }
 0x28b   :  { %4769 = vmatprep.subr.mxu1 %v7679_v33  ;;  %4731 = vmatprep.subr.mxu0 %v7447_v60  ;;  %v10195_v60 = vld [vmem:[#allocation40_spill] sm:$0xff]  ;;  %v10199_v33 = vld [vmem:[#allocation63_spill] sm:$0xff] }
 0x28c   :  { %4770 = vmatpush3.msra.mxu1 %v7693_v14  ;;  %4732 = vmatpush3.msra.mxu0 %v7456_v37  ;;  %v10191_v14 = vld [vmem:[#allocation23_spill] sm:$0xff]  ;;  %v10197_v37 = vld [vmem:[#allocation62_spill] sm:$0xff] }
 0x28d   :  { %4771 = vmatprep.subr.mxu1 %v7709_v50  ;;  %4733 = vmatprep.subr.mxu0 %v10184_v9  ;;  %v10216_v9 = vld [vmem:[#allocation45_spill] sm:$0xff] }
 0x28e   :  { %4772 = vmatpush3.msra.mxu1 %v7723_v44  ;;  %4734 = vmatpush3.msra.mxu0 %v10185_v25  ;;  %v10217_v25 = vld [vmem:[#allocation71_spill] sm:$0xff] }
 0x28f   :  { %4773 = vmatprep.subr.mxu1 %v10186_v23  ;;  %4735 = vmatprep.subr.mxu0 %v10187_v40  ;;  %v10218_v40 = vld [vmem:[#allocation30_spill] sm:$0xff] }
 0x290   :  { %4774 = vmatpush3.msra.mxu1 %v10188_v63  ;;  %4736 = vmatpush3.msra.mxu0 %v10189_v47  ;;  %v10219_v47 = vld [vmem:[#allocation46_spill] sm:$0xff] }
 0x291   :  { %4775 = vmatprep.subr.mxu1 %v10190_v43  ;;  %4737 = vmatprep.subr.mxu0 %v10191_v14  ;;  %v10220_v43 = vld [vmem:[#allocation74_spill] sm:$0xff]  ;;  %v10221_v14 = vld [vmem:[#allocation56_spill] sm:$0xff] }
 0x292   :  { %4776 = vmatpush3.msra.mxu1 %v10192_v55  ;;  %4738 = vmatpush3.msra.mxu0 %v10193_v30 }
 0x293   :  { %4777 = vmatprep.subr.mxu1 %v10194_v8  ;;  %4739 = vmatprep.subr.mxu0 %v10195_v60  ;;  %v10222_v8 = vld [vmem:[#allocation110_spill] sm:$0xff] }
 0x294   :  { %4778 = vmatpush3.msra.mxu1 %v7799_v58  ;;  %4740 = vmatpush3.msra.mxu0 %v10196_v34  ;;  %v10204_v58 = vld [vmem:[#allocation89_spill] sm:$0xff] }
 0x295   :  { %4779 = vmatprep.subr.mxu1 %v10197_v37  ;;  %4741 = vmatprep.subr.mxu0 %v10198_v54  ;;  %v8421_v50 = vpop.f32.mrf.mxu0  ;;  %v10224_v34 = vld [vmem:[#allocation17_spill] sm:$0xff]  ;;  %v10225_v54 = vld [vmem:[#allocation112_spill] sm:$0xff] }
 0x296   :  { %4780 = vmatpush3.msra.mxu1 %v10199_v33  ;;  %4742 = vmatpush3.msra.mxu0 %v10200_v12  ;;  %v1064_v37 = vmax.f32 %v10224_v34, 0.0  ;;  %v10226_v12 = vld [vmem:[#allocation47_spill] sm:$0xff] }
 0x297   :  { %4781 = vmatprep.subr.mxu1 %v10201_v6  ;;  %4743 = vmatprep.subr.mxu0 %v10202_v61  ;;  %v8427_v44 = vpop.f32.mrf.mxu0  ;;  %v10227_v6 = vld [vmem:[#allocation115_spill] sm:$0xff] }
 0x298   :  { %4782 = vmatpush3.msra.mxu1 %v10203_v32  ;;  %4744 = vmatpush3.msra.mxu0 %v10204_v58  ;;  %v10228_v32 = vld [vmem:[#allocation31_spill] sm:$0xff]  ;;  %v10229_v58 = vld [vmem:[#allocation116_spill] sm:$0xff] }
 0x299   :  { %4783 = vmatprep.subr.mxu1 %v10205_v5  ;;  %2573 = vmatmul.mubr.f32.vlgmr.msra.gmra.mxu0 %v10206_v15  ;;  %v10230_v5 = vld [vmem:[#allocation97_spill] sm:$0xff] }
 0x29a   :  { %4784 = vmatpush3.msra.mxu1 %v10207_v1  ;;  %4801 = vmatprep.subr.mxu0 %v10208_v48  ;;  %v10231_v48 = vld [vmem:[#allocation118_spill] sm:$0xff] }
 0x29b   :  { %2577 = vmatprep.mubr.f32.mxu0 %v10209_v21  ;;  %4785 = vmatprep.subr.mxu1 %v10210_v36  ;;  %v8437_v51 = vpop.f32.mrf.mxu0  ;;  %v10232_v36 = vld [vmem:[#allocation92_spill] sm:$0xff] }
 0x29c   :  { %4802 = vmatpush3.msra.mxu0 %v10211_v31  ;;  %4786 = vmatpush3.msra.mxu1 %v10212_v2  ;;  %v8441_v46 = vpop.f32.mrf.mxu1  ;;  %v10233_v2 = vld [vmem:[#allocation33_spill] sm:$0xff] }
 0x29d   :  { %4803 = vmatprep.subr.mxu0 %v10213_v35  ;;  %4787 = vmatprep.subr.mxu1 %v10214_v22  ;;  %v8445_v10 = vpop.f32.mrf.mxu0  ;;  %v8478_v35 = vmax.f32 %v10233_v2, 0.0  ;;  %v10234_v22 = vld [vmem:[#allocation119_spill] sm:$0xff]  ;;  %v10254_v2 = vld [vmem:[#allocation132_spill] sm:$0xff] }
 0x29e   :  { %4804 = vmatpush3.msra.mxu0 %v10216_v9  ;;  %4788 = vmatpush3.msra.mxu1 %v10217_v25  ;;  %v8450_v23 = vpop.f32.mrf.mxu1  ;;  %v10236_v9 = vld [vmem:[#allocation83_spill] sm:$0xff] }
 0x29f   :  { %2578 = vmatmul.mubr.f32.gmra.mxu0 %v7215_v62  ;;  %4805 = vmatprep.subr.mxu0 %v10218_v40  ;;  %v10223_v62 = vld [vmem:[#allocation90_spill] sm:$0xff] }
 0x2a0   :  { %2582 = vmatprep.mubr.f32.mxu0 %v8016_v3  ;;  %2658 = vmatmul.mubr.f32.vlgmr.msra.gmra.mxu1 %v1058_v11  ;;  %v4359_v63 = vpop.f32.mrf.mxu0  ;;  %v10235_v11 = vld [vmem:[#allocation49_spill] sm:$0xff]  ;;  %v10237_v40 = vld [vmem:[#allocation50_spill] sm:$0xff]  ;;  %10347 = vst [vmem:[#allocation90_spill] sm:$0xff] %v8843_v13 }
 0x2a1   :  { %4806 = vmatpush3.msra.mxu0 %v10219_v47  ;;  %4845 = vmatprep.subr.mxu1 %v10220_v43  ;;  %v10239_v43 = vld [vmem:[#allocation51_spill] sm:$0xff] }
 0x2a2   :  { %2662 = vmatprep.mubr.f32.mxu1 %v7233_v17  ;;  %4807 = vmatprep.subr.mxu0 %v10221_v14  ;;  %v8459_v55 = vpop.f32.mrf.mxu1  ;;  %v4360_v30 = vpop.f32.mrf.mxu0 }
 0x2a3   :  { %4846 = vmatpush3.msra.mxu1 %v10222_v8  ;;  %4808 = vmatpush3.msra.mxu0 %v10223_v62  ;;  %v4361_v60 = vadd.f32 %v4360_v30, %v4359_v63  ;;  %v10238_v63 = vld [vmem:[#allocation122_spill] sm:$0xff]  ;;  %v10240_v30 = vld [vmem:[#allocation124_spill] sm:$0xff] }
 0x2a4   :  { %4847 = vmatprep.subr.mxu1 %v10225_v54  ;;  %2583 = vmatmul.mubr.f32.gmra.mxu0 %v7233_v17  ;;  %v8466_v33 = vpop.f32.mrf.mxu1  ;;  %v10241_v8 = vld [vmem:[#allocation94_spill] sm:$0xff]  ;;  %v10243_v54 = vld [vmem:[#allocation125_spill] sm:$0xff] }
 0x2a5   :  { %4809 = vmatprep.subr.mxu0 %v10226_v12  ;;  %4848 = vmatpush3.msra.mxu1 %v10227_v6  ;;  %v10242_v62 = vld [vmem:[#allocation34_spill] sm:$0xff]  ;;  %v10244_v12 = vld [vmem:[#allocation52_spill] sm:$0xff]  ;;  %v10245_v6 = vld [vmem:[#allocation87_spill] sm:$0xff] }
 0x2a6   :  { %2587 = vmatprep.mubr.f32.mxu0 %v8067_v59  ;;  %2663 = vmatmul.mubr.f32.gmra.mxu1 %v1064_v37  ;;  %v4362_v61 = vpop.f32.mrf.mxu0  ;;  %v8494_v34 = vmax.f32 %v10242_v62, 0.0 }
 0x2a7   :  { %4810 = vmatpush3.msra.mxu0 %v10228_v32  ;;  %4849 = vmatprep.subr.mxu1 %v10229_v58  ;;  %v10247_v32 = vld [vmem:[#allocation93_spill] sm:$0xff] }
 0x2a8   :  { %2667 = vmatprep.mubr.f32.mxu1 %v7248_v56  ;;  %4811 = vmatprep.subr.mxu0 %v10230_v5  ;;  %v4403_v15 = vpop.f32.mrf.mxu1  ;;  %v4363_v1 = vpop.f32.mrf.mxu0  ;;  %v10248_v5 = vld [vmem:[#allocation95_spill] sm:$0xff] }
 0x2a9   :  { %4850 = vmatpush3.msra.mxu1 %v10231_v48  ;;  %4812 = vmatpush3.msra.mxu0 %v10232_v36  ;;  %v4364_v31 = vadd.f32 %v4363_v1, %v4362_v61  ;;  %v10250_v1 = vld [vmem:[#allocation96_spill] sm:$0xff]  ;;  %v10251_v48 = vld [vmem:[#allocation130_spill] sm:$0xff] }
 0x2aa   :  { %4851 = vmatprep.subr.mxu1 %v10234_v22  ;;  %2588 = vmatmul.mubr.f32.gmra.mxu0 %v7248_v56  ;;  %v4404_v7 = vpop.f32.mrf.mxu1  ;;  %v10252_v36 = vld [vmem:[#allocation98_spill] sm:$0xff]  ;;  %v10257_v22 = vld [vmem:[#allocation105_spill] sm:$0xff] }
 0x2ab   :  { %4813 = vmatprep.subr.mxu0 %v10235_v11  ;;  %4852 = vmatpush3.msra.mxu1 %v10236_v9  ;;  %v4405_v25 = vadd.f32 %v4404_v7, %v4403_v15  ;;  %v10249_v15 = vld [vmem:[#allocation88_spill] sm:$0xff]  ;;  %v10259_v11 = vld [vmem:[#allocation109_spill] sm:$0xff]  ;;  %v10260_v9 = vld [vmem:[#allocation106_spill] sm:$0xff] }
 0x2ac   :  { %2668 = vmatmul.mubr.f32.gmra.mxu1 %v8478_v35  ;;  %4814 = vmatpush3.msra.mxu0 %v10237_v40  ;;  %v10258_v7 = vld [vmem:[#allocation104_spill] sm:$0xff]  ;;  %v10263_v40 = vld [vmem:[#allocation114_spill] sm:$0xff] }
 0x2ad   :  { %2742 = vmatprep.mubr.f32.mxu0 %v1064_v37  ;;  %4853 = vmatprep.subr.mxu1 %v10238_v63  ;;  %v8487_v47 = vadd.f32 %v4405_v25, %v4361_v60  ;;  %v10246_v60 = vld [vmem:[#allocation91_spill] sm:$0xff]  ;;  %v10261_v25 = vld [vmem:[#allocation108_spill] sm:$0xff] }
 0x2ae   :  { %2672 = vmatprep.mubr.f32.mxu1 %v7317_v26  ;;  %4815 = vmatprep.subr.mxu0 %v10239_v43  ;;  %v4406_v14 = vpop.f32.mrf.mxu1  ;;  %v10264_v63 = vld [vmem:[#allocation75_spill] sm:$0xff] }
 0x2af   :  { %4854 = vmatpush3.msra.mxu1 %v10240_v30  ;;  %4816 = vmatpush3.msra.mxu0 %v10241_v8  ;;  %v10267_v30 = vld [vmem:[#allocation123_spill] sm:$0xff]  ;;  %v10268_v8 = vld [vmem:[#allocation78_spill] sm:$0xff] }
 0x2b0   :  { %4855 = vmatprep.subr.mxu1 %v10243_v54  ;;  %4817 = vmatprep.subr.mxu0 %v10244_v12  ;;  %v4407_v37 = vpop.f32.mrf.mxu1  ;;  %v10269_v54 = vld [vmem:[#allocation126_spill] sm:$0xff]  ;;  %v10270_v12 = vld [vmem:[#allocation80_spill] sm:$0xff] }
 0x2b1   :  { %4856 = vmatpush3.msra.mxu1 %v10245_v6  ;;  %4818 = vmatpush3.msra.mxu0 %v10246_v60  ;;  %v4408_v61 = vadd.f32 %v4407_v37, %v4406_v14  ;;  %v10266_v14 = vld [vmem:[#allocation77_spill] sm:$0xff]  ;;  %v10271_v37 = vld [vmem:[#allocation131_spill] sm:$0xff]  ;;  %v10272_v6 = vld [vmem:[#allocation134_spill] sm:$0xff] }
 0x2b2   :  { %2673 = vmatmul.mubr.f32.gmra.mxu1 %v8494_v34  ;;  %4857 = vmatprep.subr.mxu1 %v8109_v19  ;;  %v10253_v19 = vld [vmem:[#allocation102_spill] sm:$0xff] }
 0x2b3   :  { %4819 = vmatprep.subr.mxu0 %v10247_v32  ;;  %4858 = vmatpush3.msra.mxu1 %v8119_v18  ;;  %v8504_v58 = vadd.f32 %v4408_v61, %v4364_v31  ;;  %v10255_v18 = vld [vmem:[#allocation68_spill] sm:$0xff]  ;;  %v10256_v31 = vld [vmem:[#allocation69_spill] sm:$0xff]  ;;  %v10273_v60 = vld [vmem:[#allocation82_spill] sm:$0xff] }
 0x2b4   :  { %2827 = vmatprep.mubr.f32.mxu1 %v8016_v3  ;;  %4820 = vmatpush3.msra.mxu0 %v10248_v5  ;;  %v10274_v61 = vld [vmem:[#allocation136_spill] sm:$0xff]  ;;  %v10275_v5 = vld [vmem:[#allocation138_spill] sm:$0xff] }
 0x2b5   :  { %4859 = vmatprep.subr.mxu1 %v10249_v15  ;;  %4821 = vmatprep.subr.mxu0 %v10250_v1  ;;  %v10276_v1 = vld [vmem:[#allocation84_spill] sm:$0xff] }
 0x2b6   :  { %4860 = vmatpush3.msra.mxu1 %v10251_v48  ;;  %4822 = vmatpush3.msra.mxu0 %v10252_v36  ;;  %v10277_v48 = vld [vmem:[#allocation141_spill] sm:$0xff] }
 0x2b7   :  { %4861 = vmatprep.subr.mxu1 %v8155_v41  ;;  %4823 = vmatprep.subr.mxu0 %v10253_v19  ;;  %v10262_v41 = vld [vmem:[#allocation73_spill] sm:$0xff]  ;;  %v10278_v19 = vld [vmem:[#allocation86_spill] sm:$0xff] }
 0x2b8   :  { %4862 = vmatpush3.msra.mxu1 %v10254_v2  ;;  %4824 = vmatpush3.msra.mxu0 %v10255_v18  ;;  %v8558_v2 = vld [vmem:[#allocation7 + $0xf8] sm:$0xff] }
 0x2b9   :  { %4863 = vmatprep.subr.mxu1 %v8175_v27  ;;  %4825 = vmatprep.subr.mxu0 %v10256_v31  ;;  %v10265_v27 = vld [vmem:[#allocation117_spill] sm:$0xff]  ;;  %v10279_v31 = vld [vmem:[#allocation127_spill] sm:$0xff] }
 0x2ba   :  { %4864 = vmatpush3.msra.mxu1 %v10257_v22  ;;  %4826 = vmatpush3.msra.mxu0 %v10258_v7  ;;  %v10280_v7 = vld [vmem:[#allocation19_spill] sm:$0xff] }
 0x2bb   :  { %4865 = vmatprep.subr.mxu1 %v10259_v11  ;;  %4827 = vmatprep.subr.mxu0 %v10260_v9  ;;  %v1082_v11 = vmax.f32 %v10280_v7, 0.0 }
 0x2bc   :  { %4866 = vmatpush3.msra.mxu1 %v10261_v25  ;;  %4828 = vmatpush3.msra.mxu0 %v10262_v41  ;;  %v8577_v41 = vld [vmem:[#allocation7 + $0xf0] sm:$0xff] }
 0x2bd   :  { %4867 = vmatprep.subr.mxu1 %v10263_v40  ;;  %4829 = vmatprep.subr.mxu0 %v10264_v63  ;;  %v8526_v43 = vpop.f32.mrf.mxu0  ;;  %v8585_v63 = vld [vmem:[#allocation7 + $0x70] sm:$0xff] }
 0x2be   :  { %4868 = vmatpush3.msra.mxu1 %v10265_v27  ;;  %4830 = vmatpush3.msra.mxu0 %v10266_v14  ;;  %v10282_v27 = vld [vmem:[#allocation101_spill] sm:$0xff] }
 0x2bf   :  { %4869 = vmatprep.subr.mxu1 %v10267_v30  ;;  %4831 = vmatprep.subr.mxu0 %v10268_v8  ;;  %v8532_v62 = vpop.f32.mrf.mxu0  ;;  %v8597_v8 = vld [vmem:[#allocation7 + $0xe8] sm:$0xff] }
 0x2c0   :  { %4870 = vmatpush3.msra.mxu1 %v10269_v54  ;;  %4832 = vmatpush3.msra.mxu0 %v10270_v12  ;;  %v8603_v12 = vld [vmem:[#allocation7 + $0x68] sm:$0xff] }
 0x2c1   :  { %4871 = vmatprep.subr.mxu1 %v10271_v37  ;;  %2743 = vmatmul.mubr.f32.vlgmr.msra.gmra.mxu0 %v10209_v21  ;;  %v10284_v37 = vld [vmem:[#allocation107_spill] sm:$0xff] }
 0x2c2   :  { %4872 = vmatpush3.msra.mxu1 %v10272_v6  ;;  %5433 = vmatprep.subr.mxu0 %v10273_v60  ;;  %v8611_v6 = vld [vmem:[#allocation7 + $0xe0] sm:$0xff] }
 0x2c3   :  { %2747 = vmatprep.mubr.f32.mxu0 %v8478_v35  ;;  %4873 = vmatprep.subr.mxu1 %v10274_v61  ;;  %v8542_v32 = vpop.f32.mrf.mxu0 }
 0x2c4   :  { %5434 = vmatpush3.msra.mxu0 %v10273_v60  ;;  %4874 = vmatpush3.msra.mxu1 %v10275_v5  ;;  %v8546_v15 = vpop.f32.mrf.mxu1  ;;  %v10286_v60 = vld [vmem:[#allocation79_spill] sm:$0xff]  ;;  %v8617_v5 = vld [vmem:[#allocation7 + $0x60] sm:$0xff] }
 0x2c5   :  { %5435 = vmatprep.subr.mxu0 %v10276_v1  ;;  %4875 = vmatprep.subr.mxu1 %v8294_v0  ;;  %v8550_v21 = vpop.f32.mrf.mxu0  ;;  %v8562_v0 = vld [vmem:[#allocation7 + $0x78] sm:$0xff] }
 0x2c6   :  { %5436 = vmatpush3.msra.mxu0 %v10276_v1  ;;  %4876 = vmatpush3.msra.mxu1 %v10277_v48  ;;  %v8554_v36 = vpop.f32.mrf.mxu1  ;;  %v10289_v1 = vld [vmem:[#allocation43_spill] sm:$0xff] }
 0x2c7   :  { %2748 = vmatmul.mubr.f32.gmra.mxu0 %v8016_v3  ;;  %5437 = vmatprep.subr.mxu0 %v10278_v19 }
 0x2c8   :  { %2752 = vmatprep.mubr.f32.mxu0 %v8494_v34  ;;  %2828 = vmatmul.mubr.f32.vlgmr.msra.gmra.mxu1 %v7233_v17  ;;  %v4447_v18 = vpop.f32.mrf.mxu0  ;;  %v10281_v17 = vld [vmem:[#allocation128_spill] sm:$0xff] }
 0x2c9   :  { %5438 = vmatpush3.msra.mxu0 %v10278_v19  ;;  %2832 = vmatprep.mubr.f32.mxu1 %v8067_v59  ;;  %v10290_v19 = vld [vmem:[#allocation121_spill] sm:$0xff] }
 0x2ca   :  { %5439 = vmatprep.subr.mxu0 %v10279_v31  ;;  %v8567_v22 = vpop.f32.mrf.mxu1  ;;  %v4448_v3 = vpop.f32.mrf.mxu0  ;;  %4909 = vmatprep.subr.mxu1 %v8558_v2 }
 0x2cb   :  { %5440 = vmatpush3.msra.mxu0 %v10279_v31  ;;  %v4449_v9 = vadd.f32 %v4448_v3, %v4447_v18  ;;  %4910 = vmatpush3.msra.mxu1 %v8562_v0  ;;  %v10291_v18 = vld [vmem:[#allocation85_spill] sm:$0xff]  ;;  %v8629_v3 = vld [vmem:[#allocation7 + $0x58] sm:$0xff] }
 0x2cc   :  { %2753 = vmatmul.mubr.f32.gmra.mxu0 %v8067_v59  ;;  %5441 = vmatprep.subr.mxu0 %v10281_v17  ;;  %v8575_v25 = vpop.f32.mrf.mxu1  ;;  %v4250_v31 = vadd.f32 %v10291_v18, %v10290_v19  ;;  %v8657_v19 = vld [vmem:[#allocation7 + $0xc0] sm:$0xff] }
 0x2cd   :  { %2757 = vmatprep.mubr.f32.mxu0 %v1082_v11  ;;  %2833 = vmatmul.mubr.f32.gmra.mxu1 %v7248_v56  ;;  %v8583_v40 = vadd.f32 %v4449_v9, %v8487_v47  ;;  %v10283_v47 = vld [vmem:[#allocation133_spill] sm:$0xff]  ;;  %v10292_v9 = vld [vmem:[#allocation120_spill] sm:$0xff]  ;;  %10299 = vst [vmem:[#allocation36_spill] sm:$0xff] %v8657_v19 }
 0x2ce   :  { %5442 = vmatpush3.msra.mxu0 %v10281_v17  ;;  %2837 = vmatprep.mubr.f32.mxu1 %v8113_v16  ;;  %v4450_v59 = vpop.f32.mrf.mxu0  ;;  %v8633_v17 = vld [vmem:[#allocation7 + $0xd0] sm:$0xff]  ;;  %v10300_v18 = vld [vmem:[#allocation113_spill] sm:$0xff] }
 0x2cf   :  { %5443 = vmatprep.subr.mxu0 %v10282_v27  ;;  %4911 = vmatprep.subr.mxu1 %v8577_v41 }
 0x2d0   :  { %5444 = vmatpush3.msra.mxu0 %v10282_v27  ;;  %v8592_v14 = vpop.f32.mrf.mxu1  ;;  %4912 = vmatpush3.msra.mxu1 %v8585_v63  ;;  %v4451_v56 = vpop.f32.mrf.mxu0  ;;  %v4294_v27 = vadd.f32 %v8337_v52, %v8322_v39  ;;  %v8649_v39 = vld [vmem:[#allocation7 + $0x48] sm:$0xff] }
 0x2d1   :  { %2758 = vmatmul.mubr.f32.gmra.mxu0 %v8113_v16  ;;  %5445 = vmatprep.subr.mxu0 %v10283_v47  ;;  %v4452_v30 = vadd.f32 %v4451_v56, %v4450_v59 }
 0x2d2   :  { %2838 = vmatmul.mubr.f32.gmra.mxu1 %v7317_v26  ;;  %5446 = vmatpush3.msra.mxu0 %v10283_v47  ;;  %v8601_v54 = vpop.f32.mrf.mxu1  ;;  %v10285_v26 = vld [vmem:[#allocation76_spill] sm:$0xff]  ;;  %v8639_v47 = vld [vmem:[#allocation7 + $0x50] sm:$0xff] }
 0x2d3   :  { %5465 = vmatprep.mubr.f32.mxu0 %v8478_v35  ;;  %2842 = vmatprep.mubr.f32.mxu1 %v1087_v28  ;;  %v1910_v16 = vadd.f32 %v4452_v30, %v8504_v58  ;;  %v4206_v61 = vadd.f32 %v10286_v60, %v10285_v26  ;;  %v10287_v35 = vld [vmem:[#allocation111_spill] sm:$0xff]  ;;  %v10288_v58 = vld [vmem:[#allocation42_spill] sm:$0xff]  ;;  %v10293_v30 = vld [vmem:[#allocation129_spill] sm:$0xff] }
 0x2d4   :  { %5447 = vmatprep.subr.mxu0 %v10284_v37  ;;  %4913 = vmatprep.subr.mxu1 %v8597_v8  ;;  %v8621_v28 = vld [vmem:[#allocation7 + $0xd8] sm:$0xff]  ;;  %v4162_v48 = vadd.f32 %v10289_v1, %v10288_v58  ;;  %v10294_v26 = vld [vmem:[#allocation70_spill] sm:$0xff] }
 0x2d5   :  { %5448 = vmatpush3.msra.mxu0 %v10284_v37  ;;  %4914 = vmatpush3.msra.mxu1 %v8603_v12  ;;  %v8643_v37 = vld [vmem:[#allocation7 + $0xc8] sm:$0xff]  ;;  %v10295_v60 = vld [vmem:[#allocation72_spill] sm:$0xff] }
 0x2d6   :  { %5449 = vmatprep.subr.mxu0 %v10287_v35  ;;  %2843 = vmatmul.mubr.f32.gmra.mxu1 %v7549_v49  ;;  %v4494_v29 = vpop.f32.mrf.mxu1  ;;  %v1390_v59 = vadd.f32 %v4206_v61, %v4162_v48  ;;  %v10297_v58 = vld [vmem:[#allocation24_spill] sm:$0xff]  ;;  %v10298_v48 = vld [vmem:[#allocation135_spill] sm:$0xff] }
 0x2d7   :  { %5450 = vmatpush3.msra.mxu0 %v10287_v35  ;;  %4915 = vmatprep.subr.mxu1 %v8611_v6  ;;  %v4203_v35 = vadd.f32 %v10295_v60, %v10294_v26  ;;  %v8671_v26 = vld [vmem:[#allocation7 + $0xb8] sm:$0xff] }
 0x2d8   :  { %5451 = vmatprep.subr.mxu0 %v10292_v9  ;;  %4916 = vmatpush3.msra.mxu1 %v8617_v5  ;;  %v4495_v49 = vpop.f32.mrf.mxu1  ;;  %v1475_v61 = vadd.f32 %v4250_v31, %v1390_v59  ;;  %v4399_v59 = vadd.f32 %v8450_v23, %v8441_v46  ;;  %10304 = vst [vmem:[#allocation48_spill] sm:$0xff] %v8671_v26  ;;  %v8679_v23 = vld [vmem:[#allocation7 + $0x38] sm:$0xff] }
 0x2d9   :  { %5452 = vmatpush3.msra.mxu0 %v10292_v9  ;;  %4917 = vmatprep.subr.mxu1 %v8621_v28  ;;  %v4496_v56 = vadd.f32 %v4495_v49, %v4494_v29  ;;  %v10296_v29 = vld [vmem:[#allocation22_spill] sm:$0xff]  ;;  %v10301_v9 = vld [vmem:[#allocation81_spill] sm:$0xff]  ;;  %v4355_v46 = vadd.f32 %v8427_v44, %v8421_v50  ;;  %10307 = vst [vmem:[#allocation37_spill] sm:$0xff] %v8679_v23 }
 0x2da   :  { %5453 = vmatprep.subr.mxu0 %v10293_v30  ;;  %4918 = vmatpush3.msra.mxu1 %v8629_v3  ;;  %v4159_v1 = vadd.f32 %v10297_v58, %v10296_v29  ;;  %v4247_v31 = vadd.f32 %v10301_v9, %v10300_v18  ;;  %v1560_v49 = vadd.f32 %v4294_v27, %v1475_v61  ;;  %v10305_v27 = vld [vmem:[#allocation137_spill] sm:$0xff]  ;;  %v10306_v61 = vld [vmem:[#allocation140_spill] sm:$0xff]  ;;  %v8689_v50 = vld [vmem:[#allocation7 + $0xb0] sm:$0xff] }
 0x2db   :  { %5454 = vmatpush3.msra.mxu0 %v10293_v30  ;;  %4919 = vmatprep.subr.mxu1 %v8633_v17  ;;  %v8651_v52 = vadd.f32 %v4496_v56, %v1910_v16  ;;  %v8665_v16 = vld [vmem:[#allocation7 + $0x40] sm:$0xff]  ;;  %v4402_v56 = vadd.f32 %v8466_v33, %v8459_v55  ;;  %v10303_v30 = vld [vmem:[#allocation139_spill] sm:$0xff]  ;;  %v4291_v29 = vadd.f32 %v10306_v61, %v10305_v27  ;;  %v10308_v33 = vld [vmem:[#allocation142_spill] sm:$0xff] }
 0x2dc   :  { %5455 = vmatprep.subr.mxu0 %v10298_v48  ;;  %4920 = vmatpush3.msra.mxu1 %v8639_v47  ;;  %10302 = vst [vmem:[#allocation21_spill] sm:$0xff] %v8665_v16  ;;  %v1385_v60 = vadd.f32 %v4203_v35, %v4159_v1  ;;  %v4358_v55 = vadd.f32 %v8445_v10, %v8437_v51  ;;  %10309 = vst [vmem:[#allocation57_spill] sm:$0xff] %v8689_v50  ;;  %v8694_v51 = vld [vmem:[#allocation7 + $0x30] sm:$0xff]  ;;  %v10314_v9 = vld [vmem:[#allocation20_spill] sm:$0xff] }
 0x2dd   :  { %5456 = vmatpush3.msra.mxu0 %v10298_v48  ;;  %4921 = vmatprep.subr.mxu1 %v8643_v37  ;;  %v4443_v35 = vadd.f32 %v8532_v62, %v8526_v43  ;;  %v4446_v58 = vadd.f32 %v8550_v21, %v8542_v32  ;;  %v1645_v1 = vadd.f32 %v8328_v53, %v1560_v49  ;;  %v8702_v32 = vld [vmem:[#allocation7 + $0xa8] sm:$0xff]  ;;  %v10313_v18 = vld [vmem:[#allocation35_spill] sm:$0xff]  ;;  %v8719_v49 = vld [vmem:[#allocation7 + $0x20] sm:$0xff] }
 0x2de   :  { %5457 = vmatprep.subr.mxu0 %v10303_v30  ;;  %4922 = vmatpush3.msra.mxu1 %v8649_v39  ;;  %v1470_v44 = vadd.f32 %v4247_v31, %v1385_v60  ;;  %v1810_v48 = vadd.f32 %v4399_v59, %v4355_v46  ;;  %10310 = vst [vmem:[#allocation38_spill] sm:$0xff] %v8694_v51  ;;  %10311 = vst [vmem:[#allocation58_spill] sm:$0xff] %v8702_v32  ;;  %v8706_v21 = vld [vmem:[#allocation7 + $0x28] sm:$0xff]  ;;  %v8721_v59 = vld [vmem:[#allocation7 + $0x1f8] sm:$0xff] }
 0x2df   :  { %5458 = vmatpush3.msra.mxu0 %v10303_v30  ;;  %4923 = vmatprep.subr.mxu1 %v8657_v19  ;;  %v1815_v10 = vadd.f32 %v4402_v56, %v4358_v55  ;;  %v4487_v43 = vadd.f32 %v8554_v36, %v8546_v15  ;;  %v4490_v62 = vadd.f32 %v8575_v25, %v8567_v22  ;;  %v8712_v22 = vld [vmem:[#allocation7 + $0xa0] sm:$0xff]  ;;  %v8725_v60 = vld [vmem:[#allocation7 + $0x98] sm:$0xff] }
 0x2e0   :  { %5459 = vmatprep.subr.mxu0 %v10308_v33  ;;  %4924 = vmatpush3.msra.mxu1 %v8665_v16  ;;  %v1555_v53 = vadd.f32 %v4291_v29, %v1470_v44  ;;  %10312 = vst [vmem:[#allocation23_spill] sm:$0xff] %v8706_v21  ;;  %v1051_v31 = vadd.f32 %v10314_v9, %v10313_v18  ;;  %10315 = vst [vmem:[#allocation59_spill] sm:$0xff] %v8712_v22  ;;  %v8727_v27 = vld [vmem:[#allocation7 + $0x178] sm:$0xff]  ;;  %v8755_v44 = vld [vmem:[#allocation7 + $0x170] sm:$0xff] }
 0x2e1   :  { %5460 = vmatpush3.msra.mxu0 %v10308_v33  ;;  %4925 = vmatprep.subr.mxu1 %v8671_v26  ;;  %v1895_v15 = vadd.f32 %v4443_v35, %v1810_v48  ;;  %v1900_v36 = vadd.f32 %v4446_v58, %v1815_v10  ;;  %v8716_v25 = vadd.f32 %v8371_v42, %v1645_v1  ;;  %v10318_v61 = vld [vmem:[#allocation55_spill] sm:$0xff]  ;;  %v8759_v10 = vld [vmem:[#allocation7 + $0x8] sm:$0xff]  ;;  %v8765_v9 = vld [vmem:[#allocation7 + $0x80] sm:$0xff] }
 0x2e2   :  { %5461 = vmatprep.subr.mxu0 %v8319_v57  ;;  %4926 = vmatpush3.msra.mxu1 %v8679_v23  ;;  %10316 = vst [vmem:[#allocation39_spill] sm:$0xff] %v8719_v49  ;;  %10317 = vst [vmem:[#allocation60_spill] sm:$0xff] %v8725_v60  ;;  %v2942_v29 = vrot.slane %v8359_v38, %v10318_v61  ;;  %v1088_v55 = vmax.f32 %v1051_v31, 0.0  ;;  %v4493_v33 = vadd.f32 %v8601_v54, %v8592_v14  ;;  %v8745_v38 = vld [vmem:[#allocation7 + $0x10] sm:$0xff]  ;;  %v8753_v54 = vld [vmem:[#allocation7 + $0x88] sm:$0xff] }
 0x2e3   :  { %5462 = vmatpush3.msra.mxu0 %v8319_v57  ;;  %4927 = vmatprep.subr.mxu1 %v8689_v50  ;;  %v1985_v56 = vadd.f32 %v4490_v62, %v1900_v36  ;;  %v1980_v30 = vadd.f32 %v4487_v43, %v1895_v15  ;;  %v2975_v7 = vmax.f32 %v8716_v25, 0.0  ;;  %10321 = vst [vmem:[#allocation62_spill] sm:$0xff] %v8745_v38  ;;  %10323 = vst [vmem:[#allocation63_spill] sm:$0xff] %v8753_v54  ;;  %v8771_v15 = vld [vmem:[#allocation7] sm:$0xff]  ;;  %v8774_v36 = vld [vmem:[#allocation7 + $0x168] sm:$0xff] }
 0x2e4   :  { %5463 = vmatprep.subr.mxu0 %v8334_v20  ;;  %4928 = vmatpush3.msra.mxu1 %v8694_v51  ;;  %10324 = vst [vmem:[#allocation26_spill] sm:$0xff] %v8759_v10  ;;  %v1990_v18 = vadd.f32 %v4493_v33, %v8583_v40  ;;  %10325 = vst [vmem:[#allocation64_spill] sm:$0xff] %v8765_v9  ;;  %v8781_v40 = vld [vmem:[#allocation7 + $0x2f8] sm:$0xff]  ;;  %v8798_v33 = vld [vmem:[#allocation7 + $0x160] sm:$0xff] }
 0x2e5   :  { %5464 = vmatpush3.msra.mxu0 %v8334_v20  ;;  %4929 = vmatprep.subr.mxu1 %v8702_v32  ;;  %v5391_v57 = vpop.f32.mrf.mxu0  ;;  %v1640_v20 = vadd.f32 %v8348_v4, %v1555_v53  ;;  %v8740_v4 = vld [vmem:[#allocation7 + $0x90] sm:$0xff]  ;;  %10326 = vst [vmem:[#allocation27_spill] sm:$0xff] %v8771_v15  ;;  %10328 = vst [vmem:[#allocation89_spill] sm:$0xff] %v8781_v40  ;;  %v8839_v61 = vld [vmem:[#allocation7 + $0x1c0] sm:$0xff] }
 0x2e6   :  { %5466 = vmatmul.mubr.f32.vlgmr.msra.gmra.mxu0 %v8494_v34  ;;  %4930 = vmatpush3.msra.mxu1 %v8706_v21  ;;  %v8735_v34 = vld [vmem:[#allocation7 + $0x18] sm:$0xff]  ;;  %v2070_v35 = vadd.f32 %v5391_v57, %v1985_v56  ;;  %10320 = vst [vmem:[#allocation25_spill] sm:$0xff] %v8740_v4  ;;  %10332 = vst [vmem:[#allocation28_spill] sm:$0xff] %v8798_v33 }
 0x2e7   :  { %5468 = vmatprep.mubr.f32.mxu0 %v1082_v11  ;;  %4931 = vmatprep.subr.mxu1 %v8712_v22  ;;  %v2064_v46 = vpop.f32.mrf.mxu0  ;;  %10319 = vst [vmem:[#allocation40_spill] sm:$0xff] %v8735_v34  ;;  %v8748_v11 = vld [vmem:[#allocation7 + $0x1f0] sm:$0xff]  ;;  %v2955_v1 = vadd.f32 %v8371_v42, %v1640_v20  ;;  %v8768_v42 = vld [vmem:[#allocation7 + $0x1e8] sm:$0xff]  ;;  %v8785_v56 = vld [vmem:[#allocation7 + $0x278] sm:$0xff] }
 0x2e8   :  { %4932 = vmatpush3.msra.mxu1 %v8719_v49  ;;  %v2065_v58 = vadd.f32 %v2064_v46, %v1980_v30  ;;  %4947 = vmatprep.subr.mxu0 %v8721_v59  ;;  %v2960_v43 = vadd.f32 %v2942_v29, %v2070_v35  ;;  %10329 = vst [vmem:[#allocation66_spill] sm:$0xff] %v8785_v56  ;;  %v8793_v46 = vld [vmem:[#allocation7 + $0x1e0] sm:$0xff]  ;;  %v8800_v35 = vld [vmem:[#allocation7 + $0x270] sm:$0xff]  ;;  %10346 = vst [vmem:[#allocation110_spill] sm:$0xff] %v8839_v61 }
 0x2e9   :  { %4933 = vmatprep.subr.mxu1 %v8725_v60  ;;  %4948 = vmatpush3.msra.mxu0 %v8727_v27  ;;  %v2971_v57 = vmax.f32 %v2955_v1, 0.0  ;;  %10330 = vst [vmem:[#allocation18_spill] sm:$0xff] %v8793_v46  ;;  %10333 = vst [vmem:[#allocation61_spill] sm:$0xff] %v8800_v35  ;;  %v8810_v1 = vld [vmem:[#allocation7 + $0x158] sm:$0xff] }
 0x2ea   :  { %5469 = vmatmul.mubr.f32.gmra.mxu0 %v1088_v55  ;;  %v8750_v14 = vadd.f32 %v2942_v29, %v2065_v58  ;;  %4934 = vmatpush3.msra.mxu1 %v8735_v34  ;;  %v8787_v30 = vmax.f32 %v2960_v43, 0.0  ;;  %v8795_v55 = vld [vmem:[#allocation7 + $0x2f0] sm:$0xff]  ;;  %v8808_v58 = vld [vmem:[#allocation7 + $0x2e8] sm:$0xff]  ;;  %10336 = vst [vmem:[#allocation100_spill] sm:$0xff] %v8810_v1 }
 0x2eb   :  { %3270 = vmatprep.mubr.f32.mxu0 %v2975_v7  ;;  %v5394_v48 = vpop.f32.mrf.mxu0  ;;  %4935 = vmatprep.subr.mxu1 %v8740_v4  ;;  %10331 = vst [vmem:[#allocation67_spill] sm:$0xff] %v8795_v55  ;;  %10335 = vst [vmem:[#allocation44_spill] sm:$0xff] %v8808_v58  ;;  %v8816_v43 = vld [vmem:[#allocation7 + $0x1d0] sm:$0xff]  ;;  %v8939_v4 = vld [vmem:[#allocation7 + $0x218] sm:$0xff] }
 0x2ec   :  { %10322 = vst [vmem:[#allocation41_spill] sm:$0xff] %v8750_v14  ;;  %v9701_v62 = vmax.f32 %v8750_v14, 0.0  ;;  %v2080_v53 = vadd.f32 %v5394_v48, %v8651_v52  ;;  %4936 = vmatpush3.msra.mxu1 %v8745_v38  ;;  %4949 = vmatprep.subr.mxu0 %v8748_v11  ;;  %v8814_v48 = vld [vmem:[#allocation7 + $0x268] sm:$0xff]  ;;  %10338 = vst [vmem:[#allocation103_spill] sm:$0xff] %v8816_v43  ;;  %v8903_v38 = vld [vmem:[#allocation7 + $0x198] sm:$0xff] }
 0x2ed   :  { %v2074_v31 = vpop.f32.mrf.mxu0  ;;  %4937 = vmatprep.subr.mxu1 %v8753_v54  ;;  %4950 = vmatpush3.msra.mxu0 %v8755_v44  ;;  %10337 = vst [vmem:[#allocation29_spill] sm:$0xff] %v8814_v48  ;;  %v8877_v14 = vld [vmem:[#allocation7 + $0x1a8] sm:$0xff]  ;;  %10366 = vst [vmem:[#allocation34_spill] sm:$0xff] %v8903_v38 }
 0x2ee   :  { %v8776_v52 = vadd.f32 %v2942_v29, %v2080_v53  ;;  %v2075_v25 = vadd.f32 %v2074_v31, %v1990_v18  ;;  %4938 = vmatpush3.msra.mxu1 %v8759_v10  ;;  %3195 = vmatprep.mubr.f32.mxu1 %v9701_v62  ;;  %v8819_v53 = vld [vmem:[#allocation7 + $0x2e0] sm:$0xff]  ;;  %v8821_v18 = vld [vmem:[#allocation7 + $0x150] sm:$0xff]  ;;  %v8837_v62 = vld [vmem:[#allocation7 + $0x258] sm:$0xff]  ;;  %10358 = vst [vmem:[#allocation119_spill] sm:$0xff] %v8877_v14 }
 0x2ef   :  { %4939 = vmatprep.subr.mxu1 %v8765_v9  ;;  %4951 = vmatprep.subr.mxu0 %v8768_v42  ;;  %10339 = vst [vmem:[#allocation32_spill] sm:$0xff] %v8819_v53  ;;  %10340 = vst [vmem:[#allocation45_spill] sm:$0xff] %v8821_v18  ;;  %v8825_v31 = vld [vmem:[#allocation7 + $0x260] sm:$0xff]  ;;  %v8887_v9 = vld [vmem:[#allocation7 + $0x238] sm:$0xff] }
 0x2f0   :  { %10327 = vst [vmem:[#allocation65_spill] sm:$0xff] %v8776_v52  ;;  %v8789_v20 = vadd.f32 %v2942_v29, %v2075_v25  ;;  %4940 = vmatpush3.msra.mxu1 %v8771_v15  ;;  %4952 = vmatpush3.msra.mxu0 %v8774_v36  ;;  %v8804_v29 = vld [vmem:[#allocation7 + $0x1d8] sm:$0xff]  ;;  %10341 = vst [vmem:[#allocation71_spill] sm:$0xff] %v8825_v31  ;;  %v8827_v25 = vld [vmem:[#allocation7 + $0x1c8] sm:$0xff] }
 0x2f1   :  { %3196 = vmatmul.mubr.f32.vlgmr.msra.gmra.mxu1 %v2971_v57  ;;  %4985 = vmatprep.subr.mxu1 %v8781_v40  ;;  %10334 = vst [vmem:[#allocation99_spill] sm:$0xff] %v8804_v29  ;;  %10342 = vst [vmem:[#allocation30_spill] sm:$0xff] %v8827_v25  ;;  %v8831_v57 = vld [vmem:[#allocation7 + $0x2d8] sm:$0xff]  ;;  %v8871_v40 = vpop.f32.mrf.mxu1  ;;  %v8883_v15 = vld [vmem:[#allocation7 + $0x128] sm:$0xff] }
 0x2f2   :  { %3200 = vmatprep.mubr.f32.mxu1 %v8787_v30  ;;  %4986 = vmatpush3.msra.mxu1 %v8785_v56  ;;  %10343 = vst [vmem:[#allocation46_spill] sm:$0xff] %v8831_v57  ;;  %10345 = vst [vmem:[#allocation56_spill] sm:$0xff] %v8837_v62  ;;  %v8867_v56 = vld [vmem:[#allocation7 + $0x2c0] sm:$0xff]  ;;  %v8893_v10 = vld [vmem:[#allocation7 + $0x2b0] sm:$0xff] }
 0x2f3   :  { %4953 = vmatprep.subr.mxu0 %v8793_v46  ;;  %4987 = vmatprep.subr.mxu1 %v8795_v55  ;;  %v8861_v55 = vld [vmem:[#allocation7 + $0x248] sm:$0xff]  ;;  %10355 = vst [vmem:[#allocation118_spill] sm:$0xff] %v8867_v56  ;;  %10360 = vst [vmem:[#allocation83_spill] sm:$0xff] %v8883_v15  ;;  %v8897_v54 = vpop.f32.mrf.mxu1 }
 0x2f4   :  { %4954 = vmatpush3.msra.mxu0 %v8798_v33  ;;  %4988 = vmatpush3.msra.mxu1 %v8800_v35  ;;  %v8855_v35 = vld [vmem:[#allocation7 + $0x2c8] sm:$0xff]  ;;  %10353 = vst [vmem:[#allocation116_spill] sm:$0xff] %v8861_v55  ;;  %10361 = vst [vmem:[#allocation50_spill] sm:$0xff] %v8887_v9 }
 0x2f5   :  { %3201 = vmatmul.mubr.f32.gmra.mxu1 %v2975_v7  ;;  %4955 = vmatprep.subr.mxu0 %v8804_v29  ;;  %v8833_v7 = vld [vmem:[#allocation7 + $0x148] sm:$0xff]  ;;  %10351 = vst [vmem:[#allocation115_spill] sm:$0xff] %v8855_v35  ;;  %10363 = vst [vmem:[#allocation51_spill] sm:$0xff] %v8893_v10 }
 0x2f6   :  { %4989 = vmatprep.subr.mxu1 %v8808_v58  ;;  %4956 = vmatpush3.msra.mxu0 %v8810_v1  ;;  %10344 = vst [vmem:[#allocation74_spill] sm:$0xff] %v8833_v7  ;;  %v8849_v58 = vld [vmem:[#allocation7 + $0x250] sm:$0xff]  ;;  %10377 = vst [vmem:[#allocation102_spill] sm:$0xff] %v8939_v4 }
 0x2f7   :  { %4990 = vmatpush3.msra.mxu1 %v8814_v48  ;;  %4957 = vmatprep.subr.mxu0 %v8816_v43  ;;  %v8845_v48 = vld [vmem:[#allocation7 + $0x140] sm:$0xff]  ;;  %10349 = vst [vmem:[#allocation112_spill] sm:$0xff] %v8849_v58 }
 0x2f8   :  { %4991 = vmatprep.subr.mxu1 %v8819_v53  ;;  %4958 = vmatpush3.msra.mxu0 %v8821_v18  ;;  %10348 = vst [vmem:[#allocation17_spill] sm:$0xff] %v8845_v48  ;;  %v8851_v53 = vld [vmem:[#allocation7 + $0x1b8] sm:$0xff] }
 0x2f9   :  { %4992 = vmatpush3.msra.mxu1 %v8825_v31  ;;  %4959 = vmatprep.subr.mxu0 %v8827_v25  ;;  %10350 = vst [vmem:[#allocation47_spill] sm:$0xff] %v8851_v53  ;;  %v8857_v31 = vld [vmem:[#allocation7 + $0x138] sm:$0xff] }
 0x2fa   :  { %4993 = vmatprep.subr.mxu1 %v8831_v57  ;;  %4960 = vmatpush3.msra.mxu0 %v8833_v7  ;;  %10352 = vst [vmem:[#allocation31_spill] sm:$0xff] %v8857_v31  ;;  %v8863_v57 = vld [vmem:[#allocation7 + $0x1b0] sm:$0xff]  ;;  %v4551_v7 = vadd.f32 %v8897_v54, %v8871_v40  ;;  %v10387_v40 = vld [vmem:[#allocation53_spill] sm:$0xff] }
 0x2fb   :  { %4994 = vmatpush3.msra.mxu1 %v8837_v62  ;;  %4961 = vmatprep.subr.mxu0 %v8839_v61  ;;  %10354 = vst [vmem:[#allocation97_spill] sm:$0xff] %v8863_v57  ;;  %v8869_v62 = vld [vmem:[#allocation7 + $0x130] sm:$0xff] }
 0x2fc   :  { %4995 = vmatprep.subr.mxu1 %v8843_v13  ;;  %4962 = vmatpush3.msra.mxu0 %v8845_v48  ;;  %10356 = vst [vmem:[#allocation92_spill] sm:$0xff] %v8869_v62  ;;  %v8875_v13 = vld [vmem:[#allocation7 + $0x240] sm:$0xff] }
 0x2fd   :  { %4996 = vmatpush3.msra.mxu1 %v8849_v58  ;;  %4963 = vmatprep.subr.mxu0 %v8851_v53  ;;  %10357 = vst [vmem:[#allocation33_spill] sm:$0xff] %v8875_v13  ;;  %v8881_v58 = vld [vmem:[#allocation7 + $0x2b8] sm:$0xff] }
 0x2fe   :  { %4997 = vmatprep.subr.mxu1 %v8855_v35  ;;  %4964 = vmatpush3.msra.mxu0 %v8857_v31  ;;  %10359 = vst [vmem:[#allocation49_spill] sm:$0xff] %v8881_v58  ;;  %v8889_v35 = vld [vmem:[#allocation7 + $0x1a0] sm:$0xff] }
 0x2ff   :  { %4998 = vmatpush3.msra.mxu1 %v8861_v55  ;;  %4965 = vmatprep.subr.mxu0 %v8863_v57  ;;  %10362 = vst [vmem:[#allocation122_spill] sm:$0xff] %v8889_v35  ;;  %v8895_v55 = vld [vmem:[#allocation7 + $0x120] sm:$0xff] }
 0x300   :  { %4999 = vmatprep.subr.mxu1 %v8867_v56  ;;  %4966 = vmatpush3.msra.mxu0 %v8869_v62  ;;  %10364 = vst [vmem:[#allocation124_spill] sm:$0xff] %v8895_v55  ;;  %v8901_v56 = vld [vmem:[#allocation7 + $0x230] sm:$0xff]  ;;  %v8913_v62 = vld [vmem:[#allocation7 + $0x228] sm:$0xff] }
 0x301   :  { %5000 = vmatpush3.msra.mxu1 %v8875_v13  ;;  %4967 = vmatprep.subr.mxu0 %v8877_v14  ;;  %10365 = vst [vmem:[#allocation94_spill] sm:$0xff] %v8901_v56  ;;  %v8907_v13 = vld [vmem:[#allocation7 + $0x2a8] sm:$0xff]  ;;  %v8909_v14 = vld [vmem:[#allocation7 + $0x118] sm:$0xff]  ;;  %10369 = vst [vmem:[#allocation87_spill] sm:$0xff] %v8913_v62 }
 0x302   :  { %5001 = vmatprep.subr.mxu1 %v8881_v58  ;;  %4968 = vmatpush3.msra.mxu0 %v8883_v15  ;;  %10367 = vst [vmem:[#allocation125_spill] sm:$0xff] %v8907_v13  ;;  %10368 = vst [vmem:[#allocation52_spill] sm:$0xff] %v8909_v14  ;;  %v8915_v58 = vld [vmem:[#allocation7 + $0x190] sm:$0xff]  ;;  %v8919_v15 = vld [vmem:[#allocation7 + $0x2a0] sm:$0xff] }
 0x303   :  { %5002 = vmatpush3.msra.mxu1 %v8887_v9  ;;  %4969 = vmatprep.subr.mxu0 %v8889_v35  ;;  %10370 = vst [vmem:[#allocation91_spill] sm:$0xff] %v8915_v58  ;;  %10371 = vst [vmem:[#allocation93_spill] sm:$0xff] %v8919_v15  ;;  %v8921_v9 = vld [vmem:[#allocation7 + $0x110] sm:$0xff]  ;;  %v8923_v35 = vpop.f32.mrf.mxu1 }
 0x304   :  { %5003 = vmatprep.subr.mxu1 %v8893_v10  ;;  %4970 = vmatpush3.msra.mxu0 %v8895_v55  ;;  %10372 = vst [vmem:[#allocation95_spill] sm:$0xff] %v8921_v9  ;;  %v8927_v10 = vld [vmem:[#allocation7 + $0x220] sm:$0xff]  ;;  %v8929_v55 = vld [vmem:[#allocation7 + $0x188] sm:$0xff] }
 0x305   :  { %5004 = vmatpush3.msra.mxu1 %v8901_v56  ;;  %4971 = vmatprep.subr.mxu0 %v8903_v38  ;;  %10373 = vst [vmem:[#allocation88_spill] sm:$0xff] %v8927_v10  ;;  %10374 = vst [vmem:[#allocation96_spill] sm:$0xff] %v8929_v55  ;;  %v8933_v56 = vld [vmem:[#allocation7 + $0x298] sm:$0xff]  ;;  %v8935_v38 = vld [vmem:[#allocation7 + $0x108] sm:$0xff] }
 0x306   :  { %5005 = vmatprep.subr.mxu1 %v8907_v13  ;;  %4972 = vmatpush3.msra.mxu0 %v8909_v14  ;;  %10375 = vst [vmem:[#allocation130_spill] sm:$0xff] %v8933_v56  ;;  %10376 = vst [vmem:[#allocation98_spill] sm:$0xff] %v8935_v38  ;;  %v8941_v13 = vld [vmem:[#allocation7 + $0x180] sm:$0xff]  ;;  %v8945_v14 = vld [vmem:[#allocation7 + $0x290] sm:$0xff] }
 0x307   :  { %5006 = vmatpush3.msra.mxu1 %v8913_v62  ;;  %4973 = vmatprep.subr.mxu0 %v8915_v58  ;;  %10378 = vst [vmem:[#allocation132_spill] sm:$0xff] %v8941_v13  ;;  %10379 = vst [vmem:[#allocation68_spill] sm:$0xff] %v8945_v14  ;;  %v8947_v62 = vld [vmem:[#allocation7 + $0x100] sm:$0xff]  ;;  %v4553_v58 = vpop.f32.mrf.mxu1 }
 0x308   :  { %5007 = vmatprep.subr.mxu1 %v8919_v15  ;;  %4974 = vmatpush3.msra.mxu0 %v8921_v9  ;;  %10380 = vst [vmem:[#allocation69_spill] sm:$0xff] %v8947_v62  ;;  %v8951_v15 = vld [vmem:[#allocation7 + $0x210] sm:$0xff]  ;;  %v8953_v9 = vld [vmem:[#allocation7 + $0x3f8] sm:$0xff]  ;;  %v4554_v26 = vadd.f32 %v4553_v58, %v8923_v35 }
 0x309   :  { %5008 = vmatpush3.msra.mxu1 %v8927_v10  ;;  %4975 = vmatprep.subr.mxu0 %v8929_v55  ;;  %10381 = vst [vmem:[#allocation105_spill] sm:$0xff] %v8951_v15  ;;  %10382 = vst [vmem:[#allocation104_spill] sm:$0xff] %v8953_v9  ;;  %v8957_v10 = vld [vmem:[#allocation7 + $0x288] sm:$0xff] }
 0x30a   :  { %5009 = vmatprep.subr.mxu1 %v8933_v56  ;;  %4976 = vmatpush3.msra.mxu0 %v8935_v38  ;;  %10383 = vst [vmem:[#allocation109_spill] sm:$0xff] %v8957_v10  ;;  %v8961_v55 = vld [vmem:[#allocation7 + $0x208] sm:$0xff]  ;;  %v8965_v56 = vld [vmem:[#allocation7 + $0x280] sm:$0xff]  ;;  %v4555_v38 = vpop.f32.mrf.mxu1 }
 0x30b   :  { %5010 = vmatpush3.msra.mxu1 %v8939_v4  ;;  %4977 = vmatprep.subr.mxu0 %v8941_v13  ;;  %10384 = vst [vmem:[#allocation106_spill] sm:$0xff] %v8961_v55  ;;  %10385 = vst [vmem:[#allocation108_spill] sm:$0xff] %v8965_v56  ;;  %v8968_v4 = vld [vmem:[#allocation7 + $0x200] sm:$0xff]  ;;  %v8971_v13 = vld [vmem:[#allocation7 + $0x478] sm:$0xff] }
 0x30c   :  { %5011 = vmatprep.subr.mxu1 %v8945_v14  ;;  %4978 = vmatpush3.msra.mxu0 %v8947_v62  ;;  %10386 = vst [vmem:[#allocation73_spill] sm:$0xff] %v8968_v4  ;;  %v4556_v14 = vpop.f32.mrf.mxu1 }
 0x30d   :  { %5012 = vmatpush3.msra.mxu1 %v8951_v15  ;;  %5023 = vmatprep.subr.mxu0 %v8953_v9  ;;  %v4593_v15 = vpop.f32.mrf.mxu0 }
 0x30e   :  { %5013 = vmatprep.subr.mxu1 %v8957_v10  ;;  %v8976_v9 = vpop.f32.mrf.mxu1 }
 0x30f   :  { %5014 = vmatpush3.msra.mxu1 %v8961_v55  ;;  %v4594_v62 = vpop.f32.mrf.mxu0 }
 0x310   :  { %5015 = vmatprep.subr.mxu1 %v8965_v56  ;;  %v8978_v57 = vpop.f32.mrf.mxu1  ;;  %v4595_v61 = vadd.f32 %v4594_v62, %v4593_v15 }
 0x311   :  { %5016 = vmatpush3.msra.mxu1 %v8968_v4  ;;  %v4596_v34 = vpop.f32.mrf.mxu0 }
 0x312   :  { %5471 = vmatprep.subr.mxu1 %v8971_v13  ;;  %v4637_v10 = vpop.f32.mrf.mxu1  ;;  %v2235_v18 = vadd.f32 %v4595_v61, %v4551_v7  ;;  %v9019_v7 = vld [vmem:[#allocation7 + $0x3e8] sm:$0xff] }
 0x313   :  { %v4597_v60 = vpop.f32.mrf.mxu0 }
 0x314   :  { %v4638_v31 = vpop.f32.mrf.mxu1  ;;  %v4598_v43 = vadd.f32 %v4597_v60, %v4596_v34  ;;  %v4557_v34 = vadd.f32 %v4556_v14, %v4555_v38  ;;  %v9781_v38 = vmax.f32 %v8378_v24, 0.0  ;;  %v9008_v14 = vld [vmem:[#allocation7 + $0x3f0] sm:$0xff] }
 0x315   :  { %v4639_v32 = vadd.f32 %v4638_v31, %v4637_v10  ;;  %v8991_v10 = vld [vmem:[#allocation6] sm:$0xf]  ;;  %v10388_v31 = vsub.s32 2, %v10387_v40 }
 0x316   :  { %v4599_v53 = vpop.f32.mrf.mxu0  ;;  %v2240_v33 = vadd.f32 %v4598_v43, %v4554_v26 }
 0x317   :  { %v2320_v1 = vadd.f32 %v4639_v32, %v2235_v18  ;;  %v8996_v61 = vrot.slane %v8991_v10, %v10388_v31 }
 0x318   :  { %v4640_v55 = vpop.f32.mrf.mxu1  ;;  %v4600_v48 = vpop.f32.mrf.mxu0 }
 0x319   :  { %v4601_v46 = vadd.f32 %v4600_v48, %v4599_v53 }
 0x31a   :  { %v4641_v49 = vpop.f32.mrf.mxu1 }
 0x31b   :  { %v4642_v29 = vadd.f32 %v4641_v49, %v4640_v55 }
 0x31c   :  { %v8980_v22 = vpop.f32.mrf.mxu0 }
 0x31e   :  { %v4643_v56 = vpop.f32.mrf.mxu1  ;;  %v8982_v21 = vpop.f32.mrf.mxu0 }
 0x320   :  { %v4644_v4 = vpop.f32.mrf.mxu1 }
 0x321   :  { %v4645_v49 = vadd.f32 %v4644_v4, %v4643_v56 }
 0x324   :  { %v8986_v51 = vpop.f32.mrf.mxu1 }
 0x326   :  { %v8989_v16 = vpop.f32.mrf.mxu1 }
 0x333   :  { %v4681_v25 = vpop.f32.mrf.mxu0 }
 0x335   :  { %v4682_v50 = vpop.f32.mrf.mxu0 }
 0x336   :  { %v4683_v23 = vadd.f32 %v4682_v50, %v4681_v25  ;;  %v2325_v50 = vadd.f32 %v4642_v29, %v2240_v33  ;;  %v9004_v33 = vld [vmem:[#allocation7 + $0x378] sm:$0xff] }
 0x338   :  { %v2405_v15 = vadd.f32 %v4683_v23, %v2320_v1  ;;  %v2245_v23 = vadd.f32 %v4601_v46, %v4557_v34 }
 0x339   :  { %v4684_v62 = vpop.f32.mrf.mxu0 }
 0x33a   :  { %v5429_v19 = vpop.f32.mrf.mxu1  ;;  %v2330_v53 = vadd.f32 %v4645_v49, %v2245_v23  ;;  %v9044_v49 = vld [vmem:[#allocation7 + $0x3d8] sm:$0xff]  ;;  %v9062_v23 = vld [vmem:[#allocation7 + $0x350] sm:$0xff] }
 0x33b   :  { %v4685_v54 = vpop.f32.mrf.mxu0  ;;  %10390 = vst [vmem:[#allocation75_spill] sm:$0xff] %v9062_v23 }
 0x33c   :  { %v4686_v32 = vadd.f32 %v4685_v54, %v4684_v62  ;;  %v2489_v60 = vpop.f32.mrf.mxu1  ;;  %v9026_v54 = vld [vmem:[#allocation7 + $0x3e0] sm:$0xff] }
 0x33d   :  { %v2490_v55 = vadd.f32 %v2489_v60, %v2405_v15  ;;  %v9022_v15 = vld [vmem:[#allocation7 + $0x368] sm:$0xff]  ;;  %v9038_v60 = vld [vmem:[#allocation7 + $0x360] sm:$0xff] }
 0x33e   :  { %v2410_v35 = vadd.f32 %v4686_v32, %v2325_v50  ;;  %v4687_v58 = vpop.f32.mrf.mxu0  ;;  %v9031_v50 = vld [vmem:[#allocation7 + $0x470] sm:$0xff]  ;;  %v9034_v32 = vmax.f32 %v8789_v20, 0.0  ;;  %v9048_v20 = vld [vmem:[#allocation7 + $0x468] sm:$0xff] }
 0x33f   :  { %v8999_v26 = vadd.f32 %v8996_v61, %v2490_v55  ;;  %v9052_v55 = vld [vmem:[#allocation7 + $0x358] sm:$0xff] }
 0x340   :  { %v2495_v1 = vadd.f32 %v5429_v19, %v2410_v35  ;;  %v9001_v48 = vpop.f32.mrf.mxu1  ;;  %v4688_v43 = vpop.f32.mrf.mxu0  ;;  %v9012_v19 = vld [vmem:[#allocation7 + $0x370] sm:$0xff] }
 0x341   :  { %v9780_v18 = vmax.f32 %v8999_v26, 0.0  ;;  %v4689_v25 = vadd.f32 %v4688_v43, %v4687_v58  ;;  %v9056_v35 = vld [vmem:[#allocation7 + $0x3d0] sm:$0xff]  ;;  %v9058_v58 = vld [vmem:[#allocation7 + $0x460] sm:$0xff]  ;;  %v9070_v43 = vld [vmem:[#allocation7 + $0x458] sm:$0xff] }
 0x342   :  { %v2961_v4 = vadd.f32 %v8996_v61, %v2495_v1  ;;  %v2499_v29 = vpop.f32.mrf.mxu1  ;;  %10389 = vst [vmem:[#allocation114_spill] sm:$0xff] %v9058_v58  ;;  %v9066_v1 = vld [vmem:[#allocation7 + $0x3c8] sm:$0xff]  ;;  %10392 = vst [vmem:[#allocation77_spill] sm:$0xff] %v9070_v43 }
 0x343   :  { %v2415_v56 = vadd.f32 %v4689_v25, %v2330_v53  ;;  %3271 = vmatmul.mubr.f32.vlgmr.msra.gmra.mxu0 %v9780_v18  ;;  %10391 = vst [vmem:[#allocation117_spill] sm:$0xff] %v9066_v1  ;;  %v9072_v53 = vld [vmem:[#allocation7 + $0x348] sm:$0xff]  ;;  %v9076_v25 = vld [vmem:[#allocation7 + $0x3c0] sm:$0xff]  ;;  %v9092_v18 = vld [vmem:[#allocation7 + $0x338] sm:$0xff] }
 0x344   :  { %v9014_v46 = vmax.f32 %v2961_v4, 0.0  ;;  %5024 = vmatpush3.msra.mxu0 %v9004_v33  ;;  %3275 = vmatprep.mubr.f32.mxu0 %v9781_v38  ;;  %10393 = vst [vmem:[#allocation123_spill] sm:$0xff] %v9072_v53  ;;  %10394 = vst [vmem:[#allocation78_spill] sm:$0xff] %v9076_v25  ;;  %v4690_v4 = vpop.f32.mrf.mxu0  ;;  %v4604_v38 = vadd.f32 %v8982_v21, %v8980_v22  ;;  %v4648_v21 = vadd.f32 %v8989_v16, %v8986_v51  ;;  %v9112_v22 = vld [vmem:[#allocation7 + $0x3a8] sm:$0xff]  ;;  %v9122_v16 = vld [vmem:[#allocation7 + $0x3a0] sm:$0xff] }
 0x345   :  { %v2500_v62 = vadd.f32 %v2499_v29, %v2415_v56  ;;  %5025 = vmatprep.subr.mxu0 %v9008_v14  ;;  %v9080_v56 = vld [vmem:[#allocation7 + $0x450] sm:$0xff]  ;;  %v9082_v29 = vld [vmem:[#allocation7 + $0x340] sm:$0xff]  ;;  %10399 = vst [vmem:[#allocation82_spill] sm:$0xff] %v9122_v16 }
 0x346   :  { %5026 = vmatpush3.msra.mxu0 %v9012_v19  ;;  %3345 = vmatprep.mubr.f32.mxu1 %v9014_v46  ;;  %10395 = vst [vmem:[#allocation126_spill] sm:$0xff] %v9080_v56  ;;  %10396 = vst [vmem:[#allocation80_spill] sm:$0xff] %v9082_v29  ;;  %v9126_v51 = vld [vmem:[#allocation7 + $0x430] sm:$0xff] }
 0x347   :  { %v2965_v31 = vadd.f32 %v8996_v61, %v2500_v62  ;;  %5027 = vmatprep.subr.mxu0 %v9019_v7  ;;  %3276 = vmatmul.mubr.f32.gmra.mxu0 %v9014_v46  ;;  %v9086_v62 = vld [vmem:[#allocation7 + $0x3b8] sm:$0xff]  ;;  %10400 = vst [vmem:[#allocation136_spill] sm:$0xff] %v9126_v51 }
 0x348   :  { %3346 = vmatmul.mubr.f32.vlgmr.msra.gmra.mxu1 %v8787_v30  ;;  %5028 = vmatpush3.msra.mxu0 %v9022_v15  ;;  %10397 = vst [vmem:[#allocation131_spill] sm:$0xff] %v9086_v62 }
 0x349   :  { %v9040_v34 = vmax.f32 %v2965_v31, 0.0  ;;  %5472 = vmatpush3.msra.mxu1 %v8971_v13  ;;  %5029 = vmatprep.subr.mxu0 %v9026_v54  ;;  %v9090_v31 = vld [vmem:[#allocation7 + $0x448] sm:$0xff] }
 0x34a   :  { %3420 = vmatprep.mubr.f32.mxu0 %v9034_v32  ;;  %5473 = vmatprep.subr.mxu1 %v9031_v50 }
 0x34b   :  { %5030 = vmatpush3.msra.mxu0 %v9038_v60  ;;  %5474 = vmatpush3.msra.mxu1 %v9031_v50 }
 0x34c   :  { %3350 = vmatprep.mubr.f32.mxu1 %v9040_v34  ;;  %5031 = vmatprep.subr.mxu0 %v9044_v49 }
 0x34d   :  { %5475 = vmatprep.subr.mxu1 %v9048_v20  ;;  %3351 = vmatmul.mubr.f32.gmra.mxu1 %v9034_v32 }
 0x34e   :  { %5032 = vmatpush3.msra.mxu0 %v9052_v55  ;;  %5476 = vmatpush3.msra.mxu1 %v9048_v20 }
 0x34f   :  { %5033 = vmatprep.subr.mxu0 %v9056_v35  ;;  %5477 = vmatprep.subr.mxu1 %v9058_v58 }
 0x350   :  { %5503 = vmatprep.mubr.f32.mxu1 %v9040_v34  ;;  %5034 = vmatpush3.msra.mxu0 %v9062_v23 }
 0x351   :  { %5478 = vmatpush3.msra.mxu1 %v9058_v58  ;;  %5035 = vmatprep.subr.mxu0 %v9066_v1  ;;  %v9098_v1 = vld [vmem:[#allocation7 + $0x3b0] sm:$0xff]  ;;  %v4560_v58 = vadd.f32 %v8978_v57, %v8976_v9  ;;  %v9128_v9 = vld [vmem:[#allocation7 + $0x320] sm:$0xff] }
 0x352   :  { %5479 = vmatprep.subr.mxu1 %v9070_v43  ;;  %5036 = vmatpush3.msra.mxu0 %v9072_v53  ;;  %v4691_v53 = vpop.f32.mrf.mxu0 }
 0x353   :  { %5480 = vmatpush3.msra.mxu1 %v9070_v43  ;;  %5037 = vmatprep.subr.mxu0 %v9076_v25  ;;  %v9102_v43 = vld [vmem:[#allocation7 + $0x440] sm:$0xff]  ;;  %v9104_v25 = vld [vmem:[#allocation7 + $0x330] sm:$0xff]  ;;  %v4692_v23 = vadd.f32 %v4691_v53, %v4690_v4  ;;  %v9138_v53 = vld [vmem:[#allocation7 + $0x318] sm:$0xff] }
 0x354   :  { %5481 = vmatprep.subr.mxu1 %v9080_v56  ;;  %5038 = vmatpush3.msra.mxu0 %v9082_v29  ;;  %v2250_v29 = vadd.f32 %v4604_v38, %v4560_v58  ;;  %v9132_v38 = vld [vmem:[#allocation7 + $0x398] sm:$0xff]  ;;  %v9136_v58 = vld [vmem:[#allocation7 + $0x428] sm:$0xff]  ;;  %10403 = vst [vmem:[#allocation141_spill] sm:$0xff] %v9138_v53 }
 0x355   :  { %5482 = vmatpush3.msra.mxu1 %v9080_v56  ;;  %5039 = vmatprep.subr.mxu0 %v9086_v62  ;;  %v9116_v62 = vld [vmem:[#allocation7 + $0x438] sm:$0xff]  ;;  %v9118_v56 = vld [vmem:[#allocation7 + $0x328] sm:$0xff]  ;;  %10401 = vst [vmem:[#allocation138_spill] sm:$0xff] %v9132_v38  ;;  %10402 = vst [vmem:[#allocation84_spill] sm:$0xff] %v9136_v58 }
 0x356   :  { %5483 = vmatprep.subr.mxu1 %v9090_v31  ;;  %5040 = vmatpush3.msra.mxu0 %v9092_v18  ;;  %10398 = vst [vmem:[#allocation134_spill] sm:$0xff] %v9116_v62  ;;  %v2335_v57 = vadd.f32 %v4648_v21, %v2250_v29  ;;  %v9142_v29 = vld [vmem:[#allocation7 + $0x390] sm:$0xff]  ;;  %v9146_v21 = vld [vmem:[#allocation7 + $0x420] sm:$0xff] }
 0x357   :  { %5484 = vmatpush3.msra.mxu1 %v9090_v31  ;;  %5041 = vmatprep.subr.mxu0 %v9098_v1  ;;  %10404 = vst [vmem:[#allocation86_spill] sm:$0xff] %v9146_v21 }
 0x358   :  { %5485 = vmatprep.subr.mxu1 %v9102_v43  ;;  %5042 = vmatpush3.msra.mxu0 %v9104_v25  ;;  %v2420_v4 = vadd.f32 %v4692_v23, %v2335_v57  ;;  %v9156_v23 = vld [vmem:[#allocation7 + $0x418] sm:$0xff]  ;;  %v9158_v57 = vld [vmem:[#allocation7 + $0x308] sm:$0xff] }
 0x359   :  { %5486 = vmatpush3.msra.mxu1 %v9102_v43  ;;  %5043 = vmatprep.subr.mxu0 %v9112_v22  ;;  %10407 = vst [vmem:[#allocation128_spill] sm:$0xff] %v9156_v23  ;;  %10408 = vst [vmem:[#allocation101_spill] sm:$0xff] %v9158_v57 }
 0x35a   :  { %5487 = vmatprep.subr.mxu1 %v9116_v62  ;;  %5044 = vmatpush3.msra.mxu0 %v9118_v56 }
 0x35b   :  { %5488 = vmatpush3.msra.mxu1 %v9116_v62  ;;  %5045 = vmatprep.subr.mxu0 %v9122_v16  ;;  %v9148_v62 = vld [vmem:[#allocation7 + $0x310] sm:$0xff]  ;;  %v9152_v16 = vld [vmem:[#allocation7 + $0x388] sm:$0xff] }
 0x35c   :  { %5489 = vmatprep.subr.mxu1 %v9126_v51  ;;  %5046 = vmatpush3.msra.mxu0 %v9128_v9  ;;  %10405 = vst [vmem:[#allocation127_spill] sm:$0xff] %v9148_v62  ;;  %10406 = vst [vmem:[#allocation19_spill] sm:$0xff] %v9152_v16 }
 0x35d   :  { %5490 = vmatpush3.msra.mxu1 %v9126_v51  ;;  %5047 = vmatprep.subr.mxu0 %v9132_v38  ;;  %v2505_v38 = vadd.f32 %v9001_v48, %v2420_v4  ;;  %v9163_v51 = vld [vmem:[#allocation7 + $0x380] sm:$0xff]  ;;  %v9175_v48 = vld [vmem:[#allocation7 + $0x408] sm:$0xff] }
 0x35e   :  { %5491 = vmatprep.subr.mxu1 %v9136_v58  ;;  %5048 = vmatpush3.msra.mxu0 %v9138_v53  ;;  %10409 = vst [vmem:[#allocation133_spill] sm:$0xff] %v9163_v51  ;;  %v9167_v53 = vld [vmem:[#allocation7 + $0x410] sm:$0xff]  ;;  %10412 = vst [vmem:[#allocation79_spill] sm:$0xff] %v9175_v48 }
 0x35f   :  { %5492 = vmatpush3.msra.mxu1 %v9136_v58  ;;  %5049 = vmatprep.subr.mxu0 %v9142_v29  ;;  %10410 = vst [vmem:[#allocation107_spill] sm:$0xff] %v9167_v53  ;;  %v9169_v58 = vld [vmem:[#allocation7 + $0x300] sm:$0xff]  ;;  %v9178_v4 = vadd.f32 %v8996_v61, %v2505_v38  ;;  %v9199_v38 = vpop.f32.mrf.mxu0 }
 0x360   :  { %5493 = vmatprep.subr.mxu1 %v9146_v21  ;;  %5050 = vmatpush3.msra.mxu0 %v9148_v62  ;;  %10411 = vst [vmem:[#allocation76_spill] sm:$0xff] %v9169_v58  ;;  %v10490_v62 = vld [vmem:[#allocation68_spill] sm:$0xff] }
 0x361   :  { %5494 = vmatpush3.msra.mxu1 %v9146_v21  ;;  %5051 = vmatprep.subr.mxu0 %v9152_v16  ;;  %10413 = vst [vmem:[#allocation111_spill] sm:$0xff] %v9178_v4  ;;  %v9807_v16 = vmax.f32 %v8776_v52, 0.0  ;;  %v10414_v21 = vmax.f32 %v8378_v24, 0.0  ;;  %v9808_v61 = vmax.f32 %v9178_v4, 0.0  ;;  %v2983_v24 = vmax.f32 %v8395_v45, 0.0  ;;  %v9210_v45 = vpop.f32.mrf.mxu0  ;;  %v10471_v52 = vld [vmem:[#allocation56_spill] sm:$0xff] }
 0x362   :  { %5495 = vmatprep.subr.mxu1 %v9156_v23  ;;  %5052 = vmatpush3.msra.mxu0 %v9158_v57  ;;  %v9186_v57 = vld [vmem:[#allocation7 + $0x400] sm:$0xff] }
 0x363   :  { %5496 = vmatpush3.msra.mxu1 %v9156_v23  ;;  %5053 = vmatprep.subr.mxu0 %v9163_v51  ;;  %10415 = vst [vmem:[#allocation42_spill] sm:$0xff] %v9186_v57  ;;  %v10480_v4 = vld [vmem:[#allocation49_spill] sm:$0xff]  ;;  %v10485_v51 = vld [vmem:[#allocation87_spill] sm:$0xff] }
 0x364   :  { %5497 = vmatprep.subr.mxu1 %v9167_v53  ;;  %5054 = vmatpush3.msra.mxu0 %v9169_v58 }
 0x365   :  { %5498 = vmatpush3.msra.mxu1 %v9167_v53  ;;  %3421 = vmatmul.mubr.f32.vlgmr.msra.gmra.mxu0 %v10414_v21  ;;  %v10431_v21 = vld [vmem:[#allocation74_spill] sm:$0xff] }
 0x366   :  { %5499 = vmatprep.subr.mxu1 %v9175_v48  ;;  %5079 = vmatprep.subr.mxu0 %v8558_v2  ;;  %v10416_v2 = vmax.f32 %v8999_v26, 0.0  ;;  %v10430_v26 = vld [vmem:[#allocation58_spill] sm:$0xff] }
 0x367   :  { %3425 = vmatprep.mubr.f32.mxu0 %v9807_v16  ;;  %5500 = vmatpush3.msra.mxu1 %v9175_v48  ;;  %v10467_v16 = vld [vmem:[#allocation71_spill] sm:$0xff]  ;;  %v10477_v48 = vld [vmem:[#allocation116_spill] sm:$0xff]  ;;  %v10481_v53 = vld [vmem:[#allocation50_spill] sm:$0xff] }
 0x368   :  { %5080 = vmatpush3.msra.mxu0 %v8562_v0  ;;  %5501 = vmatprep.subr.mxu1 %v9186_v57  ;;  %v9220_v0 = vpop.f32.mrf.mxu0 }
 0x369   :  { %5081 = vmatprep.subr.mxu0 %v8577_v41  ;;  %5502 = vmatpush3.msra.mxu1 %v9186_v57  ;;  %v9222_v41 = vpop.f32.mrf.mxu1  ;;  %v10476_v57 = vld [vmem:[#allocation115_spill] sm:$0xff] }
 0x36a   :  { %5082 = vmatpush3.msra.mxu0 %v8585_v63  ;;  %5504 = vmatmul.mubr.f32.vlgmr.msra.gmra.mxu1 %v9808_v61  ;;  %v10417_v63 = vld [vmem:[#allocation18_spill] sm:$0xff] }
 0x36b   :  { %3426 = vmatmul.mubr.f32.gmra.mxu0 %v2983_v24  ;;  %5083 = vmatprep.subr.mxu0 %v8597_v8  ;;  %v10418_v8 = vld [vmem:[#allocation36_spill] sm:$0xff]  ;;  %v10432_v24 = vld [vmem:[#allocation23_spill] sm:$0xff] }
 0x36c   :  { %5084 = vmatpush3.msra.mxu0 %v8603_v12  ;;  %3570 = vmatprep.mubr.f32.mxu0 %v10416_v2  ;;  %v10419_v12 = vld [vmem:[#allocation28_spill] sm:$0xff]  ;;  %v10433_v2 = vld [vmem:[#allocation110_spill] sm:$0xff] }
 0x36d   :  { %3645 = vmatprep.mubr.f32.mxu1 %v8787_v30  ;;  %5085 = vmatprep.subr.mxu0 %v8611_v6  ;;  %v9232_v6 = vpop.f32.mrf.mxu0 }
 0x36e   :  { %5086 = vmatpush3.msra.mxu0 %v8617_v5  ;;  %5117 = vmatprep.subr.mxu1 %v8721_v59  ;;  %v9234_v5 = vpop.f32.mrf.mxu1  ;;  %v10426_v59 = vld [vmem:[#allocation57_spill] sm:$0xff] }
 0x36f   :  { %5087 = vmatprep.subr.mxu0 %v8621_v28  ;;  %5118 = vmatpush3.msra.mxu1 %v8727_v27  ;;  %v10420_v28 = vld [vmem:[#allocation21_spill] sm:$0xff] }
 0x370   :  { %5088 = vmatpush3.msra.mxu0 %v8629_v3  ;;  %5119 = vmatprep.subr.mxu1 %v8748_v11  ;;  %v10421_v3 = vld [vmem:[#allocation99_spill] sm:$0xff]  ;;  %v10427_v27 = vld [vmem:[#allocation45_spill] sm:$0xff]  ;;  %v9244_v11 = vpop.f32.mrf.mxu0 }
 0x371   :  { %5089 = vmatprep.subr.mxu0 %v8633_v17  ;;  %5120 = vmatpush3.msra.mxu1 %v8755_v44  ;;  %v10422_v17 = vld [vmem:[#allocation48_spill] sm:$0xff]  ;;  %v9246_v44 = vpop.f32.mrf.mxu1 }
 0x372   :  { %5090 = vmatpush3.msra.mxu0 %v8639_v47  ;;  %5121 = vmatprep.subr.mxu1 %v8768_v42  ;;  %v10423_v47 = vld [vmem:[#allocation100_spill] sm:$0xff]  ;;  %v10428_v42 = vld [vmem:[#allocation38_spill] sm:$0xff] }
 0x373   :  { %5091 = vmatprep.subr.mxu0 %v8643_v37  ;;  %5122 = vmatpush3.msra.mxu1 %v8774_v36  ;;  %v10424_v37 = vld [vmem:[#allocation37_spill] sm:$0xff]  ;;  %v10429_v36 = vld [vmem:[#allocation30_spill] sm:$0xff] }
 0x374   :  { %5092 = vmatpush3.msra.mxu0 %v8649_v39  ;;  %5123 = vmatprep.subr.mxu1 %v10417_v63  ;;  %v10425_v39 = vld [vmem:[#allocation103_spill] sm:$0xff] }
 0x375   :  { %5093 = vmatprep.subr.mxu0 %v10418_v8  ;;  %5124 = vmatpush3.msra.mxu1 %v10419_v12  ;;  %v10434_v63 = vld [vmem:[#allocation59_spill] sm:$0xff]  ;;  %v10435_v8 = vld [vmem:[#allocation17_spill] sm:$0xff]  ;;  %v9256_v12 = vpop.f32.mrf.mxu0 }
 0x376   :  { %5094 = vmatpush3.msra.mxu0 %v10420_v28  ;;  %5125 = vmatprep.subr.mxu1 %v10421_v3  ;;  %v9258_v28 = vpop.f32.mrf.mxu1  ;;  %v10436_v3 = vld [vmem:[#allocation39_spill] sm:$0xff] }
 0x377   :  { %5095 = vmatprep.subr.mxu0 %v10422_v17  ;;  %5126 = vmatpush3.msra.mxu1 %v10423_v47  ;;  %v10437_v17 = vld [vmem:[#allocation47_spill] sm:$0xff]  ;;  %v10438_v47 = vld [vmem:[#allocation60_spill] sm:$0xff] }
 0x378   :  { %5096 = vmatpush3.msra.mxu0 %v10424_v37  ;;  %5127 = vmatprep.subr.mxu1 %v10425_v39  ;;  %v10439_v37 = vld [vmem:[#allocation31_spill] sm:$0xff]  ;;  %v10440_v39 = vld [vmem:[#allocation40_spill] sm:$0xff] }
 0x379   :  { %5097 = vmatprep.subr.mxu0 %v10426_v59  ;;  %5128 = vmatpush3.msra.mxu1 %v10427_v27  ;;  %v10441_v59 = vld [vmem:[#allocation97_spill] sm:$0xff] }
 0x37a   :  { %5098 = vmatpush3.msra.mxu0 %v10428_v42  ;;  %5129 = vmatprep.subr.mxu1 %v10429_v36  ;;  %v10442_v27 = vld [vmem:[#allocation25_spill] sm:$0xff]  ;;  %v10443_v42 = vld [vmem:[#allocation92_spill] sm:$0xff]  ;;  %v9268_v36 = vpop.f32.mrf.mxu0 }
 0x37b   :  { %5099 = vmatprep.subr.mxu0 %v10430_v26  ;;  %5130 = vmatpush3.msra.mxu1 %v10431_v21  ;;  %v9270_v26 = vpop.f32.mrf.mxu1  ;;  %v10444_v21 = vld [vmem:[#allocation62_spill] sm:$0xff] }
 0x37c   :  { %5100 = vmatpush3.msra.mxu0 %v10432_v24  ;;  %5131 = vmatprep.subr.mxu1 %v10433_v2  ;;  %v10445_v24 = vld [vmem:[#allocation119_spill] sm:$0xff] }
 0x37d   :  { %5101 = vmatprep.subr.mxu0 %v10434_v63  ;;  %5132 = vmatpush3.msra.mxu1 %v10435_v8  ;;  %v10446_v2 = vld [vmem:[#allocation63_spill] sm:$0xff]  ;;  %v10448_v8 = vld [vmem:[#allocation26_spill] sm:$0xff] }
 0x37e   :  { %5102 = vmatpush3.msra.mxu0 %v10436_v3  ;;  %5133 = vmatprep.subr.mxu1 %v10437_v17  ;;  %v10447_v63 = vld [vmem:[#allocation83_spill] sm:$0xff]  ;;  %v10449_v3 = vld [vmem:[#allocation122_spill] sm:$0xff]  ;;  %v10450_v17 = vld [vmem:[#allocation64_spill] sm:$0xff] }
 0x37f   :  { %5103 = vmatprep.subr.mxu0 %v10438_v47  ;;  %5134 = vmatpush3.msra.mxu1 %v10439_v37  ;;  %v10451_v47 = vld [vmem:[#allocation124_spill] sm:$0xff]  ;;  %v9280_v37 = vpop.f32.mrf.mxu0 }
 0x380   :  { %5104 = vmatpush3.msra.mxu0 %v10440_v39  ;;  %5135 = vmatprep.subr.mxu1 %v10441_v59  ;;  %v9282_v39 = vpop.f32.mrf.mxu1  ;;  %v10452_v59 = vld [vmem:[#allocation27_spill] sm:$0xff] }
 0x381   :  { %5105 = vmatprep.subr.mxu0 %v10442_v27  ;;  %5136 = vmatpush3.msra.mxu1 %v10443_v42  ;;  %v10453_v27 = vld [vmem:[#allocation34_spill] sm:$0xff]  ;;  %v10454_v42 = vld [vmem:[#allocation41_spill] sm:$0xff] }
 0x382   :  { %5106 = vmatpush3.msra.mxu0 %v10444_v21  ;;  %5137 = vmatprep.subr.mxu1 %v10445_v24  ;;  %v10455_v21 = vmax.f32 %v10454_v42, 0.0  ;;  %v10456_v24 = vld [vmem:[#allocation89_spill] sm:$0xff] }
 0x383   :  { %5107 = vmatprep.subr.mxu0 %v10446_v2  ;;  %5138 = vmatpush3.msra.mxu1 %v10447_v63  ;;  %v4833_v2 = vpop.f32.mrf.mxu0  ;;  %v10457_v63 = vld [vmem:[#allocation66_spill] sm:$0xff] }
 0x384   :  { %5108 = vmatpush3.msra.mxu0 %v10448_v8  ;;  %5139 = vmatprep.subr.mxu1 %v10449_v3  ;;  %v10458_v8 = vld [vmem:[#allocation67_spill] sm:$0xff]  ;;  %v10459_v3 = vld [vmem:[#allocation52_spill] sm:$0xff] }
 0x385   :  { %5109 = vmatprep.subr.mxu0 %v10450_v17  ;;  %5140 = vmatpush3.msra.mxu1 %v10451_v47  ;;  %v9293_v17 = vpop.f32.mrf.mxu1  ;;  %v10460_v47 = vld [vmem:[#allocation61_spill] sm:$0xff]  ;;  %v4834_v42 = vpop.f32.mrf.mxu0 }
 0x386   :  { %5110 = vmatpush3.msra.mxu0 %v10452_v59  ;;  %5141 = vmatprep.subr.mxu1 %v10453_v27  ;;  %v10461_v59 = vld [vmem:[#allocation91_spill] sm:$0xff]  ;;  %v10462_v27 = vld [vmem:[#allocation44_spill] sm:$0xff] }
 0x387   :  { %3571 = vmatmul.mubr.f32.vlgmr.msra.gmra.mxu0 %v10455_v21  ;;  %5155 = vmatprep.subr.mxu0 %v10456_v24  ;;  %v10463_v21 = vld [vmem:[#allocation29_spill] sm:$0xff]  ;;  %v10464_v24 = vld [vmem:[#allocation95_spill] sm:$0xff] }
 0x388   :  { %3575 = vmatprep.mubr.f32.mxu0 %v9014_v46  ;;  %5156 = vmatpush3.msra.mxu0 %v10457_v63  ;;  %v10465_v63 = vld [vmem:[#allocation32_spill] sm:$0xff] }
 0x389   :  { %5157 = vmatprep.subr.mxu0 %v10458_v8  ;;  %5142 = vmatpush3.msra.mxu1 %v10459_v3  ;;  %v10466_v8 = vld [vmem:[#allocation96_spill] sm:$0xff]  ;;  %v9303_v3 = vpop.f32.mrf.mxu1 }
 0x38a   :  { %5158 = vmatpush3.msra.mxu0 %v10460_v47  ;;  %5143 = vmatprep.subr.mxu1 %v10461_v59  ;;  %v10468_v47 = vld [vmem:[#allocation98_spill] sm:$0xff] }
 0x38b   :  { %3576 = vmatmul.mubr.f32.gmra.mxu0 %v8787_v30  ;;  %5159 = vmatprep.subr.mxu0 %v10462_v27  ;;  %v10469_v59 = vld [vmem:[#allocation46_spill] sm:$0xff]  ;;  %v10470_v30 = vld [vmem:[#allocation132_spill] sm:$0xff]  ;;  %v4836_v27 = vpop.f32.mrf.mxu0  ;;  %v4877_v61 = vpop.f32.mrf.mxu1 }
 0x38c   :  { %5160 = vmatpush3.msra.mxu0 %v10463_v21  ;;  %5144 = vmatpush3.msra.mxu1 %v10464_v24  ;;  %v10472_v21 = vld [vmem:[#allocation69_spill] sm:$0xff]  ;;  %v10473_v24 = vld [vmem:[#allocation90_spill] sm:$0xff] }
 0x38d   :  { %5161 = vmatprep.subr.mxu0 %v10465_v63  ;;  %5145 = vmatprep.subr.mxu1 %v10466_v8  ;;  %v10474_v63 = vld [vmem:[#allocation104_spill] sm:$0xff] }
 0x38e   :  { %5162 = vmatpush3.msra.mxu0 %v10467_v16  ;;  %5146 = vmatpush3.msra.mxu1 %v10468_v47  ;;  %v10475_v8 = vld [vmem:[#allocation112_spill] sm:$0xff]  ;;  %v4837_v16 = vpop.f32.mrf.mxu0  ;;  %v4878_v47 = vpop.f32.mrf.mxu1 }
 0x38f   :  { %5163 = vmatprep.subr.mxu0 %v10469_v59  ;;  %5147 = vmatprep.subr.mxu1 %v10470_v30  ;;  %v10478_v59 = vld [vmem:[#allocation118_spill] sm:$0xff]  ;;  %v10479_v30 = vld [vmem:[#allocation33_spill] sm:$0xff] }
 0x390   :  { %5164 = vmatpush3.msra.mxu0 %v10471_v52  ;;  %5148 = vmatpush3.msra.mxu1 %v10472_v21  ;;  %v4839_v52 = vpop.f32.mrf.mxu0  ;;  %v4880_v21 = vpop.f32.mrf.mxu1 }
 0x391   :  { %5165 = vmatprep.subr.mxu0 %v10473_v24  ;;  %5193 = vmatprep.subr.mxu1 %v10474_v63  ;;  %v10482_v24 = vld [vmem:[#allocation51_spill] sm:$0xff]  ;;  %v10483_v63 = vld [vmem:[#allocation94_spill] sm:$0xff] }
 0x392   :  { %5166 = vmatpush3.msra.mxu0 %v10475_v8  ;;  %v10484_v8 = vld [vmem:[#allocation125_spill] sm:$0xff]  ;;  %v4881_v58 = vpop.f32.mrf.mxu1 }
 0x393   :  { %5167 = vmatprep.subr.mxu0 %v10476_v57  ;;  %v4840_v57 = vpop.f32.mrf.mxu0 }
 0x394   :  { %5168 = vmatpush3.msra.mxu0 %v10477_v48  ;;  %v4794_v48 = vadd.f32 %v9258_v28, %v9246_v44  ;;  %v4883_v23 = vpop.f32.mrf.mxu1  ;;  %v4747_v44 = vadd.f32 %v9210_v45, %v9199_v38  ;;  %v10493_v38 = vsub.s32 3, %v10387_v40 }
 0x395   :  { %5169 = vmatprep.subr.mxu0 %v10478_v59  ;;  %v10486_v59 = vld [vmem:[#allocation93_spill] sm:$0xff] }
 0x396   :  { %5170 = vmatpush3.msra.mxu0 %v10479_v30  ;;  %v4791_v30 = vadd.f32 %v9234_v5, %v9222_v41  ;;  %v4797_v41 = vadd.f32 %v9282_v39, %v9270_v26  ;;  %v9348_v45 = vrot.slane %v8991_v10, %v10493_v38  ;;  %v10495_v39 = vld [vmem:[#allocation108_spill] sm:$0xff]  ;;  %v10522_v38 = vld [vmem:[#allocation79_spill] sm:$0xff] }
 0x397   :  { %5171 = vmatprep.subr.mxu0 %v10480_v4  ;;  %v10487_v4 = vld [vmem:[#allocation88_spill] sm:$0xff] }
 0x398   :  { %5172 = vmatpush3.msra.mxu0 %v10481_v53  ;;  %v4750_v53 = vadd.f32 %v9232_v6, %v9220_v0  ;;  %v10491_v0 = vld [vmem:[#allocation105_spill] sm:$0xff]  ;;  %v2660_v6 = vadd.f32 %v4791_v30, %v4747_v44 }
 0x399   :  { %5173 = vmatprep.subr.mxu0 %v10482_v24  ;;  %v4838_v24 = vadd.f32 %v4837_v16, %v4836_v27  ;;  %v4879_v27 = vadd.f32 %v4878_v47, %v4877_v61  ;;  %v10492_v16 = vld [vmem:[#allocation109_spill] sm:$0xff] }
 0x39a   :  { %5174 = vmatpush3.msra.mxu0 %v10483_v63  ;;  %v10488_v63 = vld [vmem:[#allocation130_spill] sm:$0xff]  ;;  %v2665_v28 = vadd.f32 %v4794_v48, %v4750_v53  ;;  %v10496_v47 = vld [vmem:[#allocation73_spill] sm:$0xff] }
 0x39b   :  { %5175 = vmatprep.subr.mxu0 %v10484_v8  ;;  %v9333_v8 = vpop.f32.mrf.mxu0 }
 0x39c   :  { %5176 = vmatpush3.msra.mxu0 %v10485_v51  ;;  %v10489_v51 = vld [vmem:[#allocation102_spill] sm:$0xff]  ;;  %v2750_v5 = vadd.f32 %v4838_v24, %v2665_v28 }
 0x39d   :  { %5177 = vmatprep.subr.mxu0 %v10486_v59  ;;  %v4835_v59 = vadd.f32 %v4834_v42, %v4833_v2  ;;  %v4841_v42 = vadd.f32 %v4840_v57, %v4839_v52 }
 0x39e   :  { %5178 = vmatpush3.msra.mxu0 %v10487_v4  ;;  %v4882_v4 = vadd.f32 %v4881_v58, %v4880_v21  ;;  %v10494_v58 = vld [vmem:[#allocation106_spill] sm:$0xff] }
 0x39f   :  { %5179 = vmatprep.subr.mxu0 %v10488_v63  ;;  %v9343_v63 = vpop.f32.mrf.mxu0  ;;  %v2745_v2 = vadd.f32 %v4835_v59, %v2660_v6  ;;  %v10515_v6 = vld [vmem:[#allocation101_spill] sm:$0xff] }
 0x3a0   :  { %5180 = vmatpush3.msra.mxu0 %v10489_v51  ;;  %v4884_v51 = vpop.f32.mrf.mxu1  ;;  %v2835_v26 = vadd.f32 %v4882_v4, %v2750_v5  ;;  %v10517_v5 = vld [vmem:[#allocation133_spill] sm:$0xff] }
 0x3a1   :  { %5181 = vmatprep.subr.mxu0 %v10490_v62  ;;  %v4753_v62 = vadd.f32 %v9256_v12, %v9244_v11  ;;  %v4885_v48 = vadd.f32 %v4884_v51, %v4883_v23  ;;  %v2830_v40 = vadd.f32 %v4879_v27, %v2745_v2  ;;  %v10518_v27 = vld [vmem:[#allocation76_spill] sm:$0xff]  ;;  %v10524_v2 = vld [vmem:[#allocation65_spill] sm:$0xff] }
 0x3a2   :  { %5182 = vmatpush3.msra.mxu0 %v10491_v0 }
 0x3a3   :  { %5183 = vmatprep.subr.mxu0 %v10492_v16  ;;  %v2670_v21 = vadd.f32 %v4797_v41, %v4753_v62  ;;  %v10516_v41 = vld [vmem:[#allocation128_spill] sm:$0xff]  ;;  %v10519_v16 = vld [vmem:[#allocation107_spill] sm:$0xff]  ;;  %v10523_v62 = vld [vmem:[#allocation42_spill] sm:$0xff] }
 0x3a4   :  { %5184 = vmatpush3.msra.mxu0 %v10494_v58 }
 0x3a5   :  { %5185 = vmatprep.subr.mxu0 %v10495_v39  ;;  %v2755_v30 = vadd.f32 %v4841_v42, %v2670_v21  ;;  %v3933_v42 = vld [vmem:[#allocation10 + $0xf8] sm:$0xff]  ;;  %v3916_v39 = vld [vmem:[#allocation10 + $0x70] sm:$0xff] }
 0x3a6   :  { %v5467_v61 = vpop.f32.mrf.mxu0  ;;  %5186 = vmatpush3.msra.mxu0 %v10496_v47  ;;  %v3931_v47 = vld [vmem:[#allocation10 + $0xe8] sm:$0xff]  ;;  %v4027_v21 = vld [vmem:[#allocation10 + $0x178] sm:$0xff] }
 0x3a7   :  { %v2920_v53 = vadd.f32 %v5467_v61, %v2835_v26  ;;  %5506 = vmatprep.subr.mxu0 %v8971_v13  ;;  %v2840_v57 = vadd.f32 %v4885_v48, %v2755_v30  ;;  %v3932_v26 = vld [vmem:[#allocation10 + $0xf0] sm:$0xff]  ;;  %v4043_v61 = vld [vmem:[#allocation10 + $0x1f8] sm:$0xff]  ;;  %v4041_v30 = vld [vmem:[#allocation10 + $0x1e8] sm:$0xff] }
 0x3a8   :  { %v2914_v10 = vpop.f32.mrf.mxu0  ;;  %v4042_v48 = vld [vmem:[#allocation10 + $0x1f0] sm:$0xff] }
 0x3a9   :  { %v2962_v24 = vadd.f32 %v9348_v45, %v2920_v53  ;;  %v2915_v44 = vadd.f32 %v2914_v10, %v2830_v40  ;;  %v3915_v53 = vld [vmem:[#allocation10 + $0x68] sm:$0xff]  ;;  %v4026_v40 = vld [vmem:[#allocation10 + $0x170] sm:$0xff]  ;;  %v3930_v10 = vld [vmem:[#allocation10 + $0xe0] sm:$0xff] }
 0x3aa   :  { %v9357_v11 = vpop.f32.mrf.mxu0 }
 0x3ab   :  { %v2978_v12 = vmax.f32 %v2962_v24, 0.0  ;;  %v2958_v52 = vadd.f32 %v9348_v45, %v2915_v44  ;;  %v4025_v24 = vld [vmem:[#allocation10 + $0x168] sm:$0xff]  ;;  %v3914_v44 = vld [vmem:[#allocation10 + $0x60] sm:$0xff] }
 0x3ac   :  { %v2924_v28 = vpop.f32.mrf.mxu0 }
 0x3ad   :  { %v2974_v59 = vmax.f32 %v2958_v52, 0.0  ;;  %v2925_v4 = vadd.f32 %v2924_v28, %v2840_v57  ;;  %3720 = vmatprep.mubr.f32.mxu0 %v2978_v12  ;;  %v4024_v52 = vld [vmem:[#allocation10 + $0x160] sm:$0xff]  ;;  %v3913_v57 = vld [vmem:[#allocation10 + $0x58] sm:$0xff] }
 0x3ae   :  { %3721 = vmatmul.mubr.f32.vlgmr.msra.gmra.mxu0 %v9014_v46  ;;  %v10501_v46 = vld [vmem:[#allocation77_spill] sm:$0xff]  ;;  %v4039_v28 = vld [vmem:[#allocation10 + $0x1d8] sm:$0xff] }
 0x3af   :  { %v2966_v23 = vadd.f32 %v9348_v45, %v2925_v4  ;;  %3646 = vmatmul.mubr.f32.vlgmr.msra.gmra.mxu1 %v2974_v59  ;;  %5507 = vmatpush3.msra.mxu0 %v8971_v13  ;;  %v10497_v13 = vld [vmem:[#allocation75_spill] sm:$0xff] }
 0x3b0   :  { %5194 = vmatpush3.msra.mxu1 %v9004_v33  ;;  %3650 = vmatprep.mubr.f32.mxu1 %v9034_v32  ;;  %v10498_v33 = vld [vmem:[#allocation114_spill] sm:$0xff]  ;;  %v4023_v4 = vld [vmem:[#allocation10 + $0x158] sm:$0xff] }
 0x3b1   :  { %v2982_v0 = vmax.f32 %v2966_v23, 0.0  ;;  %5195 = vmatprep.subr.mxu1 %v9008_v14  ;;  %5508 = vmatprep.subr.mxu0 %v9031_v50  ;;  %v10499_v14 = vld [vmem:[#allocation117_spill] sm:$0xff]  ;;  %v3928_v59 = vld [vmem:[#allocation10 + $0xd0] sm:$0xff] }
 0x3b2   :  { %5196 = vmatpush3.msra.mxu1 %v9012_v19  ;;  %5509 = vmatpush3.msra.mxu0 %v9031_v50  ;;  %v10500_v19 = vld [vmem:[#allocation123_spill] sm:$0xff]  ;;  %v10504_v50 = vld [vmem:[#allocation126_spill] sm:$0xff] }
 0x3b3   :  { %5197 = vmatprep.subr.mxu1 %v9019_v7  ;;  %3651 = vmatmul.mubr.f32.gmra.mxu1 %v2978_v12  ;;  %v4886_v7 = vpop.f32.mrf.mxu1  ;;  %v3929_v12 = vld [vmem:[#allocation10 + $0xd8] sm:$0xff]  ;;  %v3912_v23 = vld [vmem:[#allocation10 + $0x50] sm:$0xff] }
 0x3b4   :  { %5198 = vmatpush3.msra.mxu1 %v9022_v15  ;;  %3725 = vmatprep.mubr.f32.mxu0 %v2982_v0  ;;  %v10502_v15 = vld [vmem:[#allocation78_spill] sm:$0xff] }
 0x3b5   :  { %5199 = vmatprep.subr.mxu1 %v9026_v54  ;;  %3795 = vmatprep.mubr.f32.mxu1 %v9040_v34  ;;  %v10503_v54 = vld [vmem:[#allocation80_spill] sm:$0xff] }
 0x3b6   :  { %5200 = vmatpush3.msra.mxu1 %v9038_v60  ;;  %3726 = vmatmul.mubr.f32.gmra.mxu0 %v9040_v34  ;;  %v10505_v60 = vld [vmem:[#allocation131_spill] sm:$0xff]  ;;  %v4800_v34 = vadd.f32 %v9303_v3, %v9293_v17  ;;  %v10511_v17 = vld [vmem:[#allocation84_spill] sm:$0xff] }
 0x3b7   :  { %5201 = vmatprep.subr.mxu1 %v9044_v49  ;;  %5510 = vmatprep.subr.mxu0 %v9048_v20  ;;  %v4887_v49 = vpop.f32.mrf.mxu1  ;;  %v10512_v3 = vld [vmem:[#allocation127_spill] sm:$0xff] }
 0x3b8   :  { %5202 = vmatpush3.msra.mxu1 %v9052_v55  ;;  %5511 = vmatpush3.msra.mxu0 %v9048_v20  ;;  %v4756_v20 = vadd.f32 %v9280_v37, %v9268_v36  ;;  %v4844_v55 = vadd.f32 %v9343_v63, %v9333_v8  ;;  %v10509_v37 = vld [vmem:[#allocation138_spill] sm:$0xff]  ;;  %v10514_v8 = vld [vmem:[#allocation19_spill] sm:$0xff] }
 0x3b9   :  { %5203 = vmatprep.subr.mxu1 %v9056_v35  ;;  %5538 = vmatprep.mubr.f32.mxu0 %v2982_v0  ;;  %v4888_v35 = vadd.f32 %v4887_v49, %v4886_v7  ;;  %v10520_v63 = vld [vmem:[#allocation111_spill] sm:$0xff]  ;;  %v4021_v7 = vld [vmem:[#allocation10 + $0x148] sm:$0xff]  ;;  %v4020_v49 = vld [vmem:[#allocation10 + $0x140] sm:$0xff] }
 0x3ba   :  { %5204 = vmatpush3.msra.mxu1 %v10497_v13  ;;  %5512 = vmatprep.subr.mxu0 %v10498_v33  ;;  %v10521_v51 = vmax.f32 %v10520_v63, 0.0  ;;  %v4038_v0 = vld [vmem:[#allocation10 + $0x1d0] sm:$0xff]  ;;  %v3927_v13 = vld [vmem:[#allocation10 + $0xc8] sm:$0xff]  ;;  %v3918_v63 = vld [vmem:[#allocation10 + $0x80] sm:$0xff] }
 0x3bb   :  { %5205 = vmatprep.subr.mxu1 %v10499_v14  ;;  %5513 = vmatpush3.msra.mxu0 %v10498_v33  ;;  %v4022_v33 = vld [vmem:[#allocation10 + $0x150] sm:$0xff]  ;;  %v3911_v14 = vld [vmem:[#allocation10 + $0x48] sm:$0xff] }
 0x3bc   :  { %5206 = vmatpush3.msra.mxu1 %v10500_v19  ;;  %5514 = vmatprep.subr.mxu0 %v10501_v46  ;;  %v4037_v19 = vld [vmem:[#allocation10 + $0x1c8] sm:$0xff] }
 0x3bd   :  { %5207 = vmatprep.subr.mxu1 %v10502_v15  ;;  %5515 = vmatpush3.msra.mxu0 %v10501_v46  ;;  %v3926_v46 = vld [vmem:[#allocation10 + $0xc0] sm:$0xff] }
 0x3be   :  { %5208 = vmatpush3.msra.mxu1 %v10503_v54  ;;  %5516 = vmatprep.subr.mxu0 %v10504_v50  ;;  %v3910_v15 = vld [vmem:[#allocation10 + $0x40] sm:$0xff]  ;;  %v3925_v54 = vld [vmem:[#allocation10 + $0xb8] sm:$0xff] }
 0x3bf   :  { %5209 = vmatprep.subr.mxu1 %v10505_v60  ;;  %5517 = vmatpush3.msra.mxu0 %v10504_v50  ;;  %v3909_v50 = vld [vmem:[#allocation10 + $0x38] sm:$0xff]  ;;  %v4036_v60 = vld [vmem:[#allocation10 + $0x1c0] sm:$0xff] }
 0x3c0   :  { %5210 = vmatpush3.msra.mxu1 %v9092_v18  ;;  %5518 = vmatprep.subr.mxu0 %v9090_v31  ;;  %v2675_v18 = vadd.f32 %v4800_v34, %v4756_v20  ;;  %v3924_v34 = vld [vmem:[#allocation10 + $0xb0] sm:$0xff] }
 0x3c1   :  { %5211 = vmatprep.subr.mxu1 %v9098_v1  ;;  %5519 = vmatpush3.msra.mxu0 %v9090_v31  ;;  %v10506_v1 = vld [vmem:[#allocation134_spill] sm:$0xff] }
 0x3c2   :  { %5212 = vmatpush3.msra.mxu1 %v9104_v25  ;;  %5520 = vmatprep.subr.mxu0 %v9102_v43  ;;  %v10507_v31 = vld [vmem:[#allocation82_spill] sm:$0xff]  ;;  %v2760_v36 = vadd.f32 %v4844_v55, %v2675_v18  ;;  %v10508_v25 = vld [vmem:[#allocation136_spill] sm:$0xff] }
 0x3c3   :  { %5213 = vmatprep.subr.mxu1 %v9112_v22  ;;  %5521 = vmatpush3.msra.mxu0 %v9102_v43  ;;  %v10510_v22 = vld [vmem:[#allocation141_spill] sm:$0xff]  ;;  %v3908_v20 = vld [vmem:[#allocation10 + $0x30] sm:$0xff]  ;;  %v4035_v55 = vld [vmem:[#allocation10 + $0x1b8] sm:$0xff] }
 0x3c4   :  { %5214 = vmatpush3.msra.mxu1 %v9118_v56  ;;  %5522 = vmatprep.subr.mxu0 %v10506_v1  ;;  %v2845_v43 = vadd.f32 %v4888_v35, %v2760_v36  ;;  %v3923_v18 = vld [vmem:[#allocation10 + $0xa8] sm:$0xff]  ;;  %v4019_v35 = vld [vmem:[#allocation10 + $0x138] sm:$0xff]  ;;  %v3922_v36 = vld [vmem:[#allocation10 + $0xa0] sm:$0xff] }
 0x3c5   :  { %5215 = vmatprep.subr.mxu1 %v10507_v31  ;;  %5523 = vmatpush3.msra.mxu0 %v10506_v1  ;;  %v3907_v1 = vld [vmem:[#allocation10 + $0x28] sm:$0xff]  ;;  %v4034_v31 = vld [vmem:[#allocation10 + $0x1b0] sm:$0xff] }
 0x3c6   :  { %5216 = vmatpush3.msra.mxu1 %v9128_v9  ;;  %5524 = vmatprep.subr.mxu0 %v10508_v25  ;;  %v2930_v56 = vadd.f32 %v9357_v11, %v2845_v43  ;;  %v10513_v9 = vld [vmem:[#allocation86_spill] sm:$0xff]  ;;  %v4040_v11 = vld [vmem:[#allocation10 + $0x1e0] sm:$0xff] }
 0x3c7   :  { %5217 = vmatprep.subr.mxu1 %v10509_v37  ;;  %5525 = vmatpush3.msra.mxu0 %v10508_v25  ;;  %v4018_v25 = vld [vmem:[#allocation10 + $0x130] sm:$0xff]  ;;  %v3906_v37 = vld [vmem:[#allocation10 + $0x20] sm:$0xff]  ;;  %v4033_v43 = vld [vmem:[#allocation10 + $0x1a8] sm:$0xff] }
 0x3c8   :  { %5218 = vmatpush3.msra.mxu1 %v10510_v22  ;;  %5526 = vmatprep.subr.mxu0 %v10511_v17  ;;  %v3921_v22 = vld [vmem:[#allocation10 + $0x98] sm:$0xff] }
 0x3c9   :  { %5219 = vmatprep.subr.mxu1 %v9142_v29  ;;  %5527 = vmatpush3.msra.mxu0 %v10511_v17  ;;  %v2970_v29 = vadd.f32 %v9348_v45, %v2930_v56  ;;  %v10525_v45 = vmax.f32 %v10524_v2, 0.0  ;;  %v4017_v17 = vld [vmem:[#allocation10 + $0x128] sm:$0xff]  ;;  %v3905_v56 = vld [vmem:[#allocation10 + $0x18] sm:$0xff]  ;;  %v4028_v2 = vld [vmem:[#allocation10 + $0x180] sm:$0xff] }
 0x3ca   :  { %5220 = vmatpush3.msra.mxu1 %v10512_v3  ;;  %5528 = vmatprep.subr.mxu0 %v10513_v9  ;;  %v4032_v3 = vld [vmem:[#allocation10 + $0x1a0] sm:$0xff] }
 0x3cb   :  { %5221 = vmatprep.subr.mxu1 %v10514_v8  ;;  %5529 = vmatpush3.msra.mxu0 %v10513_v9  ;;  %v2986_v58 = vmax.f32 %v2970_v29, 0.0  ;;  %v3920_v9 = vld [vmem:[#allocation10 + $0x90] sm:$0xff]  ;;  %v4016_v8 = vld [vmem:[#allocation10 + $0x120] sm:$0xff]  ;;  %v4015_v29 = vld [vmem:[#allocation10 + $0x118] sm:$0xff] }
 0x3cc   :  { %5222 = vmatpush3.msra.mxu1 %v10515_v6  ;;  %5530 = vmatprep.subr.mxu0 %v10516_v41  ;;  %v3904_v6 = vld [vmem:[#allocation10 + $0x10] sm:$0xff] }
 0x3cd   :  { %5223 = vmatprep.subr.mxu1 %v10517_v5  ;;  %5531 = vmatpush3.msra.mxu0 %v10516_v41  ;;  %v4031_v41 = vld [vmem:[#allocation10 + $0x198] sm:$0xff]  ;;  %v3919_v5 = vld [vmem:[#allocation10 + $0x88] sm:$0xff] }
 0x3ce   :  { %5224 = vmatpush3.msra.mxu1 %v10518_v27  ;;  %5532 = vmatprep.subr.mxu0 %v10519_v16  ;;  %v3903_v27 = vld [vmem:[#allocation10 + $0x8] sm:$0xff] }
 0x3cf   :  { %3796 = vmatmul.mubr.f32.vlgmr.msra.gmra.mxu1 %v9034_v32  ;;  %5533 = vmatpush3.msra.mxu0 %v10519_v16  ;;  %v3917_v32 = vld [vmem:[#allocation10 + $0x78] sm:$0xff]  ;;  %v4030_v16 = vld [vmem:[#allocation10 + $0x190] sm:$0xff] }
 0x3d0   :  { %3800 = vmatprep.mubr.f32.mxu1 %v10521_v51  ;;  %5534 = vmatprep.subr.mxu0 %v10522_v38  ;;  %v4014_v51 = vld [vmem:[#allocation10 + $0x110] sm:$0xff] }
 0x3d1   :  { %5535 = vmatpush3.msra.mxu0 %v10522_v38  ;;  %5249 = vmatprep.subr.mxu1 %v3933_v42  ;;  %v3902_v38 = vld [vmem:[#allocation10] sm:$0xff] }
 0x3d2   :  { %5536 = vmatprep.subr.mxu0 %v10523_v62  ;;  %5250 = vmatpush3.msra.mxu1 %v3917_v32 }
 0x3d3   :  { %3801 = vmatmul.mubr.f32.gmra.mxu1 %v10525_v45  ;;  %5537 = vmatpush3.msra.mxu0 %v10523_v62  ;;  %v4013_v62 = vld [vmem:[#allocation10 + $0x108] sm:$0xff]  ;;  %v4012_v45 = vld [vmem:[#allocation10 + $0x100] sm:$0xff] }
 0x3d4   :  { %5539 = vmatmul.mubr.f32.vlgmr.msra.gmra.mxu0 %v2986_v58  ;;  %5284 = vmatprep.subr.mxu0 %v4043_v61  ;;  %v4029_v58 = vld [vmem:[#allocation10 + $0x188] sm:$0xff] }
 0x3d5   :  { %5251 = vmatprep.subr.mxu1 %v3932_v26  ;;  %5285 = vmatpush3.msra.mxu0 %v4027_v21  ;;  %v4941_v26 = vpop.f32.mrf.mxu1 }
 0x3d6   :  { %5252 = vmatpush3.msra.mxu1 %v3916_v39  ;;  %5286 = vmatprep.subr.mxu0 %v4042_v48 }
 0x3d7   :  { %5253 = vmatprep.subr.mxu1 %v3931_v47  ;;  %5287 = vmatpush3.msra.mxu0 %v4026_v40  ;;  %v4942_v61 = vpop.f32.mrf.mxu1 }
 0x3d8   :  { %5254 = vmatpush3.msra.mxu1 %v3915_v53  ;;  %5288 = vmatprep.subr.mxu0 %v4041_v30 }
 0x3d9   :  { %5255 = vmatprep.subr.mxu1 %v3930_v10  ;;  %5289 = vmatpush3.msra.mxu0 %v4025_v24  ;;  %v4944_v21 = vpop.f32.mrf.mxu1 }
 0x3da   :  { %5256 = vmatpush3.msra.mxu1 %v3914_v44  ;;  %5290 = vmatprep.subr.mxu0 %v4040_v11 }
 0x3db   :  { %5257 = vmatprep.subr.mxu1 %v3929_v12  ;;  %5291 = vmatpush3.msra.mxu0 %v4024_v52  ;;  %v4945_v53 = vpop.f32.mrf.mxu1 }
 0x3dc   :  { %5258 = vmatpush3.msra.mxu1 %v3913_v57  ;;  %5292 = vmatprep.subr.mxu0 %v4039_v28 }
 0x3dd   :  { %5259 = vmatprep.subr.mxu1 %v3928_v59  ;;  %5293 = vmatpush3.msra.mxu0 %v4023_v4 }
 0x3de   :  { %5260 = vmatpush3.msra.mxu1 %v3912_v23  ;;  %5294 = vmatprep.subr.mxu0 %v4038_v0 }
 0x3df   :  { %5261 = vmatprep.subr.mxu1 %v3927_v13  ;;  %5295 = vmatpush3.msra.mxu0 %v4022_v33 }
 0x3e0   :  { %5262 = vmatpush3.msra.mxu1 %v3911_v14  ;;  %5296 = vmatprep.subr.mxu0 %v4037_v19 }
 0x3e1   :  { %5263 = vmatprep.subr.mxu1 %v3926_v46  ;;  %5297 = vmatpush3.msra.mxu0 %v4021_v7  ;;  %v4943_v7 = vadd.f32 %v4942_v61, %v4941_v26 }
 0x3e2   :  { %5264 = vmatpush3.msra.mxu1 %v3910_v15  ;;  %5298 = vmatprep.subr.mxu0 %v4036_v60 }
 0x3e3   :  { %5265 = vmatprep.subr.mxu1 %v3925_v54  ;;  %5299 = vmatpush3.msra.mxu0 %v4020_v49 }
 0x3e4   :  { %5266 = vmatpush3.msra.mxu1 %v3909_v50  ;;  %5300 = vmatprep.subr.mxu0 %v4035_v55 }
 0x3e5   :  { %5267 = vmatprep.subr.mxu1 %v3924_v34  ;;  %5301 = vmatpush3.msra.mxu0 %v4019_v35 }
 0x3e6   :  { %5268 = vmatpush3.msra.mxu1 %v3908_v20  ;;  %5302 = vmatprep.subr.mxu0 %v4034_v31  ;;  %v4946_v20 = vadd.f32 %v4945_v53, %v4944_v21 }
 0x3e7   :  { %5269 = vmatprep.subr.mxu1 %v3923_v18  ;;  %5303 = vmatpush3.msra.mxu0 %v4018_v25 }
 0x3e8   :  { %5270 = vmatpush3.msra.mxu1 %v3907_v1  ;;  %5304 = vmatprep.subr.mxu0 %v4033_v43 }
 0x3e9   :  { %5271 = vmatprep.subr.mxu1 %v3922_v36  ;;  %5305 = vmatpush3.msra.mxu0 %v4017_v17 }
 0x3ea   :  { %5272 = vmatpush3.msra.mxu1 %v3906_v37  ;;  %5306 = vmatprep.subr.mxu0 %v4032_v3 }
 0x3eb   :  { %5273 = vmatprep.subr.mxu1 %v3921_v22  ;;  %5307 = vmatpush3.msra.mxu0 %v4016_v8 }
 0x3ec   :  { %5274 = vmatpush3.msra.mxu1 %v3905_v56  ;;  %5308 = vmatprep.subr.mxu0 %v4031_v41 }
 0x3ed   :  { %5275 = vmatprep.subr.mxu1 %v3920_v9  ;;  %5309 = vmatpush3.msra.mxu0 %v4015_v29  ;;  %v3881_v9 = vld [vmem:[#allocation9] sm:$0x3] }
 0x3ee   :  { %5276 = vmatpush3.msra.mxu1 %v3904_v6  ;;  %5310 = vmatprep.subr.mxu0 %v4030_v16 }
 0x3ef   :  { %5277 = vmatprep.subr.mxu1 %v3919_v5  ;;  %5311 = vmatpush3.msra.mxu0 %v4014_v51  ;;  %v10526_v51 = vld [vmem:[#allocation54_spill] sm:$0xff] }
 0x3f0   :  { %5278 = vmatpush3.msra.mxu1 %v3903_v27  ;;  %5312 = vmatprep.subr.mxu0 %v4029_v58 }
 0x3f1   :  { %5279 = vmatprep.subr.mxu1 %v3918_v63  ;;  %5313 = vmatpush3.msra.mxu0 %v4013_v62 }
 0x3f2   :  { %5280 = vmatpush3.msra.mxu1 %v3902_v38  ;;  %5314 = vmatprep.subr.mxu0 %v4028_v2  ;;  %v3886_v38 = vrot.slane %v3881_v9, %v10526_v51 }
 0x3f3   :  { %5315 = vmatpush3.msra.mxu0 %v4012_v45 }
 0x403   :  { %v4979_v42 = vpop.f32.mrf.mxu0 }
 0x405   :  { %v4980_v32 = vpop.f32.mrf.mxu0 }
 0x406   :  { %v4981_v19 = vadd.f32 %v4980_v32, %v4979_v42  ;;  %v10527_v42 = vld [vmem:[#allocation55_spill] sm:$0xff] }
 0x407   :  { %v4982_v39 = vpop.f32.mrf.mxu0  ;;  %v3890_v32 = vrot.slane %v3881_v9, %v10527_v42 }
 0x408   :  { %v5017_v10 = vpop.f32.mrf.mxu1  ;;  %v3273_v60 = vadd.f32 %v4981_v19, %v4943_v7 }
 0x409   :  { %v4983_v47 = vpop.f32.mrf.mxu0 }
 0x40a   :  { %v5018_v24 = vpop.f32.mrf.mxu1  ;;  %v4984_v54 = vadd.f32 %v4983_v47, %v4982_v39 }
 0x40b   :  { %v5019_v15 = vadd.f32 %v5018_v24, %v5017_v10 }
 0x40c   :  { %v3278_v36 = vadd.f32 %v4984_v54, %v4946_v20 }
 0x40d   :  { %v5020_v11 = vpop.f32.mrf.mxu1  ;;  %v3348_v35 = vadd.f32 %v5019_v15, %v3273_v60 }
 0x40f   :  { %v5021_v52 = vpop.f32.mrf.mxu1 }
 0x410   :  { %v5022_v55 = vadd.f32 %v5021_v52, %v5020_v11 }
 0x412   :  { %v3353_v3 = vadd.f32 %v5022_v55, %v3278_v36 }
 0x425   :  { %v5055_v48 = vpop.f32.mrf.mxu0 }
 0x427   :  { %v5056_v40 = vpop.f32.mrf.mxu0 }
 0x428   :  { %v5057_v34 = vadd.f32 %v5056_v40, %v5055_v48 }
 0x42a   :  { %v5505_v28 = vpop.f32.mrf.mxu1  ;;  %v3423_v22 = vadd.f32 %v5057_v34, %v3348_v35 }
 0x42b   :  { %v5058_v30 = vpop.f32.mrf.mxu0 }
 0x42c   :  { %v3497_v4 = vpop.f32.mrf.mxu1 }
 0x42d   :  { %v5059_v44 = vpop.f32.mrf.mxu0  ;;  %v3498_v63 = vadd.f32 %v3497_v4, %v3423_v22 }
 0x42e   :  { %v5060_v25 = vadd.f32 %v5059_v44, %v5058_v30 }
 0x42f   :  { %v3893_v48 = vadd.f32 %v3886_v38, %v3498_v63 }
 0x430   :  { %v3428_v27 = vadd.f32 %v5060_v25, %v3353_v3 }
 0x431   :  { %v3897_v44 = vmax.f32 %v3893_v48, 0.0 }
 0x432   :  { %v3503_v47 = vadd.f32 %v5505_v28, %v3428_v27 }
 0x434   :  { %v3895_v30 = vadd.f32 %v3886_v38, %v3503_v47 }
 0x436   :  { %v3899_v52 = vmax.f32 %v3895_v30, 0.0 }
 0x447   :  { %v5111_v12 = vpop.f32.mrf.mxu0 }
 0x449   :  { %v5112_v57 = vpop.f32.mrf.mxu0 }
 0x44a   :  { %v5113_v1 = vadd.f32 %v5112_v57, %v5111_v12 }
 0x44b   :  { %v5114_v59 = vpop.f32.mrf.mxu0 }
 0x44d   :  { %v5115_v23 = vpop.f32.mrf.mxu0 }
 0x44e   :  { %v5116_v6 = vadd.f32 %v5115_v23, %v5114_v59  ;;  %v4124_v59 = vld [vmem:[#allocation12] ss:$0 sm:$0xff] }
 0x46e   :  { %v5187_v13 = vpop.f32.mrf.mxu0 }
 0x46f   :  { %v5149_v0 = vpop.f32.mrf.mxu1 }
 0x470   :  { %v5188_v14 = vpop.f32.mrf.mxu0 }
 0x471   :  { %v5150_v33 = vpop.f32.mrf.mxu1  ;;  %v5189_v31 = vadd.f32 %v5188_v14, %v5187_v13 }
 0x472   :  { %v5151_v49 = vadd.f32 %v5150_v33, %v5149_v0 }
 0x473   :  { %v5152_v46 = vpop.f32.mrf.mxu1 }
 0x474   :  { %v3648_v17 = vadd.f32 %v5151_v49, %v5113_v1 }
 0x475   :  { %v5153_v18 = vpop.f32.mrf.mxu1 }
 0x476   :  { %v5190_v50 = vpop.f32.mrf.mxu0  ;;  %v5154_v56 = vadd.f32 %v5153_v18, %v5152_v46  ;;  %v3723_v41 = vadd.f32 %v5189_v31, %v3648_v17 }
 0x478   :  { %v5191_v37 = vpop.f32.mrf.mxu0  ;;  %v3653_v58 = vadd.f32 %v5154_v56, %v5116_v6 }
 0x479   :  { %v5192_v5 = vadd.f32 %v5191_v37, %v5190_v50 }
 0x47b   :  { %v3728_v26 = vadd.f32 %v5192_v5, %v3653_v58 }
 0x48f   :  { %v5225_v43 = vpop.f32.mrf.mxu1 }
 0x491   :  { %v5226_v8 = vpop.f32.mrf.mxu1 }
 0x492   :  { %v5227_v29 = vadd.f32 %v5226_v8, %v5225_v43 }
 0x493   :  { %v5228_v16 = vpop.f32.mrf.mxu1 }
 0x494   :  { %v5540_v62 = vpop.f32.mrf.mxu0  ;;  %v3798_v2 = vadd.f32 %v5227_v29, %v3723_v41 }
 0x495   :  { %v5229_v45 = vpop.f32.mrf.mxu1 }
 0x496   :  { %v5230_v39 = vadd.f32 %v5229_v45, %v5228_v16  ;;  %v3872_v61 = vpop.f32.mrf.mxu0 }
 0x497   :  { %v3873_v21 = vadd.f32 %v3872_v61, %v3798_v2 }
 0x498   :  { %v3803_v53 = vadd.f32 %v5230_v39, %v3728_v26 }
 0x499   :  { %v3894_v40 = vadd.f32 %v3890_v32, %v3873_v21 }
 0x49a   :  { %v3878_v10 = vadd.f32 %v5540_v62, %v3803_v53 }
 0x49b   :  { %v3898_v24 = vmax.f32 %v3894_v40, 0.0 }
 0x49c   :  { %v3896_v11 = vadd.f32 %v3890_v32, %v3878_v10 }
 0x49d   :  { %3998 = vmatprep.mubr.f32.mxu1 %v3898_v24 }
 0x49e   :  { %3999 = vmatmul.mubr.f32.vlgmr.msra.gmra.mxu1 %v3897_v44  ;;  %v3900_v12 = vmax.f32 %v3896_v11, 0.0 }
 0x4a0   :  { %4108 = vmatprep.mubr.f32.mxu0 %v3900_v12 }
 0x4a1   :  { %4109 = vmatmul.mubr.f32.vlgmr.msra.gmra.mxu0 %v3899_v52 }
 0x55e   :  { %v5281_v57 = vpop.f32.mrf.mxu1 }
 0x560   :  { %v5282_v4 = vpop.f32.mrf.mxu1 }
 0x561   :  { %v5283_v23 = vadd.f32 %v5282_v4, %v5281_v57  ;;  %v5316_v28 = vpop.f32.mrf.mxu0 }
 0x563   :  { %v4010_v0 = vadd.f32 %v5283_v23, %v4124_v59  ;;  %v5317_v13 = vpop.f32.mrf.mxu0 }
 0x564   :  { %v5318_v33 = vadd.f32 %v5317_v13, %v5316_v28 }
 0x566   :  { %v4114_v14 = vadd.f32 %v5318_v33, %v4010_v0 }
 0x568   :  { %4115 = vst [vmem:[%s9454_s9] sm:$0xff] %v4114_v14 }
 0x569   :  { %4120 = vsyncpa [#allocation3], 1 }
 0x56a   :  { %4121 = vsyncpa [#allocation5], 1 }
 0x56b   :  { %4122 = vsyncpa [#allocation8], 1 }
 0x56c   :  { %4123 = vsyncpa [#allocation11], 1 }

</bundles_post_ra>
